<compile_context>
chip_gen: v7x
topology: tpu7x:2x2x1
jax: 0.10.0
libtpu: 0.0.40
codegen_flags: <defaults>
</compile_context>

<pallas_src>
import jax
import jax.numpy as jnp
import numpy as np
from jax.experimental import pallas as pl
from jax.experimental.pallas import tpu as pltpu

_MIN_PALLAS_ELEMS = 256 * 1024            # below this, let XLA fuse it
_TARGET_TILE_BYTES = 4 * 1024 * 1024      # ~85% of HBM roofline on v6e
_VMEM_BUFFER_BUDGET = 32 * 1024 * 1024    # 2 * num_streams * tile <= this
_VMEM_LIMIT_BYTES = 48 * 1024 * 1024      # < v7x 64 MiB physical VMEM


def _make_kernel(f_scalar: bool, b_scalar: bool, r_scalar: bool):
    """Elementwise kernel specialized on which operands arrive as SMEM scalars.

    When `b_scalar` is True the wrapper passes 1/Flops_baseline, so the hot
    loop multiplies instead of dividing (division hoisted out of the kernel).
    """

    def kernel(f_ref, b_ref, r_ref, o_ref):
        f = f_ref[0] if f_scalar else f_ref[...]
        if b_scalar:
            x = f * b_ref[0]          # b_ref holds 1 / Flops_baseline
        else:
            x = f / b_ref[...]
        r = r_ref[0] if r_scalar else r_ref[...]
        d = x - r
        o_ref[...] = d * d

    return kernel


def mask_loss(flops, flops_baseline, compress_rate):
    """Pallas implementation of MaskLoss.forward with NumPy-style broadcasting."""
    flops = jnp.asarray(flops, dtype=jnp.float32)
    flops_baseline = jnp.asarray(flops_baseline, dtype=jnp.float32)
    compress_rate = jnp.asarray(compress_rate, dtype=jnp.float32)

    out_shape = jnp.broadcast_shapes(
        flops.shape, flops_baseline.shape, compress_rate.shape
    )
    n = int(np.prod(out_shape)) if len(out_shape) > 0 else 1

    def _jnp_path():
        # XLA fuses this single elementwise expression at HBM roofline.
        return jnp.square(flops / flops_baseline - compress_rate)

    # Small inputs: pallas_call fixed overhead dwarfs the work.
    if n < _MIN_PALLAS_ELEMS:
        return _jnp_path()
    # Require a layout-preserving 2-D collapse (bitcast, no relayout copy).
    if len(out_shape) < 2 or out_shape[-2] % 8 != 0:
        return _jnp_path()

    f_scalar = flops.size == 1
    b_scalar = flops_baseline.size == 1
    r_scalar = compress_rate.size == 1

    # Partially-broadcast operands (1 < size < n) would need broadcast_to
    # materialization (2 extra HBM passes) -> let XLA handle those instead.
    for x, is_sc in ((flops, f_scalar),
                     (flops_baseline, b_scalar),
                     (compress_rate, r_scalar)):
        if not is_sc and tuple(x.shape) != tuple(out_shape):
            return _jnp_path()

    cols = out_shape[-1]
    rows = n // cols                      # multiple of 8 (gated above)
    row_bytes = cols * 4

    num_streams = 1 + sum(not s for s in (f_scalar, b_scalar, r_scalar))

    # Degenerate case: even an 8-row block would blow the VMEM budget.
    if 8 * row_bytes * 2 * num_streams > _VMEM_BUFFER_BUDGET:
        return _jnp_path()

    # Stream-count-aware tile sizing: tile <= budget / (2 * streams), ~4 MiB.
    tile_bytes = min(_TARGET_TILE_BYTES, _VMEM_BUFFER_BUDGET // (2 * num_streams))
    tile_rows = max(8, (tile_bytes // row_bytes) // 8 * 8)
    tile_rows = min(tile_rows, rows)
    # v7x megacore: make sure the "parallel" grid axis has >= 2 steps.
    if tile_rows >= rows and rows > 8:
        tile_rows = max(8, ((rows + 1) // 2 + 7) // 8 * 8)
    grid = (pl.cdiv(rows, tile_rows),)

    stream_spec = pl.BlockSpec((tile_rows, cols), lambda i: (i, 0))
    smem_spec = pl.BlockSpec(memory_space=pltpu.MemorySpace.SMEM)

    args, in_specs = [], []

    # Flops
    if f_scalar:
        args.append(flops.reshape(1))
        in_specs.append(smem_spec)
    else:
        args.append(flops.reshape(rows, cols))        # bitcast view
        in_specs.append(stream_spec)

    # Flops_baseline (reciprocal hoisted to the wrapper when scalar; this
    # differs from a true divide by ~1-2 ulps).
    if b_scalar:
        args.append((1.0 / flops_baseline).reshape(1))
        in_specs.append(smem_spec)
    else:
        args.append(flops_baseline.reshape(rows, cols))
        in_specs.append(stream_spec)

    # compress_rate
    if r_scalar:
        args.append(compress_rate.reshape(1))
        in_specs.append(smem_spec)
    else:
        args.append(compress_rate.reshape(rows, cols))
        in_specs.append(stream_spec)

    padded_elems = grid[0] * tile_rows * cols
    cost = pl.CostEstimate(
        flops=3 * padded_elems,
        transcendentals=0,
        bytes_accessed=4 * padded_elems * num_streams,
    )

    out = pl.pallas_call(
        _make_kernel(f_scalar, b_scalar, r_scalar),
        out_shape=jax.ShapeDtypeStruct((rows, cols), jnp.float32),
        grid=grid,
        in_specs=in_specs,
        out_specs=stream_spec,
        compiler_params=pltpu.CompilerParams(
            dimension_semantics=("parallel",),
            vmem_limit_bytes=_VMEM_LIMIT_BYTES,
        ),
        cost_estimate=cost,
    )(*args)

    # Same bitcast condition as the input collapse -> free reshape back.
    return out.reshape(out_shape)


if __name__ == "__main__":
    key = jax.random.PRNGKey(0)
    k1, k2, k3 = jax.random.split(key, 3)

    # A) Tensor FLOPs vs. tensor baseline, scalar rate: Pallas path with the
    #    in-kernel divide (3 streams, 2-step parallel grid).
    shape = (16, 8, 64, 64)   # 512K elements -> above the Pallas threshold
    flops = jax.random.uniform(k1, shape, jnp.float32, 1.0, 10.0)
    base = jax.random.uniform(k2, shape, jnp.float32, 5.0, 20.0)
    rate = jnp.float32(0.5)
    out = jax.block_until_ready(mask_loss(flops, base, rate))
    ref = jnp.square(flops / base - rate)
    np.testing.assert_allclose(np.asarray(out), np.asarray(ref),
                               rtol=1e-6, atol=1e-6)

    # B) Tensor FLOPs with scalar baseline + scalar rate: exercises the SMEM
    #    scalar path and the hoisted reciprocal (2 streams).
    flops2 = jax.random.uniform(k3, shape, jnp.float32, 1.0, 10.0)
    out2 = jax.block_until_ready(
        mask_loss(flops2, jnp.float32(7.5), jnp.float32(0.35)))
    ref2 = jnp.square(flops2 / 7.5 - 0.35)
    np.testing.assert_allclose(np.asarray(out2), np.asarray(ref2),
                               rtol=1e-5, atol=1e-6)

    # C) Small tensor and pure-scalar usage: jnp fast path (XLA fusion).
    small = jax.random.uniform(k1, (2, 4, 16, 16), jnp.float32, 1.0, 10.0)
    out3 = jax.block_until_ready(
        mask_loss(small, jnp.float32(6.0), jnp.float32(0.4)))
    np.testing.assert_allclose(np.asarray(out3),
                               np.asarray(jnp.square(small / 6.0 - 0.4)),
                               rtol=1e-6, atol=1e-6)

    out4 = jax.block_until_ready(
        mask_loss(jnp.float32(3.0e9), jnp.float32(6.0e9), jnp.float32(0.4)))
    np.testing.assert_allclose(float(out4), (3.0e9 / 6.0e9 - 0.4) ** 2,
                               rtol=1e-6)

    print("KERNEL_OK")
</pallas_src>

<mosaic_0001>
module attributes {stable_mosaic.version = 11 : i64} {
  func.func @kernel(%arg0: i32, %arg1: memref<4096x64xf32, #tpu.memory_space<vmem>>, %arg2: memref<4096x64xf32, #tpu.memory_space<vmem>>, %arg3: memref<1xf32, #tpu.memory_space<smem>>, %arg4: memref<4096x64xf32, #tpu.memory_space<vmem>>) attributes {dimension_semantics = [#tpu.dimension_semantics<parallel>], iteration_bounds = array<i64: 2>, scalar_prefetch = 0 : i64, scratch_operands = 0 : i64, tpu.core_type = #tpu.core_type<tc>, window_params = [{transform_indices = @transform_0, window_bounds = array<i64: 4096, 64>}, {transform_indices = @transform_1, window_bounds = array<i64: 4096, 64>}, {transform_indices = @transform_2, window_bounds = array<i64: 1>}, {transform_indices = @transform_3, window_bounds = array<i64: 4096, 64>}]} {
    %c0 = arith.constant 0 : index
    %c0_0 = arith.constant 0 : index
    %0 = vector.load %arg1[%c0, %c0_0] : memref<4096x64xf32, #tpu.memory_space<vmem>>, vector<4096x64xf32>
    %c0_1 = arith.constant 0 : index
    %c0_2 = arith.constant 0 : index
    %1 = vector.load %arg2[%c0_1, %c0_2] : memref<4096x64xf32, #tpu.memory_space<vmem>>, vector<4096x64xf32>
    %2 = arith.divf %0, %1 : vector<4096x64xf32>
    %c0_3 = arith.constant 0 : index
    %3 = memref.load %arg3[%c0_3] : memref<1xf32, #tpu.memory_space<smem>>
    %4 = vector.broadcast %3 : f32 to vector<4096x64xf32>
    %5 = arith.subf %2, %4 : vector<4096x64xf32>
    %6 = arith.mulf %5, %5 : vector<4096x64xf32>
    %c0_4 = arith.constant 0 : index
    %c0_5 = arith.constant 0 : index
    %7 = vector.load %arg4[%c0_4, %c0_5] : memref<4096x64xf32, #tpu.memory_space<vmem>>, vector<4096x64xf32>
    tpu.vector_store %arg4[%c0_4, %c0_5], %6 {strides = array<i32>} : memref<4096x64xf32, #tpu.memory_space<vmem>>, vector<4096x64xf32>,
    return
  }
  func.func @transform_0(%arg0: i32) -> (i32, i32) {
    %c0_i32 = arith.constant 0 : i32
    %c0_i32_0 = arith.constant 0 : i32
    return %arg0, %c0_i32 : i32, i32
  }
  func.func @transform_1(%arg0: i32) -> (i32, i32) {
    %c0_i32 = arith.constant 0 : i32
    %c0_i32_0 = arith.constant 0 : i32
    return %arg0, %c0_i32 : i32, i32
  }
  func.func @transform_2(%arg0: i32) -> i32 {
    %c0_i32 = arith.constant 0 : i32
    %c0_i32_0 = arith.constant 0 : i32
    return %c0_i32 : i32
  }
  func.func @transform_3(%arg0: i32) -> (i32, i32) {
    %c0_i32 = arith.constant 0 : i32
    %c0_i32_0 = arith.constant 0 : i32
    return %arg0, %c0_i32 : i32, i32
  }
}

</mosaic_0001>

<bundles_post_ra>
// kernel: tpu_custom_call.1
= control target key start
LH: loop header
LB: loop body
LE: loop exit
PB: predicated region body
PF: predicated region fallthrough
CT: control target
= control target key end

     0   :  { %s4928_s14 = smov 0   ;;  %s7521_s0 = inlined_call_operand.vmem [shape: f32[8192,64], index: 0, kind: input, shape index: {}]   ;;  %s7522_s1 = inlined_call_operand.vmem [shape: f32[8192,64], index: 1, kind: input, shape index: {}]   ;;  %s7523_s2 = inlined_call_operand.<no memory space> [shape: f32[1], index: 2, kind: input, shape index: {}]   ;;  %s7524_s3 = inlined_call_operand.vmem [shape: f32[8192,64], index: 3, kind: output, shape index: {}]  }
   0x1   :  { %8 = sst [smem:[#allocation2]] %s7523_s2 }
   0x2 LB: > { %s3852_s15 = sadd.s32 4294967295, %s4903_s14   ;;  %p3856_p0 = scmp.ge.s32.totalorder %s4903_s14, 1  ;;  %s4903_s14 = sphi %s4928_s14, %s14_s14  }
   0x3   : > { %p150_p1 = scmp.lt.s32.totalorder %s4903_s14, 3 }
   0x5   : > { %p151_p2 = pnand %p3856_p0, %p150_p1 }
   0x6   : > { %s3857_s16 = sshll.u32 (!%p151_p2), %s3852_s15, 9  ;;  %s2245_s20 = sld [smem:[#allocation2]] (!%p151_p2)  ;;  %vm3271_vm0 = vcmask (!%p151_p2), 523264  }
   0x7   : > { %154 = sbr.rel (%p151_p2) target bundleno = 547 (0x223), region = 32  ;;  %p180_p3 = scmp.lt.s32.totalorder (!%p151_p2), %s3857_s16, 1023 }
   0xc   : > { %v4965_v16 = vstv (!%p151_p2), %s2245_s20 }
   0xe   : > { %s7526_s16 = smov (!%p180_p3, %s3857_s16), 1023 }
   0xf   : > { %s4936_s17 = sshll.u32 %s7526_s16, 3 }
  0x10   : > { %s4942_s19 = scalar_lea.vmem %s7522_s1, %s4936_s17  ;;  %s4956_s23 = scalar_lea.vmem %s7521_s0, %s4936_s17 }
  0x11   : > { %v709_v0 = vld [vmem:[%s4942_s19] sm:$0xff]  ;;  %v710_v1 = vld [vmem:[%s4942_s19 + $0x8] sm:$0xff]  ;;  %v711_v2 = vld [vmem:[%s4942_s19 + $0x10] sm:$0xff]  ;;  %s4980_s26 = scalar_lea.vmem %s7524_s3, %s4936_s17 }
  0x12   : > { %3873 = vrcp.f32 %v709_v0  ;;  %v712_v3 = vld [vmem:[%s4942_s19 + $0x18] sm:$0xff]  ;;  %v713_v4 = vld [vmem:[%s4942_s19 + $0x20] sm:$0xff]  ;;  %v714_v5 = vld [vmem:[%s4942_s19 + $0x28] sm:$0xff] }
  0x13   : > { %3875 = vrcp.f32 %v710_v1  ;;  %v715_v6 = vld [vmem:[%s4942_s19 + $0x30] sm:$0xff]  ;;  %v716_v7 = vld [vmem:[%s4942_s19 + $0x38] sm:$0xff]  ;;  %v717_v8 = vld [vmem:[%s4942_s19 + $0x40] sm:$0xff] }
  0x14   : > { %3877 = vrcp.f32 %v711_v2  ;;  %v718_v9 = vld [vmem:[%s4942_s19 + $0x48] sm:$0xff]  ;;  %v719_v10 = vld [vmem:[%s4942_s19 + $0x50] sm:$0xff]  ;;  %v197_v11 = vld [vmem:[%s4956_s23] sm:$0xff] }
  0x15   : > { %3879 = vrcp.f32 %v712_v3  ;;  %v720_v12 = vld [vmem:[%s4942_s19 + $0x58] sm:$0xff]  ;;  %v198_v13 = vld [vmem:[%s4956_s23 + $0x8] sm:$0xff]  ;;  %v721_v14 = vld [vmem:[%s4942_s19 + $0x60] sm:$0xff] }
  0x16   : > { %3881 = vrcp.f32 %v713_v4  ;;  %v199_v17 = vld [vmem:[%s4956_s23 + $0x10] sm:$0xff]  ;;  %v722_v18 = vld [vmem:[%s4942_s19 + $0x68] sm:$0xff]  ;;  %v200_v21 = vld [vmem:[%s4956_s23 + $0x18] sm:$0xff] }
  0x17   : > { %3883 = vrcp.f32 %v714_v5  ;;  %v723_v22 = vld [vmem:[%s4942_s19 + $0x70] sm:$0xff]  ;;  %v201_v25 = vld [vmem:[%s4956_s23 + $0x20] sm:$0xff]  ;;  %v724_v26 = vld [vmem:[%s4942_s19 + $0x78] sm:$0xff] }
  0x18   : > { %3885 = vrcp.f32 %v715_v6  ;;  %v202_v30 = vld [vmem:[%s4956_s23 + $0x28] sm:$0xff]  ;;  %v725_v31 = vld [vmem:[%s4942_s19 + $0x80] sm:$0xff]  ;;  %v203_v35 = vld [vmem:[%s4956_s23 + $0x30] sm:$0xff] }
  0x19   : > { %3887 = vrcp.f32 %v716_v7  ;;  %v726_v36 = vld [vmem:[%s4942_s19 + $0x88] sm:$0xff]  ;;  %v204_v41 = vld [vmem:[%s4956_s23 + $0x38] sm:$0xff]  ;;  %v727_v42 = vld [vmem:[%s4942_s19 + $0x90] sm:$0xff] }
  0x1a   : > { %3889 = vrcp.f32 %v717_v8  ;;  %v205_v47 = vld [vmem:[%s4956_s23 + $0x40] sm:$0xff]  ;;  %v728_v48 = vld [vmem:[%s4942_s19 + $0x98] sm:$0xff]  ;;  %v206_v53 = vld [vmem:[%s4956_s23 + $0x48] sm:$0xff] }
  0x1b   : > { %3891 = vrcp.f32 %v718_v9  ;;  %v729_v54 = vld [vmem:[%s4942_s19 + $0xa0] sm:$0xff]  ;;  %v207_v59 = vld [vmem:[%s4956_s23 + $0x50] sm:$0xff]  ;;  %v730_v60 = vld [vmem:[%s4942_s19 + $0xa8] sm:$0xff] }
  0x1c   : > { %v3874_v15 = vpop.eup %3873  ;;  %3893 = vrcp.f32 %v719_v10  ;;  %v208_v1 = vld [vmem:[%s4956_s23 + $0x58] sm:$0xff]  ;;  %v731_v2 = vld [vmem:[%s4942_s19 + $0xb0] sm:$0xff]  ;;  %v209_v7 = vld [vmem:[%s4956_s23 + $0x60] sm:$0xff] }
  0x1d   : > { %v3876_v19 = vpop.eup %3875  ;;  %v1222_v20 = vmul.f32 %v3874_v15, %v197_v11  ;;  %3895 = vrcp.f32 %v720_v12  ;;  %v732_v8 = vld [vmem:[%s4942_s19 + $0xb8] sm:$0xff] }
  0x1e   : > { %v3878_v23 = vpop.eup %3877  ;;  %v1224_v24 = vmul.f32 %v3876_v19, %v198_v13  ;;  %3897 = vrcp.f32 %v721_v14  ;;  %v210_v13 = vld [vmem:[%s4956_s23 + $0x68] sm:$0xff]  ;;  %v733_v14 = vld [vmem:[%s4942_s19 + $0xc0] sm:$0xff] }
  0x1f   : > { %v3880_v27 = vpop.eup %3879  ;;  %v2247_v28 = vsub.f32 %v1222_v20, %v4965_v16  ;;  %v1226_v29 = vmul.f32 %v3878_v23, %v199_v17  ;;  %3899 = vrcp.f32 %v722_v18  ;;  %v211_v20 = vld [vmem:[%s4956_s23 + $0x70] sm:$0xff] }
  0x20   : > { %v3882_v32 = vpop.eup %3881  ;;  %v2248_v33 = vsub.f32 %v1224_v24, %v4965_v16  ;;  %v1228_v34 = vmul.f32 %v3880_v27, %v200_v21  ;;  %3901 = vrcp.f32 %v723_v22  ;;  %v734_v21 = vld [vmem:[%s4942_s19 + $0xc8] sm:$0xff]  ;;  %v735_v27 = vld [vmem:[%s4942_s19 + $0xd0] sm:$0xff] }
  0x21   : > { %v3884_v37 = vpop.eup %3883  ;;  %v2759_v38 = vmul.f32 %v2247_v28, %v2247_v28  ;;  %v2249_v39 = vsub.f32 %v1226_v29, %v4965_v16  ;;  %v1230_v40 = vmul.f32 %v3882_v32, %v201_v25  ;;  %3903 = vrcp.f32 %v724_v26  ;;  %v212_v26 = vld [vmem:[%s4956_s23 + $0x78] sm:$0xff]  ;;  %v213_v32 = vld [vmem:[%s4956_s23 + $0x80] sm:$0xff] }
  0x22   : > { %v3886_v43 = vpop.eup %3885  ;;  %v2760_v44 = vmul.f32 %v2248_v33, %v2248_v33  ;;  %v2250_v45 = vsub.f32 %v1228_v34, %v4965_v16  ;;  %v1232_v46 = vmul.f32 %v3884_v37, %v202_v30  ;;  %3905 = vrcp.f32 %v725_v31  ;;  %v736_v33 = vld [vmem:[%s4942_s19 + $0xd8] sm:$0xff] }
  0x23   : > { %v3888_v49 = vpop.eup %3887  ;;  %3272 = vst.msk [vmem:[%s4980_s26] sm:$0xff] %vm3271_vm0, %v2759_v38  ;;  %v2761_v50 = vmul.f32 %v2249_v39, %v2249_v39  ;;  %v2251_v51 = vsub.f32 %v1230_v40, %v4965_v16  ;;  %v1234_v52 = vmul.f32 %v3886_v43, %v203_v35  ;;  %3907 = vrcp.f32 %v726_v36  ;;  %v214_v38 = vld [vmem:[%s4956_s23 + $0x88] sm:$0xff]  ;;  %v737_v39 = vld [vmem:[%s4942_s19 + $0xe0] sm:$0xff] }
  0x24   : > { %v3890_v55 = vpop.eup %3889  ;;  %3273 = vst.msk [vmem:[%s4980_s26 + $0x8] sm:$0xff] %vm3271_vm0, %v2760_v44  ;;  %v2762_v56 = vmul.f32 %v2250_v45, %v2250_v45  ;;  %v2252_v57 = vsub.f32 %v1232_v46, %v4965_v16  ;;  %v1236_v58 = vmul.f32 %v3888_v49, %v204_v41  ;;  %3909 = vrcp.f32 %v727_v42  ;;  %v215_v44 = vld [vmem:[%s4956_s23 + $0x90] sm:$0xff]  ;;  %v738_v45 = vld [vmem:[%s4942_s19 + $0xe8] sm:$0xff] }
  0x25   : > { %v3892_v61 = vpop.eup %3891  ;;  %3274 = vst.msk [vmem:[%s4980_s26 + $0x10] sm:$0xff] %vm3271_vm0, %v2761_v50  ;;  %v2763_v62 = vmul.f32 %v2251_v51, %v2251_v51  ;;  %v2253_v63 = vsub.f32 %v1234_v52, %v4965_v16  ;;  %v1238_v0 = vmul.f32 %v3890_v55, %v205_v47  ;;  %3911 = vrcp.f32 %v728_v48  ;;  %v216_v50 = vld [vmem:[%s4956_s23 + $0x98] sm:$0xff]  ;;  %v739_v51 = vld [vmem:[%s4942_s19 + $0xf0] sm:$0xff] }
  0x26   : > { %v3894_v3 = vpop.eup %3893  ;;  %3275 = vst.msk [vmem:[%s4980_s26 + $0x18] sm:$0xff] %vm3271_vm0, %v2762_v56  ;;  %v2764_v4 = vmul.f32 %v2252_v57, %v2252_v57  ;;  %v2254_v5 = vsub.f32 %v1236_v58, %v4965_v16  ;;  %v1240_v6 = vmul.f32 %v3892_v61, %v206_v53  ;;  %3913 = vrcp.f32 %v729_v54  ;;  %v217_v56 = vld [vmem:[%s4956_s23 + $0xa0] sm:$0xff]  ;;  %v740_v57 = vld [vmem:[%s4942_s19 + $0xf8] sm:$0xff] }
  0x27   : > { %v3896_v9 = vpop.eup %3895  ;;  %3276 = vst.msk [vmem:[%s4980_s26 + $0x20] sm:$0xff] %vm3271_vm0, %v2763_v62  ;;  %v2765_v10 = vmul.f32 %v2253_v63, %v2253_v63  ;;  %v2255_v11 = vsub.f32 %v1238_v0, %v4965_v16  ;;  %v1242_v12 = vmul.f32 %v3894_v3, %v207_v59  ;;  %3915 = vrcp.f32 %v730_v60  ;;  %v218_v62 = vld [vmem:[%s4956_s23 + $0xa8] sm:$0xff]  ;;  %v741_v63 = vld [vmem:[%s4942_s19 + $0x100] sm:$0xff] }
  0x28   : > { %v3898_v15 = vpop.eup %3897  ;;  %3277 = vst.msk [vmem:[%s4980_s26 + $0x28] sm:$0xff] %vm3271_vm0, %v2764_v4  ;;  %v2766_v17 = vmul.f32 %v2254_v5, %v2254_v5  ;;  %v2256_v18 = vsub.f32 %v1240_v6, %v4965_v16  ;;  %v1244_v19 = vmul.f32 %v3896_v9, %v208_v1  ;;  %3917 = vrcp.f32 %v731_v2  ;;  %v219_v4 = vld [vmem:[%s4956_s23 + $0xb0] sm:$0xff]  ;;  %v742_v5 = vld [vmem:[%s4942_s19 + $0x108] sm:$0xff] }
  0x29   : > { %v3900_v22 = vpop.eup %3899  ;;  %3278 = vst.msk [vmem:[%s4980_s26 + $0x30] sm:$0xff] %vm3271_vm0, %v2765_v10  ;;  %v2767_v23 = vmul.f32 %v2255_v11, %v2255_v11  ;;  %v2257_v24 = vsub.f32 %v1242_v12, %v4965_v16  ;;  %v1246_v25 = vmul.f32 %v3898_v15, %v209_v7  ;;  %3919 = vrcp.f32 %v732_v8  ;;  %v220_v10 = vld [vmem:[%s4956_s23 + $0xb8] sm:$0xff]  ;;  %v743_v11 = vld [vmem:[%s4942_s19 + $0x110] sm:$0xff] }
  0x2a   : > { %v3902_v28 = vpop.eup %3901  ;;  %3279 = vst.msk [vmem:[%s4980_s26 + $0x38] sm:$0xff] %vm3271_vm0, %v2766_v17  ;;  %v2768_v29 = vmul.f32 %v2256_v18, %v2256_v18  ;;  %v2258_v30 = vsub.f32 %v1244_v19, %v4965_v16  ;;  %v1248_v31 = vmul.f32 %v3900_v22, %v210_v13  ;;  %3921 = vrcp.f32 %v733_v14  ;;  %v221_v17 = vld [vmem:[%s4956_s23 + $0xc0] sm:$0xff]  ;;  %v744_v18 = vld [vmem:[%s4942_s19 + $0x118] sm:$0xff] }
  0x2b   : > { %v3904_v34 = vpop.eup %3903  ;;  %3280 = vst.msk [vmem:[%s4980_s26 + $0x40] sm:$0xff] %vm3271_vm0, %v2767_v23  ;;  %v2769_v35 = vmul.f32 %v2257_v24, %v2257_v24  ;;  %v2259_v36 = vsub.f32 %v1246_v25, %v4965_v16  ;;  %v1250_v37 = vmul.f32 %v3902_v28, %v211_v20  ;;  %3923 = vrcp.f32 %v734_v21  ;;  %v222_v23 = vld [vmem:[%s4956_s23 + $0xc8] sm:$0xff]  ;;  %v745_v24 = vld [vmem:[%s4942_s19 + $0x120] sm:$0xff] }
  0x2c   : > { %v3906_v40 = vpop.eup %3905  ;;  %3281 = vst.msk [vmem:[%s4980_s26 + $0x48] sm:$0xff] %vm3271_vm0, %v2768_v29  ;;  %v2770_v41 = vmul.f32 %v2258_v30, %v2258_v30  ;;  %v2260_v42 = vsub.f32 %v1248_v31, %v4965_v16  ;;  %v1252_v43 = vmul.f32 %v3904_v34, %v212_v26  ;;  %3925 = vrcp.f32 %v735_v27  ;;  %v223_v29 = vld [vmem:[%s4956_s23 + $0xd0] sm:$0xff]  ;;  %v746_v30 = vld [vmem:[%s4942_s19 + $0x128] sm:$0xff] }
  0x2d   : > { %v3908_v46 = vpop.eup %3907  ;;  %3282 = vst.msk [vmem:[%s4980_s26 + $0x50] sm:$0xff] %vm3271_vm0, %v2769_v35  ;;  %v2771_v47 = vmul.f32 %v2259_v36, %v2259_v36  ;;  %v2261_v48 = vsub.f32 %v1250_v37, %v4965_v16  ;;  %v1254_v49 = vmul.f32 %v3906_v40, %v213_v32  ;;  %3927 = vrcp.f32 %v736_v33  ;;  %v224_v35 = vld [vmem:[%s4956_s23 + $0xd8] sm:$0xff]  ;;  %v747_v36 = vld [vmem:[%s4942_s19 + $0x130] sm:$0xff] }
  0x2e   : > { %v3910_v52 = vpop.eup %3909  ;;  %3283 = vst.msk [vmem:[%s4980_s26 + $0x58] sm:$0xff] %vm3271_vm0, %v2770_v41  ;;  %v2772_v53 = vmul.f32 %v2260_v42, %v2260_v42  ;;  %v2262_v54 = vsub.f32 %v1252_v43, %v4965_v16  ;;  %v1256_v55 = vmul.f32 %v3908_v46, %v214_v38  ;;  %3929 = vrcp.f32 %v737_v39  ;;  %v225_v41 = vld [vmem:[%s4956_s23 + $0xe0] sm:$0xff]  ;;  %v748_v42 = vld [vmem:[%s4942_s19 + $0x138] sm:$0xff] }
  0x2f   : > { %v3912_v58 = vpop.eup %3911  ;;  %3284 = vst.msk [vmem:[%s4980_s26 + $0x60] sm:$0xff] %vm3271_vm0, %v2771_v47  ;;  %v2773_v59 = vmul.f32 %v2261_v48, %v2261_v48  ;;  %v2263_v60 = vsub.f32 %v1254_v49, %v4965_v16  ;;  %v1258_v61 = vmul.f32 %v3910_v52, %v215_v44  ;;  %3931 = vrcp.f32 %v738_v45  ;;  %v226_v47 = vld [vmem:[%s4956_s23 + $0xe8] sm:$0xff]  ;;  %v749_v48 = vld [vmem:[%s4942_s19 + $0x140] sm:$0xff] }
  0x30   : > { %v3914_v0 = vpop.eup %3913  ;;  %3285 = vst.msk [vmem:[%s4980_s26 + $0x68] sm:$0xff] %vm3271_vm0, %v2772_v53  ;;  %v2774_v1 = vmul.f32 %v2262_v54, %v2262_v54  ;;  %v2264_v2 = vsub.f32 %v1256_v55, %v4965_v16  ;;  %v1260_v3 = vmul.f32 %v3912_v58, %v216_v50  ;;  %3933 = vrcp.f32 %v739_v51  ;;  %v227_v53 = vld [vmem:[%s4956_s23 + $0xf0] sm:$0xff]  ;;  %v750_v54 = vld [vmem:[%s4942_s19 + $0x148] sm:$0xff] }
  0x31   : > { %v3916_v6 = vpop.eup %3915  ;;  %3286 = vst.msk [vmem:[%s4980_s26 + $0x70] sm:$0xff] %vm3271_vm0, %v2773_v59  ;;  %v2775_v7 = vmul.f32 %v2263_v60, %v2263_v60  ;;  %v2265_v8 = vsub.f32 %v1258_v61, %v4965_v16  ;;  %v1262_v9 = vmul.f32 %v3914_v0, %v217_v56  ;;  %3935 = vrcp.f32 %v740_v57  ;;  %v228_v59 = vld [vmem:[%s4956_s23 + $0xf8] sm:$0xff]  ;;  %v751_v60 = vld [vmem:[%s4942_s19 + $0x150] sm:$0xff] }
  0x32   : > { %v3918_v12 = vpop.eup %3917  ;;  %3287 = vst.msk [vmem:[%s4980_s26 + $0x78] sm:$0xff] %vm3271_vm0, %v2774_v1  ;;  %v2776_v13 = vmul.f32 %v2264_v2, %v2264_v2  ;;  %v2266_v14 = vsub.f32 %v1260_v3, %v4965_v16  ;;  %v1264_v15 = vmul.f32 %v3916_v6, %v218_v62  ;;  %3937 = vrcp.f32 %v741_v63  ;;  %v229_v1 = vld [vmem:[%s4956_s23 + $0x100] sm:$0xff]  ;;  %v752_v2 = vld [vmem:[%s4942_s19 + $0x158] sm:$0xff] }
  0x33   : > { %v3920_v19 = vpop.eup %3919  ;;  %3288 = vst.msk [vmem:[%s4980_s26 + $0x80] sm:$0xff] %vm3271_vm0, %v2775_v7  ;;  %v2777_v20 = vmul.f32 %v2265_v8, %v2265_v8  ;;  %v2267_v21 = vsub.f32 %v1262_v9, %v4965_v16  ;;  %v1266_v22 = vmul.f32 %v3918_v12, %v219_v4  ;;  %3939 = vrcp.f32 %v742_v5  ;;  %v230_v7 = vld [vmem:[%s4956_s23 + $0x108] sm:$0xff]  ;;  %v753_v8 = vld [vmem:[%s4942_s19 + $0x160] sm:$0xff] }
  0x34   : > { %v3922_v25 = vpop.eup %3921  ;;  %3289 = vst.msk [vmem:[%s4980_s26 + $0x88] sm:$0xff] %vm3271_vm0, %v2776_v13  ;;  %v2778_v26 = vmul.f32 %v2266_v14, %v2266_v14  ;;  %v2268_v27 = vsub.f32 %v1264_v15, %v4965_v16  ;;  %v1268_v28 = vmul.f32 %v3920_v19, %v220_v10  ;;  %3941 = vrcp.f32 %v743_v11  ;;  %v231_v13 = vld [vmem:[%s4956_s23 + $0x110] sm:$0xff]  ;;  %v754_v14 = vld [vmem:[%s4942_s19 + $0x168] sm:$0xff] }
  0x35   : > { %v3924_v31 = vpop.eup %3923  ;;  %3290 = vst.msk [vmem:[%s4980_s26 + $0x90] sm:$0xff] %vm3271_vm0, %v2777_v20  ;;  %v2779_v32 = vmul.f32 %v2267_v21, %v2267_v21  ;;  %v2269_v33 = vsub.f32 %v1266_v22, %v4965_v16  ;;  %v1270_v34 = vmul.f32 %v3922_v25, %v221_v17  ;;  %3943 = vrcp.f32 %v744_v18  ;;  %v232_v20 = vld [vmem:[%s4956_s23 + $0x118] sm:$0xff]  ;;  %v755_v21 = vld [vmem:[%s4942_s19 + $0x170] sm:$0xff] }
  0x36   : > { %v3926_v37 = vpop.eup %3925  ;;  %3291 = vst.msk [vmem:[%s4980_s26 + $0x98] sm:$0xff] %vm3271_vm0, %v2778_v26  ;;  %v2780_v38 = vmul.f32 %v2268_v27, %v2268_v27  ;;  %v2270_v39 = vsub.f32 %v1268_v28, %v4965_v16  ;;  %v1272_v40 = vmul.f32 %v3924_v31, %v222_v23  ;;  %3945 = vrcp.f32 %v745_v24  ;;  %v233_v26 = vld [vmem:[%s4956_s23 + $0x120] sm:$0xff]  ;;  %v756_v27 = vld [vmem:[%s4942_s19 + $0x178] sm:$0xff] }
  0x37   : > { %v3928_v43 = vpop.eup %3927  ;;  %3292 = vst.msk [vmem:[%s4980_s26 + $0xa0] sm:$0xff] %vm3271_vm0, %v2779_v32  ;;  %v2781_v44 = vmul.f32 %v2269_v33, %v2269_v33  ;;  %v2271_v45 = vsub.f32 %v1270_v34, %v4965_v16  ;;  %v1274_v46 = vmul.f32 %v3926_v37, %v223_v29  ;;  %3947 = vrcp.f32 %v746_v30  ;;  %v234_v32 = vld [vmem:[%s4956_s23 + $0x128] sm:$0xff]  ;;  %v757_v33 = vld [vmem:[%s4942_s19 + $0x180] sm:$0xff] }
  0x38   : > { %v3930_v49 = vpop.eup %3929  ;;  %3293 = vst.msk [vmem:[%s4980_s26 + $0xa8] sm:$0xff] %vm3271_vm0, %v2780_v38  ;;  %v2782_v50 = vmul.f32 %v2270_v39, %v2270_v39  ;;  %v2272_v51 = vsub.f32 %v1272_v40, %v4965_v16  ;;  %v1276_v52 = vmul.f32 %v3928_v43, %v224_v35  ;;  %3949 = vrcp.f32 %v747_v36  ;;  %v235_v38 = vld [vmem:[%s4956_s23 + $0x130] sm:$0xff]  ;;  %v758_v39 = vld [vmem:[%s4942_s19 + $0x188] sm:$0xff] }
  0x39   : > { %v3932_v55 = vpop.eup %3931  ;;  %3294 = vst.msk [vmem:[%s4980_s26 + $0xb0] sm:$0xff] %vm3271_vm0, %v2781_v44  ;;  %v2783_v56 = vmul.f32 %v2271_v45, %v2271_v45  ;;  %v2273_v57 = vsub.f32 %v1274_v46, %v4965_v16  ;;  %v1278_v58 = vmul.f32 %v3930_v49, %v225_v41  ;;  %3951 = vrcp.f32 %v748_v42  ;;  %v236_v44 = vld [vmem:[%s4956_s23 + $0x138] sm:$0xff]  ;;  %v759_v45 = vld [vmem:[%s4942_s19 + $0x190] sm:$0xff] }
  0x3a   : > { %v3934_v61 = vpop.eup %3933  ;;  %3295 = vst.msk [vmem:[%s4980_s26 + $0xb8] sm:$0xff] %vm3271_vm0, %v2782_v50  ;;  %v2784_v62 = vmul.f32 %v2272_v51, %v2272_v51  ;;  %v2274_v63 = vsub.f32 %v1276_v52, %v4965_v16  ;;  %v1280_v0 = vmul.f32 %v3932_v55, %v226_v47  ;;  %3953 = vrcp.f32 %v749_v48  ;;  %v237_v50 = vld [vmem:[%s4956_s23 + $0x140] sm:$0xff]  ;;  %v760_v51 = vld [vmem:[%s4942_s19 + $0x198] sm:$0xff] }
  0x3b   : > { %v3936_v3 = vpop.eup %3935  ;;  %3296 = vst.msk [vmem:[%s4980_s26 + $0xc0] sm:$0xff] %vm3271_vm0, %v2783_v56  ;;  %v2785_v4 = vmul.f32 %v2273_v57, %v2273_v57  ;;  %v2275_v5 = vsub.f32 %v1278_v58, %v4965_v16  ;;  %v1282_v6 = vmul.f32 %v3934_v61, %v227_v53  ;;  %3955 = vrcp.f32 %v750_v54  ;;  %v238_v56 = vld [vmem:[%s4956_s23 + $0x148] sm:$0xff]  ;;  %v761_v57 = vld [vmem:[%s4942_s19 + $0x1a0] sm:$0xff] }
  0x3c   : > { %v3938_v9 = vpop.eup %3937  ;;  %3297 = vst.msk [vmem:[%s4980_s26 + $0xc8] sm:$0xff] %vm3271_vm0, %v2784_v62  ;;  %v2786_v10 = vmul.f32 %v2274_v63, %v2274_v63  ;;  %v2276_v11 = vsub.f32 %v1280_v0, %v4965_v16  ;;  %v1284_v12 = vmul.f32 %v3936_v3, %v228_v59  ;;  %3957 = vrcp.f32 %v751_v60  ;;  %v239_v62 = vld [vmem:[%s4956_s23 + $0x150] sm:$0xff]  ;;  %v762_v63 = vld [vmem:[%s4942_s19 + $0x1a8] sm:$0xff] }
  0x3d   : > { %v3940_v15 = vpop.eup %3939  ;;  %3298 = vst.msk [vmem:[%s4980_s26 + $0xd0] sm:$0xff] %vm3271_vm0, %v2785_v4  ;;  %v2787_v17 = vmul.f32 %v2275_v5, %v2275_v5  ;;  %v2277_v18 = vsub.f32 %v1282_v6, %v4965_v16  ;;  %v1286_v19 = vmul.f32 %v3938_v9, %v229_v1  ;;  %3959 = vrcp.f32 %v752_v2  ;;  %v240_v4 = vld [vmem:[%s4956_s23 + $0x158] sm:$0xff]  ;;  %v763_v5 = vld [vmem:[%s4942_s19 + $0x1b0] sm:$0xff] }
  0x3e   : > { %v3942_v22 = vpop.eup %3941  ;;  %3299 = vst.msk [vmem:[%s4980_s26 + $0xd8] sm:$0xff] %vm3271_vm0, %v2786_v10  ;;  %v2788_v23 = vmul.f32 %v2276_v11, %v2276_v11  ;;  %v2278_v24 = vsub.f32 %v1284_v12, %v4965_v16  ;;  %v1288_v25 = vmul.f32 %v3940_v15, %v230_v7  ;;  %3961 = vrcp.f32 %v753_v8  ;;  %v241_v10 = vld [vmem:[%s4956_s23 + $0x160] sm:$0xff]  ;;  %v764_v11 = vld [vmem:[%s4942_s19 + $0x1b8] sm:$0xff] }
  0x3f   : > { %v3944_v28 = vpop.eup %3943  ;;  %3300 = vst.msk [vmem:[%s4980_s26 + $0xe0] sm:$0xff] %vm3271_vm0, %v2787_v17  ;;  %v2789_v29 = vmul.f32 %v2277_v18, %v2277_v18  ;;  %v2279_v30 = vsub.f32 %v1286_v19, %v4965_v16  ;;  %v1290_v31 = vmul.f32 %v3942_v22, %v231_v13  ;;  %3963 = vrcp.f32 %v754_v14  ;;  %v242_v17 = vld [vmem:[%s4956_s23 + $0x168] sm:$0xff]  ;;  %v765_v18 = vld [vmem:[%s4942_s19 + $0x1c0] sm:$0xff] }
  0x40   : > { %v3946_v34 = vpop.eup %3945  ;;  %3301 = vst.msk [vmem:[%s4980_s26 + $0xe8] sm:$0xff] %vm3271_vm0, %v2788_v23  ;;  %v2790_v35 = vmul.f32 %v2278_v24, %v2278_v24  ;;  %v2280_v36 = vsub.f32 %v1288_v25, %v4965_v16  ;;  %v1292_v37 = vmul.f32 %v3944_v28, %v232_v20  ;;  %3965 = vrcp.f32 %v755_v21  ;;  %v243_v23 = vld [vmem:[%s4956_s23 + $0x170] sm:$0xff]  ;;  %v766_v24 = vld [vmem:[%s4942_s19 + $0x1c8] sm:$0xff] }
  0x41   : > { %v3948_v40 = vpop.eup %3947  ;;  %3302 = vst.msk [vmem:[%s4980_s26 + $0xf0] sm:$0xff] %vm3271_vm0, %v2789_v29  ;;  %v2791_v41 = vmul.f32 %v2279_v30, %v2279_v30  ;;  %v2281_v42 = vsub.f32 %v1290_v31, %v4965_v16  ;;  %v1294_v43 = vmul.f32 %v3946_v34, %v233_v26  ;;  %3967 = vrcp.f32 %v756_v27  ;;  %v244_v29 = vld [vmem:[%s4956_s23 + $0x178] sm:$0xff]  ;;  %v767_v30 = vld [vmem:[%s4942_s19 + $0x1d0] sm:$0xff] }
  0x42   : > { %v3950_v46 = vpop.eup %3949  ;;  %3303 = vst.msk [vmem:[%s4980_s26 + $0xf8] sm:$0xff] %vm3271_vm0, %v2790_v35  ;;  %v2792_v47 = vmul.f32 %v2280_v36, %v2280_v36  ;;  %v2282_v48 = vsub.f32 %v1292_v37, %v4965_v16  ;;  %v1296_v49 = vmul.f32 %v3948_v40, %v234_v32  ;;  %3969 = vrcp.f32 %v757_v33  ;;  %v245_v35 = vld [vmem:[%s4956_s23 + $0x180] sm:$0xff]  ;;  %v768_v36 = vld [vmem:[%s4942_s19 + $0x1d8] sm:$0xff] }
  0x43   : > { %v3952_v52 = vpop.eup %3951  ;;  %3304 = vst.msk [vmem:[%s4980_s26 + $0x100] sm:$0xff] %vm3271_vm0, %v2791_v41  ;;  %v2793_v53 = vmul.f32 %v2281_v42, %v2281_v42  ;;  %v2283_v54 = vsub.f32 %v1294_v43, %v4965_v16  ;;  %v1298_v55 = vmul.f32 %v3950_v46, %v235_v38  ;;  %3971 = vrcp.f32 %v758_v39  ;;  %v246_v41 = vld [vmem:[%s4956_s23 + $0x188] sm:$0xff]  ;;  %v769_v42 = vld [vmem:[%s4942_s19 + $0x1e0] sm:$0xff] }
  0x44   : > { %v3954_v58 = vpop.eup %3953  ;;  %3305 = vst.msk [vmem:[%s4980_s26 + $0x108] sm:$0xff] %vm3271_vm0, %v2792_v47  ;;  %v2794_v59 = vmul.f32 %v2282_v48, %v2282_v48  ;;  %v2284_v60 = vsub.f32 %v1296_v49, %v4965_v16  ;;  %v1300_v61 = vmul.f32 %v3952_v52, %v236_v44  ;;  %3973 = vrcp.f32 %v759_v45  ;;  %v247_v47 = vld [vmem:[%s4956_s23 + $0x190] sm:$0xff]  ;;  %v770_v48 = vld [vmem:[%s4942_s19 + $0x1e8] sm:$0xff] }
  0x45   : > { %v3956_v0 = vpop.eup %3955  ;;  %3306 = vst.msk [vmem:[%s4980_s26 + $0x110] sm:$0xff] %vm3271_vm0, %v2793_v53  ;;  %v2795_v1 = vmul.f32 %v2283_v54, %v2283_v54  ;;  %v2285_v2 = vsub.f32 %v1298_v55, %v4965_v16  ;;  %v1302_v3 = vmul.f32 %v3954_v58, %v237_v50  ;;  %3975 = vrcp.f32 %v760_v51  ;;  %v248_v53 = vld [vmem:[%s4956_s23 + $0x198] sm:$0xff]  ;;  %v771_v54 = vld [vmem:[%s4942_s19 + $0x1f0] sm:$0xff] }
  0x46   : > { %v3958_v6 = vpop.eup %3957  ;;  %3307 = vst.msk [vmem:[%s4980_s26 + $0x118] sm:$0xff] %vm3271_vm0, %v2794_v59  ;;  %v2796_v7 = vmul.f32 %v2284_v60, %v2284_v60  ;;  %v2286_v8 = vsub.f32 %v1300_v61, %v4965_v16  ;;  %v1304_v9 = vmul.f32 %v3956_v0, %v238_v56  ;;  %3977 = vrcp.f32 %v761_v57  ;;  %v249_v59 = vld [vmem:[%s4956_s23 + $0x1a0] sm:$0xff]  ;;  %v772_v60 = vld [vmem:[%s4942_s19 + $0x1f8] sm:$0xff] }
  0x47   : > { %v3960_v12 = vpop.eup %3959  ;;  %3308 = vst.msk [vmem:[%s4980_s26 + $0x120] sm:$0xff] %vm3271_vm0, %v2795_v1  ;;  %v2797_v13 = vmul.f32 %v2285_v2, %v2285_v2  ;;  %v2287_v14 = vsub.f32 %v1302_v3, %v4965_v16  ;;  %v1306_v15 = vmul.f32 %v3958_v6, %v239_v62  ;;  %3979 = vrcp.f32 %v762_v63  ;;  %v250_v1 = vld [vmem:[%s4956_s23 + $0x1a8] sm:$0xff]  ;;  %v773_v2 = vld [vmem:[%s4942_s19 + $0x200] sm:$0xff] }
  0x48   : > { %v3962_v19 = vpop.eup %3961  ;;  %3309 = vst.msk [vmem:[%s4980_s26 + $0x128] sm:$0xff] %vm3271_vm0, %v2796_v7  ;;  %v2798_v20 = vmul.f32 %v2286_v8, %v2286_v8  ;;  %v2288_v21 = vsub.f32 %v1304_v9, %v4965_v16  ;;  %v1308_v22 = vmul.f32 %v3960_v12, %v240_v4  ;;  %3981 = vrcp.f32 %v763_v5  ;;  %v251_v7 = vld [vmem:[%s4956_s23 + $0x1b0] sm:$0xff]  ;;  %v774_v8 = vld [vmem:[%s4942_s19 + $0x208] sm:$0xff] }
  0x49   : > { %v3964_v25 = vpop.eup %3963  ;;  %3310 = vst.msk [vmem:[%s4980_s26 + $0x130] sm:$0xff] %vm3271_vm0, %v2797_v13  ;;  %v2799_v26 = vmul.f32 %v2287_v14, %v2287_v14  ;;  %v2289_v27 = vsub.f32 %v1306_v15, %v4965_v16  ;;  %v1310_v28 = vmul.f32 %v3962_v19, %v241_v10  ;;  %3983 = vrcp.f32 %v764_v11  ;;  %v252_v13 = vld [vmem:[%s4956_s23 + $0x1b8] sm:$0xff]  ;;  %v775_v14 = vld [vmem:[%s4942_s19 + $0x210] sm:$0xff] }
  0x4a   : > { %v3966_v31 = vpop.eup %3965  ;;  %3311 = vst.msk [vmem:[%s4980_s26 + $0x138] sm:$0xff] %vm3271_vm0, %v2798_v20  ;;  %v2800_v32 = vmul.f32 %v2288_v21, %v2288_v21  ;;  %v2290_v33 = vsub.f32 %v1308_v22, %v4965_v16  ;;  %v1312_v34 = vmul.f32 %v3964_v25, %v242_v17  ;;  %3985 = vrcp.f32 %v765_v18  ;;  %v253_v20 = vld [vmem:[%s4956_s23 + $0x1c0] sm:$0xff]  ;;  %v776_v21 = vld [vmem:[%s4942_s19 + $0x218] sm:$0xff] }
  0x4b   : > { %v3968_v37 = vpop.eup %3967  ;;  %3312 = vst.msk [vmem:[%s4980_s26 + $0x140] sm:$0xff] %vm3271_vm0, %v2799_v26  ;;  %v2801_v38 = vmul.f32 %v2289_v27, %v2289_v27  ;;  %v2291_v39 = vsub.f32 %v1310_v28, %v4965_v16  ;;  %v1314_v40 = vmul.f32 %v3966_v31, %v243_v23  ;;  %3987 = vrcp.f32 %v766_v24  ;;  %v254_v26 = vld [vmem:[%s4956_s23 + $0x1c8] sm:$0xff]  ;;  %v777_v27 = vld [vmem:[%s4942_s19 + $0x220] sm:$0xff] }
  0x4c   : > { %v3970_v43 = vpop.eup %3969  ;;  %3313 = vst.msk [vmem:[%s4980_s26 + $0x148] sm:$0xff] %vm3271_vm0, %v2800_v32  ;;  %v2802_v44 = vmul.f32 %v2290_v33, %v2290_v33  ;;  %v2292_v45 = vsub.f32 %v1312_v34, %v4965_v16  ;;  %v1316_v46 = vmul.f32 %v3968_v37, %v244_v29  ;;  %3989 = vrcp.f32 %v767_v30  ;;  %v255_v32 = vld [vmem:[%s4956_s23 + $0x1d0] sm:$0xff]  ;;  %v778_v33 = vld [vmem:[%s4942_s19 + $0x228] sm:$0xff] }
  0x4d   : > { %v3972_v49 = vpop.eup %3971  ;;  %3314 = vst.msk [vmem:[%s4980_s26 + $0x150] sm:$0xff] %vm3271_vm0, %v2801_v38  ;;  %v2803_v50 = vmul.f32 %v2291_v39, %v2291_v39  ;;  %v2293_v51 = vsub.f32 %v1314_v40, %v4965_v16  ;;  %v1318_v52 = vmul.f32 %v3970_v43, %v245_v35  ;;  %3991 = vrcp.f32 %v768_v36  ;;  %v256_v38 = vld [vmem:[%s4956_s23 + $0x1d8] sm:$0xff]  ;;  %v779_v39 = vld [vmem:[%s4942_s19 + $0x230] sm:$0xff] }
  0x4e   : > { %v3974_v55 = vpop.eup %3973  ;;  %3315 = vst.msk [vmem:[%s4980_s26 + $0x158] sm:$0xff] %vm3271_vm0, %v2802_v44  ;;  %v2804_v56 = vmul.f32 %v2292_v45, %v2292_v45  ;;  %v2294_v57 = vsub.f32 %v1316_v46, %v4965_v16  ;;  %v1320_v58 = vmul.f32 %v3972_v49, %v246_v41  ;;  %3993 = vrcp.f32 %v769_v42  ;;  %v257_v44 = vld [vmem:[%s4956_s23 + $0x1e0] sm:$0xff]  ;;  %v780_v45 = vld [vmem:[%s4942_s19 + $0x238] sm:$0xff] }
  0x4f   : > { %v3976_v61 = vpop.eup %3975  ;;  %3316 = vst.msk [vmem:[%s4980_s26 + $0x160] sm:$0xff] %vm3271_vm0, %v2803_v50  ;;  %v2805_v62 = vmul.f32 %v2293_v51, %v2293_v51  ;;  %v2295_v63 = vsub.f32 %v1318_v52, %v4965_v16  ;;  %v1322_v0 = vmul.f32 %v3974_v55, %v247_v47  ;;  %3995 = vrcp.f32 %v770_v48  ;;  %v258_v50 = vld [vmem:[%s4956_s23 + $0x1e8] sm:$0xff]  ;;  %v781_v51 = vld [vmem:[%s4942_s19 + $0x240] sm:$0xff] }
  0x50   : > { %v3978_v3 = vpop.eup %3977  ;;  %3317 = vst.msk [vmem:[%s4980_s26 + $0x168] sm:$0xff] %vm3271_vm0, %v2804_v56  ;;  %v2806_v4 = vmul.f32 %v2294_v57, %v2294_v57  ;;  %v2296_v5 = vsub.f32 %v1320_v58, %v4965_v16  ;;  %v1324_v6 = vmul.f32 %v3976_v61, %v248_v53  ;;  %3997 = vrcp.f32 %v771_v54  ;;  %v259_v56 = vld [vmem:[%s4956_s23 + $0x1f0] sm:$0xff]  ;;  %v782_v57 = vld [vmem:[%s4942_s19 + $0x248] sm:$0xff] }
  0x51   : > { %v3980_v9 = vpop.eup %3979  ;;  %3318 = vst.msk [vmem:[%s4980_s26 + $0x170] sm:$0xff] %vm3271_vm0, %v2805_v62  ;;  %v2807_v10 = vmul.f32 %v2295_v63, %v2295_v63  ;;  %v2297_v11 = vsub.f32 %v1322_v0, %v4965_v16  ;;  %v1326_v12 = vmul.f32 %v3978_v3, %v249_v59  ;;  %3999 = vrcp.f32 %v772_v60  ;;  %v260_v62 = vld [vmem:[%s4956_s23 + $0x1f8] sm:$0xff]  ;;  %v783_v63 = vld [vmem:[%s4942_s19 + $0x250] sm:$0xff] }
  0x52   : > { %v3982_v15 = vpop.eup %3981  ;;  %3319 = vst.msk [vmem:[%s4980_s26 + $0x178] sm:$0xff] %vm3271_vm0, %v2806_v4  ;;  %v2808_v17 = vmul.f32 %v2296_v5, %v2296_v5  ;;  %v2298_v18 = vsub.f32 %v1324_v6, %v4965_v16  ;;  %v1328_v19 = vmul.f32 %v3980_v9, %v250_v1  ;;  %4001 = vrcp.f32 %v773_v2  ;;  %v261_v4 = vld [vmem:[%s4956_s23 + $0x200] sm:$0xff]  ;;  %v784_v5 = vld [vmem:[%s4942_s19 + $0x258] sm:$0xff] }
  0x53   : > { %v3984_v22 = vpop.eup %3983  ;;  %3320 = vst.msk [vmem:[%s4980_s26 + $0x180] sm:$0xff] %vm3271_vm0, %v2807_v10  ;;  %v2809_v23 = vmul.f32 %v2297_v11, %v2297_v11  ;;  %v2299_v24 = vsub.f32 %v1326_v12, %v4965_v16  ;;  %v1330_v25 = vmul.f32 %v3982_v15, %v251_v7  ;;  %4003 = vrcp.f32 %v774_v8  ;;  %v262_v10 = vld [vmem:[%s4956_s23 + $0x208] sm:$0xff]  ;;  %v785_v11 = vld [vmem:[%s4942_s19 + $0x260] sm:$0xff] }
  0x54   : > { %v3986_v28 = vpop.eup %3985  ;;  %3321 = vst.msk [vmem:[%s4980_s26 + $0x188] sm:$0xff] %vm3271_vm0, %v2808_v17  ;;  %v2810_v29 = vmul.f32 %v2298_v18, %v2298_v18  ;;  %v2300_v30 = vsub.f32 %v1328_v19, %v4965_v16  ;;  %v1332_v31 = vmul.f32 %v3984_v22, %v252_v13  ;;  %4005 = vrcp.f32 %v775_v14  ;;  %v263_v17 = vld [vmem:[%s4956_s23 + $0x210] sm:$0xff]  ;;  %v786_v18 = vld [vmem:[%s4942_s19 + $0x268] sm:$0xff] }
  0x55   : > { %v3988_v34 = vpop.eup %3987  ;;  %3322 = vst.msk [vmem:[%s4980_s26 + $0x190] sm:$0xff] %vm3271_vm0, %v2809_v23  ;;  %v2811_v35 = vmul.f32 %v2299_v24, %v2299_v24  ;;  %v2301_v36 = vsub.f32 %v1330_v25, %v4965_v16  ;;  %v1334_v37 = vmul.f32 %v3986_v28, %v253_v20  ;;  %4007 = vrcp.f32 %v776_v21  ;;  %v264_v23 = vld [vmem:[%s4956_s23 + $0x218] sm:$0xff]  ;;  %v787_v24 = vld [vmem:[%s4942_s19 + $0x270] sm:$0xff] }
  0x56   : > { %v3990_v40 = vpop.eup %3989  ;;  %3323 = vst.msk [vmem:[%s4980_s26 + $0x198] sm:$0xff] %vm3271_vm0, %v2810_v29  ;;  %v2812_v41 = vmul.f32 %v2300_v30, %v2300_v30  ;;  %v2302_v42 = vsub.f32 %v1332_v31, %v4965_v16  ;;  %v1336_v43 = vmul.f32 %v3988_v34, %v254_v26  ;;  %4009 = vrcp.f32 %v777_v27  ;;  %v265_v29 = vld [vmem:[%s4956_s23 + $0x220] sm:$0xff]  ;;  %v788_v30 = vld [vmem:[%s4942_s19 + $0x278] sm:$0xff] }
  0x57   : > { %v3992_v46 = vpop.eup %3991  ;;  %3324 = vst.msk [vmem:[%s4980_s26 + $0x1a0] sm:$0xff] %vm3271_vm0, %v2811_v35  ;;  %v2813_v47 = vmul.f32 %v2301_v36, %v2301_v36  ;;  %v2303_v48 = vsub.f32 %v1334_v37, %v4965_v16  ;;  %v1338_v49 = vmul.f32 %v3990_v40, %v255_v32  ;;  %4011 = vrcp.f32 %v778_v33  ;;  %v266_v35 = vld [vmem:[%s4956_s23 + $0x228] sm:$0xff]  ;;  %v789_v36 = vld [vmem:[%s4942_s19 + $0x280] sm:$0xff] }
  0x58   : > { %v3994_v52 = vpop.eup %3993  ;;  %3325 = vst.msk [vmem:[%s4980_s26 + $0x1a8] sm:$0xff] %vm3271_vm0, %v2812_v41  ;;  %v2814_v53 = vmul.f32 %v2302_v42, %v2302_v42  ;;  %v2304_v54 = vsub.f32 %v1336_v43, %v4965_v16  ;;  %v1340_v55 = vmul.f32 %v3992_v46, %v256_v38  ;;  %4013 = vrcp.f32 %v779_v39  ;;  %v267_v41 = vld [vmem:[%s4956_s23 + $0x230] sm:$0xff]  ;;  %v790_v42 = vld [vmem:[%s4942_s19 + $0x288] sm:$0xff] }
  0x59   : > { %v3996_v58 = vpop.eup %3995  ;;  %3326 = vst.msk [vmem:[%s4980_s26 + $0x1b0] sm:$0xff] %vm3271_vm0, %v2813_v47  ;;  %v2815_v59 = vmul.f32 %v2303_v48, %v2303_v48  ;;  %v2305_v60 = vsub.f32 %v1338_v49, %v4965_v16  ;;  %v1342_v61 = vmul.f32 %v3994_v52, %v257_v44  ;;  %4015 = vrcp.f32 %v780_v45  ;;  %v268_v47 = vld [vmem:[%s4956_s23 + $0x238] sm:$0xff]  ;;  %v791_v48 = vld [vmem:[%s4942_s19 + $0x290] sm:$0xff] }
  0x5a   : > { %v3998_v0 = vpop.eup %3997  ;;  %3327 = vst.msk [vmem:[%s4980_s26 + $0x1b8] sm:$0xff] %vm3271_vm0, %v2814_v53  ;;  %v2816_v1 = vmul.f32 %v2304_v54, %v2304_v54  ;;  %v2306_v2 = vsub.f32 %v1340_v55, %v4965_v16  ;;  %v1344_v3 = vmul.f32 %v3996_v58, %v258_v50  ;;  %4017 = vrcp.f32 %v781_v51  ;;  %v269_v53 = vld [vmem:[%s4956_s23 + $0x240] sm:$0xff]  ;;  %v792_v54 = vld [vmem:[%s4942_s19 + $0x298] sm:$0xff] }
  0x5b   : > { %v4000_v6 = vpop.eup %3999  ;;  %3328 = vst.msk [vmem:[%s4980_s26 + $0x1c0] sm:$0xff] %vm3271_vm0, %v2815_v59  ;;  %v2817_v7 = vmul.f32 %v2305_v60, %v2305_v60  ;;  %v2307_v8 = vsub.f32 %v1342_v61, %v4965_v16  ;;  %v1346_v9 = vmul.f32 %v3998_v0, %v259_v56  ;;  %4019 = vrcp.f32 %v782_v57  ;;  %v270_v59 = vld [vmem:[%s4956_s23 + $0x248] sm:$0xff]  ;;  %v793_v60 = vld [vmem:[%s4942_s19 + $0x2a0] sm:$0xff] }
  0x5c   : > { %v4002_v12 = vpop.eup %4001  ;;  %3329 = vst.msk [vmem:[%s4980_s26 + $0x1c8] sm:$0xff] %vm3271_vm0, %v2816_v1  ;;  %v2818_v13 = vmul.f32 %v2306_v2, %v2306_v2  ;;  %v2308_v14 = vsub.f32 %v1344_v3, %v4965_v16  ;;  %v1348_v15 = vmul.f32 %v4000_v6, %v260_v62  ;;  %4021 = vrcp.f32 %v783_v63  ;;  %v271_v1 = vld [vmem:[%s4956_s23 + $0x250] sm:$0xff]  ;;  %v794_v2 = vld [vmem:[%s4942_s19 + $0x2a8] sm:$0xff] }
  0x5d   : > { %v4004_v19 = vpop.eup %4003  ;;  %3330 = vst.msk [vmem:[%s4980_s26 + $0x1d0] sm:$0xff] %vm3271_vm0, %v2817_v7  ;;  %v2819_v20 = vmul.f32 %v2307_v8, %v2307_v8  ;;  %v2309_v21 = vsub.f32 %v1346_v9, %v4965_v16  ;;  %v1350_v22 = vmul.f32 %v4002_v12, %v261_v4  ;;  %4023 = vrcp.f32 %v784_v5  ;;  %v272_v7 = vld [vmem:[%s4956_s23 + $0x258] sm:$0xff]  ;;  %v795_v8 = vld [vmem:[%s4942_s19 + $0x2b0] sm:$0xff] }
  0x5e   : > { %v4006_v25 = vpop.eup %4005  ;;  %3331 = vst.msk [vmem:[%s4980_s26 + $0x1d8] sm:$0xff] %vm3271_vm0, %v2818_v13  ;;  %v2820_v26 = vmul.f32 %v2308_v14, %v2308_v14  ;;  %v2310_v27 = vsub.f32 %v1348_v15, %v4965_v16  ;;  %v1352_v28 = vmul.f32 %v4004_v19, %v262_v10  ;;  %4025 = vrcp.f32 %v785_v11  ;;  %v273_v13 = vld [vmem:[%s4956_s23 + $0x260] sm:$0xff]  ;;  %v796_v14 = vld [vmem:[%s4942_s19 + $0x2b8] sm:$0xff] }
  0x5f   : > { %v4008_v31 = vpop.eup %4007  ;;  %3332 = vst.msk [vmem:[%s4980_s26 + $0x1e0] sm:$0xff] %vm3271_vm0, %v2819_v20  ;;  %v2821_v32 = vmul.f32 %v2309_v21, %v2309_v21  ;;  %v2311_v33 = vsub.f32 %v1350_v22, %v4965_v16  ;;  %v1354_v34 = vmul.f32 %v4006_v25, %v263_v17  ;;  %4027 = vrcp.f32 %v786_v18  ;;  %v274_v20 = vld [vmem:[%s4956_s23 + $0x268] sm:$0xff]  ;;  %v797_v21 = vld [vmem:[%s4942_s19 + $0x2c0] sm:$0xff] }
  0x60   : > { %v4010_v37 = vpop.eup %4009  ;;  %3333 = vst.msk [vmem:[%s4980_s26 + $0x1e8] sm:$0xff] %vm3271_vm0, %v2820_v26  ;;  %v2822_v38 = vmul.f32 %v2310_v27, %v2310_v27  ;;  %v2312_v39 = vsub.f32 %v1352_v28, %v4965_v16  ;;  %v1356_v40 = vmul.f32 %v4008_v31, %v264_v23  ;;  %4029 = vrcp.f32 %v787_v24  ;;  %v275_v26 = vld [vmem:[%s4956_s23 + $0x270] sm:$0xff]  ;;  %v798_v27 = vld [vmem:[%s4942_s19 + $0x2c8] sm:$0xff] }
  0x61   : > { %v4012_v43 = vpop.eup %4011  ;;  %3334 = vst.msk [vmem:[%s4980_s26 + $0x1f0] sm:$0xff] %vm3271_vm0, %v2821_v32  ;;  %v2823_v44 = vmul.f32 %v2311_v33, %v2311_v33  ;;  %v2313_v45 = vsub.f32 %v1354_v34, %v4965_v16  ;;  %v1358_v46 = vmul.f32 %v4010_v37, %v265_v29  ;;  %4031 = vrcp.f32 %v788_v30  ;;  %v276_v32 = vld [vmem:[%s4956_s23 + $0x278] sm:$0xff]  ;;  %v799_v33 = vld [vmem:[%s4942_s19 + $0x2d0] sm:$0xff] }
  0x62   : > { %v4014_v49 = vpop.eup %4013  ;;  %3335 = vst.msk [vmem:[%s4980_s26 + $0x1f8] sm:$0xff] %vm3271_vm0, %v2822_v38  ;;  %v2824_v50 = vmul.f32 %v2312_v39, %v2312_v39  ;;  %v2314_v51 = vsub.f32 %v1356_v40, %v4965_v16  ;;  %v1360_v52 = vmul.f32 %v4012_v43, %v266_v35  ;;  %4033 = vrcp.f32 %v789_v36  ;;  %v277_v38 = vld [vmem:[%s4956_s23 + $0x280] sm:$0xff]  ;;  %v800_v39 = vld [vmem:[%s4942_s19 + $0x2d8] sm:$0xff] }
  0x63   : > { %v4016_v55 = vpop.eup %4015  ;;  %3336 = vst.msk [vmem:[%s4980_s26 + $0x200] sm:$0xff] %vm3271_vm0, %v2823_v44  ;;  %v2825_v56 = vmul.f32 %v2313_v45, %v2313_v45  ;;  %v2315_v57 = vsub.f32 %v1358_v46, %v4965_v16  ;;  %v1362_v58 = vmul.f32 %v4014_v49, %v267_v41  ;;  %4035 = vrcp.f32 %v790_v42  ;;  %v278_v44 = vld [vmem:[%s4956_s23 + $0x288] sm:$0xff]  ;;  %v801_v45 = vld [vmem:[%s4942_s19 + $0x2e0] sm:$0xff] }
  0x64   : > { %v4018_v61 = vpop.eup %4017  ;;  %3337 = vst.msk [vmem:[%s4980_s26 + $0x208] sm:$0xff] %vm3271_vm0, %v2824_v50  ;;  %v2826_v62 = vmul.f32 %v2314_v51, %v2314_v51  ;;  %v2316_v63 = vsub.f32 %v1360_v52, %v4965_v16  ;;  %v1364_v0 = vmul.f32 %v4016_v55, %v268_v47  ;;  %4037 = vrcp.f32 %v791_v48  ;;  %v279_v50 = vld [vmem:[%s4956_s23 + $0x290] sm:$0xff]  ;;  %v802_v51 = vld [vmem:[%s4942_s19 + $0x2e8] sm:$0xff] }
  0x65   : > { %v4020_v3 = vpop.eup %4019  ;;  %3338 = vst.msk [vmem:[%s4980_s26 + $0x210] sm:$0xff] %vm3271_vm0, %v2825_v56  ;;  %v2827_v4 = vmul.f32 %v2315_v57, %v2315_v57  ;;  %v2317_v5 = vsub.f32 %v1362_v58, %v4965_v16  ;;  %v1366_v6 = vmul.f32 %v4018_v61, %v269_v53  ;;  %4039 = vrcp.f32 %v792_v54  ;;  %v280_v56 = vld [vmem:[%s4956_s23 + $0x298] sm:$0xff]  ;;  %v803_v57 = vld [vmem:[%s4942_s19 + $0x2f0] sm:$0xff] }
  0x66   : > { %v4022_v9 = vpop.eup %4021  ;;  %3339 = vst.msk [vmem:[%s4980_s26 + $0x218] sm:$0xff] %vm3271_vm0, %v2826_v62  ;;  %v2828_v10 = vmul.f32 %v2316_v63, %v2316_v63  ;;  %v2318_v11 = vsub.f32 %v1364_v0, %v4965_v16  ;;  %v1368_v12 = vmul.f32 %v4020_v3, %v270_v59  ;;  %4041 = vrcp.f32 %v793_v60  ;;  %v281_v62 = vld [vmem:[%s4956_s23 + $0x2a0] sm:$0xff]  ;;  %v804_v63 = vld [vmem:[%s4942_s19 + $0x2f8] sm:$0xff] }
  0x67   : > { %v4024_v15 = vpop.eup %4023  ;;  %3340 = vst.msk [vmem:[%s4980_s26 + $0x220] sm:$0xff] %vm3271_vm0, %v2827_v4  ;;  %v2829_v17 = vmul.f32 %v2317_v5, %v2317_v5  ;;  %v2319_v18 = vsub.f32 %v1366_v6, %v4965_v16  ;;  %v1370_v19 = vmul.f32 %v4022_v9, %v271_v1  ;;  %4043 = vrcp.f32 %v794_v2  ;;  %v282_v4 = vld [vmem:[%s4956_s23 + $0x2a8] sm:$0xff]  ;;  %v805_v5 = vld [vmem:[%s4942_s19 + $0x300] sm:$0xff] }
  0x68   : > { %v4026_v22 = vpop.eup %4025  ;;  %3341 = vst.msk [vmem:[%s4980_s26 + $0x228] sm:$0xff] %vm3271_vm0, %v2828_v10  ;;  %v2830_v23 = vmul.f32 %v2318_v11, %v2318_v11  ;;  %v2320_v24 = vsub.f32 %v1368_v12, %v4965_v16  ;;  %v1372_v25 = vmul.f32 %v4024_v15, %v272_v7  ;;  %4045 = vrcp.f32 %v795_v8  ;;  %v283_v10 = vld [vmem:[%s4956_s23 + $0x2b0] sm:$0xff]  ;;  %v806_v11 = vld [vmem:[%s4942_s19 + $0x308] sm:$0xff] }
  0x69   : > { %v4028_v28 = vpop.eup %4027  ;;  %3342 = vst.msk [vmem:[%s4980_s26 + $0x230] sm:$0xff] %vm3271_vm0, %v2829_v17  ;;  %v2831_v29 = vmul.f32 %v2319_v18, %v2319_v18  ;;  %v2321_v30 = vsub.f32 %v1370_v19, %v4965_v16  ;;  %v1374_v31 = vmul.f32 %v4026_v22, %v273_v13  ;;  %4047 = vrcp.f32 %v796_v14  ;;  %v284_v17 = vld [vmem:[%s4956_s23 + $0x2b8] sm:$0xff]  ;;  %v807_v18 = vld [vmem:[%s4942_s19 + $0x310] sm:$0xff] }
  0x6a   : > { %v4030_v34 = vpop.eup %4029  ;;  %3343 = vst.msk [vmem:[%s4980_s26 + $0x238] sm:$0xff] %vm3271_vm0, %v2830_v23  ;;  %v2832_v35 = vmul.f32 %v2320_v24, %v2320_v24  ;;  %v2322_v36 = vsub.f32 %v1372_v25, %v4965_v16  ;;  %v1376_v37 = vmul.f32 %v4028_v28, %v274_v20  ;;  %4049 = vrcp.f32 %v797_v21  ;;  %v285_v23 = vld [vmem:[%s4956_s23 + $0x2c0] sm:$0xff]  ;;  %v808_v24 = vld [vmem:[%s4942_s19 + $0x318] sm:$0xff] }
  0x6b   : > { %v4032_v40 = vpop.eup %4031  ;;  %3344 = vst.msk [vmem:[%s4980_s26 + $0x240] sm:$0xff] %vm3271_vm0, %v2831_v29  ;;  %v2833_v41 = vmul.f32 %v2321_v30, %v2321_v30  ;;  %v2323_v42 = vsub.f32 %v1374_v31, %v4965_v16  ;;  %v1378_v43 = vmul.f32 %v4030_v34, %v275_v26  ;;  %4051 = vrcp.f32 %v798_v27  ;;  %v286_v29 = vld [vmem:[%s4956_s23 + $0x2c8] sm:$0xff]  ;;  %v809_v30 = vld [vmem:[%s4942_s19 + $0x320] sm:$0xff] }
  0x6c   : > { %v4034_v46 = vpop.eup %4033  ;;  %3345 = vst.msk [vmem:[%s4980_s26 + $0x248] sm:$0xff] %vm3271_vm0, %v2832_v35  ;;  %v2834_v47 = vmul.f32 %v2322_v36, %v2322_v36  ;;  %v2324_v48 = vsub.f32 %v1376_v37, %v4965_v16  ;;  %v1380_v49 = vmul.f32 %v4032_v40, %v276_v32  ;;  %4053 = vrcp.f32 %v799_v33  ;;  %v287_v35 = vld [vmem:[%s4956_s23 + $0x2d0] sm:$0xff]  ;;  %v810_v36 = vld [vmem:[%s4942_s19 + $0x328] sm:$0xff] }
  0x6d   : > { %v4036_v52 = vpop.eup %4035  ;;  %3346 = vst.msk [vmem:[%s4980_s26 + $0x250] sm:$0xff] %vm3271_vm0, %v2833_v41  ;;  %v2835_v53 = vmul.f32 %v2323_v42, %v2323_v42  ;;  %v2325_v54 = vsub.f32 %v1378_v43, %v4965_v16  ;;  %v1382_v55 = vmul.f32 %v4034_v46, %v277_v38  ;;  %4055 = vrcp.f32 %v800_v39  ;;  %v288_v41 = vld [vmem:[%s4956_s23 + $0x2d8] sm:$0xff]  ;;  %v811_v42 = vld [vmem:[%s4942_s19 + $0x330] sm:$0xff] }
  0x6e   : > { %v4038_v58 = vpop.eup %4037  ;;  %3347 = vst.msk [vmem:[%s4980_s26 + $0x258] sm:$0xff] %vm3271_vm0, %v2834_v47  ;;  %v2836_v59 = vmul.f32 %v2324_v48, %v2324_v48  ;;  %v2326_v60 = vsub.f32 %v1380_v49, %v4965_v16  ;;  %v1384_v61 = vmul.f32 %v4036_v52, %v278_v44  ;;  %4057 = vrcp.f32 %v801_v45  ;;  %v289_v47 = vld [vmem:[%s4956_s23 + $0x2e0] sm:$0xff]  ;;  %v812_v48 = vld [vmem:[%s4942_s19 + $0x338] sm:$0xff] }
  0x6f   : > { %v4040_v0 = vpop.eup %4039  ;;  %3348 = vst.msk [vmem:[%s4980_s26 + $0x260] sm:$0xff] %vm3271_vm0, %v2835_v53  ;;  %v2837_v1 = vmul.f32 %v2325_v54, %v2325_v54  ;;  %v2327_v2 = vsub.f32 %v1382_v55, %v4965_v16  ;;  %v1386_v3 = vmul.f32 %v4038_v58, %v279_v50  ;;  %4059 = vrcp.f32 %v802_v51  ;;  %v290_v53 = vld [vmem:[%s4956_s23 + $0x2e8] sm:$0xff]  ;;  %v813_v54 = vld [vmem:[%s4942_s19 + $0x340] sm:$0xff] }
  0x70   : > { %v4042_v6 = vpop.eup %4041  ;;  %3349 = vst.msk [vmem:[%s4980_s26 + $0x268] sm:$0xff] %vm3271_vm0, %v2836_v59  ;;  %v2838_v7 = vmul.f32 %v2326_v60, %v2326_v60  ;;  %v2328_v8 = vsub.f32 %v1384_v61, %v4965_v16  ;;  %v1388_v9 = vmul.f32 %v4040_v0, %v280_v56  ;;  %4061 = vrcp.f32 %v803_v57  ;;  %v291_v59 = vld [vmem:[%s4956_s23 + $0x2f0] sm:$0xff]  ;;  %v814_v60 = vld [vmem:[%s4942_s19 + $0x348] sm:$0xff] }
  0x71   : > { %v4044_v12 = vpop.eup %4043  ;;  %3350 = vst.msk [vmem:[%s4980_s26 + $0x270] sm:$0xff] %vm3271_vm0, %v2837_v1  ;;  %v2839_v13 = vmul.f32 %v2327_v2, %v2327_v2  ;;  %v2329_v14 = vsub.f32 %v1386_v3, %v4965_v16  ;;  %v1390_v15 = vmul.f32 %v4042_v6, %v281_v62  ;;  %4063 = vrcp.f32 %v804_v63  ;;  %v292_v1 = vld [vmem:[%s4956_s23 + $0x2f8] sm:$0xff]  ;;  %v815_v2 = vld [vmem:[%s4942_s19 + $0x350] sm:$0xff] }
  0x72   : > { %v4046_v19 = vpop.eup %4045  ;;  %3351 = vst.msk [vmem:[%s4980_s26 + $0x278] sm:$0xff] %vm3271_vm0, %v2838_v7  ;;  %v2840_v20 = vmul.f32 %v2328_v8, %v2328_v8  ;;  %v2330_v21 = vsub.f32 %v1388_v9, %v4965_v16  ;;  %v1392_v22 = vmul.f32 %v4044_v12, %v282_v4  ;;  %4065 = vrcp.f32 %v805_v5  ;;  %v293_v7 = vld [vmem:[%s4956_s23 + $0x300] sm:$0xff]  ;;  %v816_v8 = vld [vmem:[%s4942_s19 + $0x358] sm:$0xff] }
  0x73   : > { %v4048_v25 = vpop.eup %4047  ;;  %3352 = vst.msk [vmem:[%s4980_s26 + $0x280] sm:$0xff] %vm3271_vm0, %v2839_v13  ;;  %v2841_v26 = vmul.f32 %v2329_v14, %v2329_v14  ;;  %v2331_v27 = vsub.f32 %v1390_v15, %v4965_v16  ;;  %v1394_v28 = vmul.f32 %v4046_v19, %v283_v10  ;;  %4067 = vrcp.f32 %v806_v11  ;;  %v294_v13 = vld [vmem:[%s4956_s23 + $0x308] sm:$0xff]  ;;  %v817_v14 = vld [vmem:[%s4942_s19 + $0x360] sm:$0xff] }
  0x74   : > { %v4050_v31 = vpop.eup %4049  ;;  %3353 = vst.msk [vmem:[%s4980_s26 + $0x288] sm:$0xff] %vm3271_vm0, %v2840_v20  ;;  %v2842_v32 = vmul.f32 %v2330_v21, %v2330_v21  ;;  %v2332_v33 = vsub.f32 %v1392_v22, %v4965_v16  ;;  %v1396_v34 = vmul.f32 %v4048_v25, %v284_v17  ;;  %4069 = vrcp.f32 %v807_v18  ;;  %v295_v20 = vld [vmem:[%s4956_s23 + $0x310] sm:$0xff]  ;;  %v818_v21 = vld [vmem:[%s4942_s19 + $0x368] sm:$0xff] }
  0x75   : > { %v4052_v37 = vpop.eup %4051  ;;  %3354 = vst.msk [vmem:[%s4980_s26 + $0x290] sm:$0xff] %vm3271_vm0, %v2841_v26  ;;  %v2843_v38 = vmul.f32 %v2331_v27, %v2331_v27  ;;  %v2333_v39 = vsub.f32 %v1394_v28, %v4965_v16  ;;  %v1398_v40 = vmul.f32 %v4050_v31, %v285_v23  ;;  %4071 = vrcp.f32 %v808_v24  ;;  %v296_v26 = vld [vmem:[%s4956_s23 + $0x318] sm:$0xff]  ;;  %v819_v27 = vld [vmem:[%s4942_s19 + $0x370] sm:$0xff] }
  0x76   : > { %v4054_v43 = vpop.eup %4053  ;;  %3355 = vst.msk [vmem:[%s4980_s26 + $0x298] sm:$0xff] %vm3271_vm0, %v2842_v32  ;;  %v2844_v44 = vmul.f32 %v2332_v33, %v2332_v33  ;;  %v2334_v45 = vsub.f32 %v1396_v34, %v4965_v16  ;;  %v1400_v46 = vmul.f32 %v4052_v37, %v286_v29  ;;  %4073 = vrcp.f32 %v809_v30  ;;  %v297_v32 = vld [vmem:[%s4956_s23 + $0x320] sm:$0xff]  ;;  %v820_v33 = vld [vmem:[%s4942_s19 + $0x378] sm:$0xff] }
  0x77   : > { %v4056_v49 = vpop.eup %4055  ;;  %3356 = vst.msk [vmem:[%s4980_s26 + $0x2a0] sm:$0xff] %vm3271_vm0, %v2843_v38  ;;  %v2845_v50 = vmul.f32 %v2333_v39, %v2333_v39  ;;  %v2335_v51 = vsub.f32 %v1398_v40, %v4965_v16  ;;  %v1402_v52 = vmul.f32 %v4054_v43, %v287_v35  ;;  %4075 = vrcp.f32 %v810_v36  ;;  %v298_v38 = vld [vmem:[%s4956_s23 + $0x328] sm:$0xff]  ;;  %v821_v39 = vld [vmem:[%s4942_s19 + $0x380] sm:$0xff] }
  0x78   : > { %v4058_v55 = vpop.eup %4057  ;;  %3357 = vst.msk [vmem:[%s4980_s26 + $0x2a8] sm:$0xff] %vm3271_vm0, %v2844_v44  ;;  %v2846_v56 = vmul.f32 %v2334_v45, %v2334_v45  ;;  %v2336_v57 = vsub.f32 %v1400_v46, %v4965_v16  ;;  %v1404_v58 = vmul.f32 %v4056_v49, %v288_v41  ;;  %4077 = vrcp.f32 %v811_v42  ;;  %v299_v44 = vld [vmem:[%s4956_s23 + $0x330] sm:$0xff]  ;;  %v822_v45 = vld [vmem:[%s4942_s19 + $0x388] sm:$0xff] }
  0x79   : > { %v4060_v61 = vpop.eup %4059  ;;  %3358 = vst.msk [vmem:[%s4980_s26 + $0x2b0] sm:$0xff] %vm3271_vm0, %v2845_v50  ;;  %v2847_v62 = vmul.f32 %v2335_v51, %v2335_v51  ;;  %v2337_v63 = vsub.f32 %v1402_v52, %v4965_v16  ;;  %v1406_v0 = vmul.f32 %v4058_v55, %v289_v47  ;;  %4079 = vrcp.f32 %v812_v48  ;;  %v300_v50 = vld [vmem:[%s4956_s23 + $0x338] sm:$0xff]  ;;  %v823_v51 = vld [vmem:[%s4942_s19 + $0x390] sm:$0xff] }
  0x7a   : > { %v4062_v3 = vpop.eup %4061  ;;  %3359 = vst.msk [vmem:[%s4980_s26 + $0x2b8] sm:$0xff] %vm3271_vm0, %v2846_v56  ;;  %v2848_v4 = vmul.f32 %v2336_v57, %v2336_v57  ;;  %v2338_v5 = vsub.f32 %v1404_v58, %v4965_v16  ;;  %v1408_v6 = vmul.f32 %v4060_v61, %v290_v53  ;;  %4081 = vrcp.f32 %v813_v54  ;;  %v301_v56 = vld [vmem:[%s4956_s23 + $0x340] sm:$0xff]  ;;  %v824_v57 = vld [vmem:[%s4942_s19 + $0x398] sm:$0xff] }
  0x7b   : > { %v4064_v9 = vpop.eup %4063  ;;  %3360 = vst.msk [vmem:[%s4980_s26 + $0x2c0] sm:$0xff] %vm3271_vm0, %v2847_v62  ;;  %v2849_v10 = vmul.f32 %v2337_v63, %v2337_v63  ;;  %v2339_v11 = vsub.f32 %v1406_v0, %v4965_v16  ;;  %v1410_v12 = vmul.f32 %v4062_v3, %v291_v59  ;;  %4083 = vrcp.f32 %v814_v60  ;;  %v302_v62 = vld [vmem:[%s4956_s23 + $0x348] sm:$0xff]  ;;  %v825_v63 = vld [vmem:[%s4942_s19 + $0x3a0] sm:$0xff] }
  0x7c   : > { %v4066_v15 = vpop.eup %4065  ;;  %3361 = vst.msk [vmem:[%s4980_s26 + $0x2c8] sm:$0xff] %vm3271_vm0, %v2848_v4  ;;  %v2850_v17 = vmul.f32 %v2338_v5, %v2338_v5  ;;  %v2340_v18 = vsub.f32 %v1408_v6, %v4965_v16  ;;  %v1412_v19 = vmul.f32 %v4064_v9, %v292_v1  ;;  %4085 = vrcp.f32 %v815_v2  ;;  %v303_v4 = vld [vmem:[%s4956_s23 + $0x350] sm:$0xff]  ;;  %v826_v5 = vld [vmem:[%s4942_s19 + $0x3a8] sm:$0xff] }
  0x7d   : > { %v4068_v22 = vpop.eup %4067  ;;  %3362 = vst.msk [vmem:[%s4980_s26 + $0x2d0] sm:$0xff] %vm3271_vm0, %v2849_v10  ;;  %v2851_v23 = vmul.f32 %v2339_v11, %v2339_v11  ;;  %v2341_v24 = vsub.f32 %v1410_v12, %v4965_v16  ;;  %v1414_v25 = vmul.f32 %v4066_v15, %v293_v7  ;;  %4087 = vrcp.f32 %v816_v8  ;;  %v304_v10 = vld [vmem:[%s4956_s23 + $0x358] sm:$0xff]  ;;  %v827_v11 = vld [vmem:[%s4942_s19 + $0x3b0] sm:$0xff] }
  0x7e   : > { %v4070_v28 = vpop.eup %4069  ;;  %3363 = vst.msk [vmem:[%s4980_s26 + $0x2d8] sm:$0xff] %vm3271_vm0, %v2850_v17  ;;  %v2852_v29 = vmul.f32 %v2340_v18, %v2340_v18  ;;  %v2342_v30 = vsub.f32 %v1412_v19, %v4965_v16  ;;  %v1416_v31 = vmul.f32 %v4068_v22, %v294_v13  ;;  %4089 = vrcp.f32 %v817_v14  ;;  %v305_v17 = vld [vmem:[%s4956_s23 + $0x360] sm:$0xff]  ;;  %v828_v18 = vld [vmem:[%s4942_s19 + $0x3b8] sm:$0xff] }
  0x7f   : > { %v4072_v34 = vpop.eup %4071  ;;  %3364 = vst.msk [vmem:[%s4980_s26 + $0x2e0] sm:$0xff] %vm3271_vm0, %v2851_v23  ;;  %v2853_v35 = vmul.f32 %v2341_v24, %v2341_v24  ;;  %v2343_v36 = vsub.f32 %v1414_v25, %v4965_v16  ;;  %v1418_v37 = vmul.f32 %v4070_v28, %v295_v20  ;;  %4091 = vrcp.f32 %v818_v21  ;;  %v306_v23 = vld [vmem:[%s4956_s23 + $0x368] sm:$0xff]  ;;  %v829_v24 = vld [vmem:[%s4942_s19 + $0x3c0] sm:$0xff] }
  0x80   : > { %v4074_v40 = vpop.eup %4073  ;;  %3365 = vst.msk [vmem:[%s4980_s26 + $0x2e8] sm:$0xff] %vm3271_vm0, %v2852_v29  ;;  %v2854_v41 = vmul.f32 %v2342_v30, %v2342_v30  ;;  %v2344_v42 = vsub.f32 %v1416_v31, %v4965_v16  ;;  %v1420_v43 = vmul.f32 %v4072_v34, %v296_v26  ;;  %4093 = vrcp.f32 %v819_v27  ;;  %v307_v29 = vld [vmem:[%s4956_s23 + $0x370] sm:$0xff]  ;;  %v830_v30 = vld [vmem:[%s4942_s19 + $0x3c8] sm:$0xff] }
  0x81   : > { %v4076_v46 = vpop.eup %4075  ;;  %3366 = vst.msk [vmem:[%s4980_s26 + $0x2f0] sm:$0xff] %vm3271_vm0, %v2853_v35  ;;  %v2855_v47 = vmul.f32 %v2343_v36, %v2343_v36  ;;  %v2345_v48 = vsub.f32 %v1418_v37, %v4965_v16  ;;  %v1422_v49 = vmul.f32 %v4074_v40, %v297_v32  ;;  %4095 = vrcp.f32 %v820_v33  ;;  %v308_v35 = vld [vmem:[%s4956_s23 + $0x378] sm:$0xff]  ;;  %v831_v36 = vld [vmem:[%s4942_s19 + $0x3d0] sm:$0xff] }
  0x82   : > { %v4078_v52 = vpop.eup %4077  ;;  %3367 = vst.msk [vmem:[%s4980_s26 + $0x2f8] sm:$0xff] %vm3271_vm0, %v2854_v41  ;;  %v2856_v53 = vmul.f32 %v2344_v42, %v2344_v42  ;;  %v2346_v54 = vsub.f32 %v1420_v43, %v4965_v16  ;;  %v1424_v55 = vmul.f32 %v4076_v46, %v298_v38  ;;  %4097 = vrcp.f32 %v821_v39  ;;  %v309_v41 = vld [vmem:[%s4956_s23 + $0x380] sm:$0xff]  ;;  %v832_v42 = vld [vmem:[%s4942_s19 + $0x3d8] sm:$0xff] }
  0x83   : > { %v4080_v58 = vpop.eup %4079  ;;  %3368 = vst.msk [vmem:[%s4980_s26 + $0x300] sm:$0xff] %vm3271_vm0, %v2855_v47  ;;  %v2857_v59 = vmul.f32 %v2345_v48, %v2345_v48  ;;  %v2347_v60 = vsub.f32 %v1422_v49, %v4965_v16  ;;  %v1426_v61 = vmul.f32 %v4078_v52, %v299_v44  ;;  %4099 = vrcp.f32 %v822_v45  ;;  %v310_v47 = vld [vmem:[%s4956_s23 + $0x388] sm:$0xff]  ;;  %v833_v48 = vld [vmem:[%s4942_s19 + $0x3e0] sm:$0xff] }
  0x84   : > { %v4082_v0 = vpop.eup %4081  ;;  %3369 = vst.msk [vmem:[%s4980_s26 + $0x308] sm:$0xff] %vm3271_vm0, %v2856_v53  ;;  %v2858_v1 = vmul.f32 %v2346_v54, %v2346_v54  ;;  %v2348_v2 = vsub.f32 %v1424_v55, %v4965_v16  ;;  %v1428_v3 = vmul.f32 %v4080_v58, %v300_v50  ;;  %4101 = vrcp.f32 %v823_v51  ;;  %v311_v53 = vld [vmem:[%s4956_s23 + $0x390] sm:$0xff]  ;;  %v834_v54 = vld [vmem:[%s4942_s19 + $0x3e8] sm:$0xff] }
  0x85   : > { %v4084_v6 = vpop.eup %4083  ;;  %3370 = vst.msk [vmem:[%s4980_s26 + $0x310] sm:$0xff] %vm3271_vm0, %v2857_v59  ;;  %v2859_v7 = vmul.f32 %v2347_v60, %v2347_v60  ;;  %v2349_v8 = vsub.f32 %v1426_v61, %v4965_v16  ;;  %v1430_v9 = vmul.f32 %v4082_v0, %v301_v56  ;;  %4103 = vrcp.f32 %v824_v57  ;;  %v312_v59 = vld [vmem:[%s4956_s23 + $0x398] sm:$0xff]  ;;  %v835_v60 = vld [vmem:[%s4942_s19 + $0x3f0] sm:$0xff] }
  0x86   : > { %v4086_v12 = vpop.eup %4085  ;;  %3371 = vst.msk [vmem:[%s4980_s26 + $0x318] sm:$0xff] %vm3271_vm0, %v2858_v1  ;;  %v2860_v13 = vmul.f32 %v2348_v2, %v2348_v2  ;;  %v2350_v14 = vsub.f32 %v1428_v3, %v4965_v16  ;;  %v1432_v15 = vmul.f32 %v4084_v6, %v302_v62  ;;  %4105 = vrcp.f32 %v825_v63  ;;  %v313_v1 = vld [vmem:[%s4956_s23 + $0x3a0] sm:$0xff]  ;;  %v836_v2 = vld [vmem:[%s4942_s19 + $0x3f8] sm:$0xff] }
  0x87   : > { %v4088_v19 = vpop.eup %4087  ;;  %3372 = vst.msk [vmem:[%s4980_s26 + $0x320] sm:$0xff] %vm3271_vm0, %v2859_v7  ;;  %v2861_v20 = vmul.f32 %v2349_v8, %v2349_v8  ;;  %v2351_v21 = vsub.f32 %v1430_v9, %v4965_v16  ;;  %v1434_v22 = vmul.f32 %v4086_v12, %v303_v4  ;;  %4107 = vrcp.f32 %v826_v5  ;;  %v314_v7 = vld [vmem:[%s4956_s23 + $0x3a8] sm:$0xff]  ;;  %v837_v8 = vld [vmem:[%s4942_s19 + $0x400] sm:$0xff] }
  0x88   : > { %v4090_v25 = vpop.eup %4089  ;;  %3373 = vst.msk [vmem:[%s4980_s26 + $0x328] sm:$0xff] %vm3271_vm0, %v2860_v13  ;;  %v2862_v26 = vmul.f32 %v2350_v14, %v2350_v14  ;;  %v2352_v27 = vsub.f32 %v1432_v15, %v4965_v16  ;;  %v1436_v28 = vmul.f32 %v4088_v19, %v304_v10  ;;  %4109 = vrcp.f32 %v827_v11  ;;  %v315_v13 = vld [vmem:[%s4956_s23 + $0x3b0] sm:$0xff]  ;;  %v838_v14 = vld [vmem:[%s4942_s19 + $0x408] sm:$0xff] }
  0x89   : > { %v4092_v31 = vpop.eup %4091  ;;  %3374 = vst.msk [vmem:[%s4980_s26 + $0x330] sm:$0xff] %vm3271_vm0, %v2861_v20  ;;  %v2863_v32 = vmul.f32 %v2351_v21, %v2351_v21  ;;  %v2353_v33 = vsub.f32 %v1434_v22, %v4965_v16  ;;  %v1438_v34 = vmul.f32 %v4090_v25, %v305_v17  ;;  %4111 = vrcp.f32 %v828_v18  ;;  %v316_v20 = vld [vmem:[%s4956_s23 + $0x3b8] sm:$0xff]  ;;  %v839_v21 = vld [vmem:[%s4942_s19 + $0x410] sm:$0xff] }
  0x8a   : > { %v4094_v37 = vpop.eup %4093  ;;  %3375 = vst.msk [vmem:[%s4980_s26 + $0x338] sm:$0xff] %vm3271_vm0, %v2862_v26  ;;  %v2864_v38 = vmul.f32 %v2352_v27, %v2352_v27  ;;  %v2354_v39 = vsub.f32 %v1436_v28, %v4965_v16  ;;  %v1440_v40 = vmul.f32 %v4092_v31, %v306_v23  ;;  %4113 = vrcp.f32 %v829_v24  ;;  %v317_v26 = vld [vmem:[%s4956_s23 + $0x3c0] sm:$0xff]  ;;  %v840_v27 = vld [vmem:[%s4942_s19 + $0x418] sm:$0xff] }
  0x8b   : > { %v4096_v43 = vpop.eup %4095  ;;  %3376 = vst.msk [vmem:[%s4980_s26 + $0x340] sm:$0xff] %vm3271_vm0, %v2863_v32  ;;  %v2865_v44 = vmul.f32 %v2353_v33, %v2353_v33  ;;  %v2355_v45 = vsub.f32 %v1438_v34, %v4965_v16  ;;  %v1442_v46 = vmul.f32 %v4094_v37, %v307_v29  ;;  %4115 = vrcp.f32 %v830_v30  ;;  %v318_v32 = vld [vmem:[%s4956_s23 + $0x3c8] sm:$0xff]  ;;  %v841_v33 = vld [vmem:[%s4942_s19 + $0x420] sm:$0xff] }
  0x8c   : > { %v4098_v49 = vpop.eup %4097  ;;  %3377 = vst.msk [vmem:[%s4980_s26 + $0x348] sm:$0xff] %vm3271_vm0, %v2864_v38  ;;  %v2866_v50 = vmul.f32 %v2354_v39, %v2354_v39  ;;  %v2356_v51 = vsub.f32 %v1440_v40, %v4965_v16  ;;  %v1444_v52 = vmul.f32 %v4096_v43, %v308_v35  ;;  %4117 = vrcp.f32 %v831_v36  ;;  %v319_v38 = vld [vmem:[%s4956_s23 + $0x3d0] sm:$0xff]  ;;  %v842_v39 = vld [vmem:[%s4942_s19 + $0x428] sm:$0xff] }
  0x8d   : > { %v4100_v55 = vpop.eup %4099  ;;  %3378 = vst.msk [vmem:[%s4980_s26 + $0x350] sm:$0xff] %vm3271_vm0, %v2865_v44  ;;  %v2867_v56 = vmul.f32 %v2355_v45, %v2355_v45  ;;  %v2357_v57 = vsub.f32 %v1442_v46, %v4965_v16  ;;  %v1446_v58 = vmul.f32 %v4098_v49, %v309_v41  ;;  %4119 = vrcp.f32 %v832_v42  ;;  %v320_v44 = vld [vmem:[%s4956_s23 + $0x3d8] sm:$0xff]  ;;  %v843_v45 = vld [vmem:[%s4942_s19 + $0x430] sm:$0xff] }
  0x8e   : > { %v4102_v61 = vpop.eup %4101  ;;  %3379 = vst.msk [vmem:[%s4980_s26 + $0x358] sm:$0xff] %vm3271_vm0, %v2866_v50  ;;  %v2868_v62 = vmul.f32 %v2356_v51, %v2356_v51  ;;  %v2358_v63 = vsub.f32 %v1444_v52, %v4965_v16  ;;  %v1448_v0 = vmul.f32 %v4100_v55, %v310_v47  ;;  %4121 = vrcp.f32 %v833_v48  ;;  %v321_v50 = vld [vmem:[%s4956_s23 + $0x3e0] sm:$0xff]  ;;  %v844_v51 = vld [vmem:[%s4942_s19 + $0x438] sm:$0xff] }
  0x8f   : > { %v4104_v3 = vpop.eup %4103  ;;  %3380 = vst.msk [vmem:[%s4980_s26 + $0x360] sm:$0xff] %vm3271_vm0, %v2867_v56  ;;  %v2869_v4 = vmul.f32 %v2357_v57, %v2357_v57  ;;  %v2359_v5 = vsub.f32 %v1446_v58, %v4965_v16  ;;  %v1450_v6 = vmul.f32 %v4102_v61, %v311_v53  ;;  %4123 = vrcp.f32 %v834_v54  ;;  %v322_v56 = vld [vmem:[%s4956_s23 + $0x3e8] sm:$0xff]  ;;  %v845_v57 = vld [vmem:[%s4942_s19 + $0x440] sm:$0xff] }
  0x90   : > { %v4106_v9 = vpop.eup %4105  ;;  %3381 = vst.msk [vmem:[%s4980_s26 + $0x368] sm:$0xff] %vm3271_vm0, %v2868_v62  ;;  %v2870_v10 = vmul.f32 %v2358_v63, %v2358_v63  ;;  %v2360_v11 = vsub.f32 %v1448_v0, %v4965_v16  ;;  %v1452_v12 = vmul.f32 %v4104_v3, %v312_v59  ;;  %4125 = vrcp.f32 %v835_v60  ;;  %v323_v62 = vld [vmem:[%s4956_s23 + $0x3f0] sm:$0xff]  ;;  %v846_v63 = vld [vmem:[%s4942_s19 + $0x448] sm:$0xff] }
  0x91   : > { %v4108_v15 = vpop.eup %4107  ;;  %3382 = vst.msk [vmem:[%s4980_s26 + $0x370] sm:$0xff] %vm3271_vm0, %v2869_v4  ;;  %v2871_v17 = vmul.f32 %v2359_v5, %v2359_v5  ;;  %v2361_v18 = vsub.f32 %v1450_v6, %v4965_v16  ;;  %v1454_v19 = vmul.f32 %v4106_v9, %v313_v1  ;;  %4127 = vrcp.f32 %v836_v2  ;;  %v324_v4 = vld [vmem:[%s4956_s23 + $0x3f8] sm:$0xff]  ;;  %v847_v5 = vld [vmem:[%s4942_s19 + $0x450] sm:$0xff] }
  0x92   : > { %v4110_v22 = vpop.eup %4109  ;;  %3383 = vst.msk [vmem:[%s4980_s26 + $0x378] sm:$0xff] %vm3271_vm0, %v2870_v10  ;;  %v2872_v23 = vmul.f32 %v2360_v11, %v2360_v11  ;;  %v2362_v24 = vsub.f32 %v1452_v12, %v4965_v16  ;;  %v1456_v25 = vmul.f32 %v4108_v15, %v314_v7  ;;  %4129 = vrcp.f32 %v837_v8  ;;  %v325_v10 = vld [vmem:[%s4956_s23 + $0x400] sm:$0xff]  ;;  %v848_v11 = vld [vmem:[%s4942_s19 + $0x458] sm:$0xff] }
  0x93   : > { %v4112_v28 = vpop.eup %4111  ;;  %3384 = vst.msk [vmem:[%s4980_s26 + $0x380] sm:$0xff] %vm3271_vm0, %v2871_v17  ;;  %v2873_v29 = vmul.f32 %v2361_v18, %v2361_v18  ;;  %v2363_v30 = vsub.f32 %v1454_v19, %v4965_v16  ;;  %v1458_v31 = vmul.f32 %v4110_v22, %v315_v13  ;;  %4131 = vrcp.f32 %v838_v14  ;;  %v326_v17 = vld [vmem:[%s4956_s23 + $0x408] sm:$0xff]  ;;  %v849_v18 = vld [vmem:[%s4942_s19 + $0x460] sm:$0xff] }
  0x94   : > { %v4114_v34 = vpop.eup %4113  ;;  %3385 = vst.msk [vmem:[%s4980_s26 + $0x388] sm:$0xff] %vm3271_vm0, %v2872_v23  ;;  %v2874_v35 = vmul.f32 %v2362_v24, %v2362_v24  ;;  %v2364_v36 = vsub.f32 %v1456_v25, %v4965_v16  ;;  %v1460_v37 = vmul.f32 %v4112_v28, %v316_v20  ;;  %4133 = vrcp.f32 %v839_v21  ;;  %v327_v23 = vld [vmem:[%s4956_s23 + $0x410] sm:$0xff]  ;;  %v850_v24 = vld [vmem:[%s4942_s19 + $0x468] sm:$0xff] }
  0x95   : > { %v4116_v40 = vpop.eup %4115  ;;  %3386 = vst.msk [vmem:[%s4980_s26 + $0x390] sm:$0xff] %vm3271_vm0, %v2873_v29  ;;  %v2875_v41 = vmul.f32 %v2363_v30, %v2363_v30  ;;  %v2365_v42 = vsub.f32 %v1458_v31, %v4965_v16  ;;  %v1462_v43 = vmul.f32 %v4114_v34, %v317_v26  ;;  %4135 = vrcp.f32 %v840_v27  ;;  %v328_v29 = vld [vmem:[%s4956_s23 + $0x418] sm:$0xff]  ;;  %v851_v30 = vld [vmem:[%s4942_s19 + $0x470] sm:$0xff] }
  0x96   : > { %v4118_v46 = vpop.eup %4117  ;;  %3387 = vst.msk [vmem:[%s4980_s26 + $0x398] sm:$0xff] %vm3271_vm0, %v2874_v35  ;;  %v2876_v47 = vmul.f32 %v2364_v36, %v2364_v36  ;;  %v2366_v48 = vsub.f32 %v1460_v37, %v4965_v16  ;;  %v1464_v49 = vmul.f32 %v4116_v40, %v318_v32  ;;  %4137 = vrcp.f32 %v841_v33  ;;  %v329_v35 = vld [vmem:[%s4956_s23 + $0x420] sm:$0xff]  ;;  %v852_v36 = vld [vmem:[%s4942_s19 + $0x478] sm:$0xff] }
  0x97   : > { %v4120_v52 = vpop.eup %4119  ;;  %3388 = vst.msk [vmem:[%s4980_s26 + $0x3a0] sm:$0xff] %vm3271_vm0, %v2875_v41  ;;  %v2877_v53 = vmul.f32 %v2365_v42, %v2365_v42  ;;  %v2367_v54 = vsub.f32 %v1462_v43, %v4965_v16  ;;  %v1466_v55 = vmul.f32 %v4118_v46, %v319_v38  ;;  %4139 = vrcp.f32 %v842_v39  ;;  %v330_v41 = vld [vmem:[%s4956_s23 + $0x428] sm:$0xff]  ;;  %v853_v42 = vld [vmem:[%s4942_s19 + $0x480] sm:$0xff] }
  0x98   : > { %v4122_v58 = vpop.eup %4121  ;;  %3389 = vst.msk [vmem:[%s4980_s26 + $0x3a8] sm:$0xff] %vm3271_vm0, %v2876_v47  ;;  %v2878_v59 = vmul.f32 %v2366_v48, %v2366_v48  ;;  %v2368_v60 = vsub.f32 %v1464_v49, %v4965_v16  ;;  %v1468_v61 = vmul.f32 %v4120_v52, %v320_v44  ;;  %4141 = vrcp.f32 %v843_v45  ;;  %v331_v47 = vld [vmem:[%s4956_s23 + $0x430] sm:$0xff]  ;;  %v854_v48 = vld [vmem:[%s4942_s19 + $0x488] sm:$0xff] }
  0x99   : > { %v4124_v0 = vpop.eup %4123  ;;  %3390 = vst.msk [vmem:[%s4980_s26 + $0x3b0] sm:$0xff] %vm3271_vm0, %v2877_v53  ;;  %v2879_v1 = vmul.f32 %v2367_v54, %v2367_v54  ;;  %v2369_v2 = vsub.f32 %v1466_v55, %v4965_v16  ;;  %v1470_v3 = vmul.f32 %v4122_v58, %v321_v50  ;;  %4143 = vrcp.f32 %v844_v51  ;;  %v332_v53 = vld [vmem:[%s4956_s23 + $0x438] sm:$0xff]  ;;  %v855_v54 = vld [vmem:[%s4942_s19 + $0x490] sm:$0xff] }
  0x9a   : > { %v4126_v6 = vpop.eup %4125  ;;  %3391 = vst.msk [vmem:[%s4980_s26 + $0x3b8] sm:$0xff] %vm3271_vm0, %v2878_v59  ;;  %v2880_v7 = vmul.f32 %v2368_v60, %v2368_v60  ;;  %v2370_v8 = vsub.f32 %v1468_v61, %v4965_v16  ;;  %v1472_v9 = vmul.f32 %v4124_v0, %v322_v56  ;;  %4145 = vrcp.f32 %v845_v57  ;;  %v333_v59 = vld [vmem:[%s4956_s23 + $0x440] sm:$0xff]  ;;  %v856_v60 = vld [vmem:[%s4942_s19 + $0x498] sm:$0xff] }
  0x9b   : > { %v4128_v12 = vpop.eup %4127  ;;  %3392 = vst.msk [vmem:[%s4980_s26 + $0x3c0] sm:$0xff] %vm3271_vm0, %v2879_v1  ;;  %v2881_v13 = vmul.f32 %v2369_v2, %v2369_v2  ;;  %v2371_v14 = vsub.f32 %v1470_v3, %v4965_v16  ;;  %v1474_v15 = vmul.f32 %v4126_v6, %v323_v62  ;;  %4147 = vrcp.f32 %v846_v63  ;;  %v334_v1 = vld [vmem:[%s4956_s23 + $0x448] sm:$0xff]  ;;  %v857_v2 = vld [vmem:[%s4942_s19 + $0x4a0] sm:$0xff] }
  0x9c   : > { %v4130_v19 = vpop.eup %4129  ;;  %3393 = vst.msk [vmem:[%s4980_s26 + $0x3c8] sm:$0xff] %vm3271_vm0, %v2880_v7  ;;  %v2882_v20 = vmul.f32 %v2370_v8, %v2370_v8  ;;  %v2372_v21 = vsub.f32 %v1472_v9, %v4965_v16  ;;  %v1476_v22 = vmul.f32 %v4128_v12, %v324_v4  ;;  %4149 = vrcp.f32 %v847_v5  ;;  %v335_v7 = vld [vmem:[%s4956_s23 + $0x450] sm:$0xff]  ;;  %v858_v8 = vld [vmem:[%s4942_s19 + $0x4a8] sm:$0xff] }
  0x9d   : > { %v4132_v25 = vpop.eup %4131  ;;  %3394 = vst.msk [vmem:[%s4980_s26 + $0x3d0] sm:$0xff] %vm3271_vm0, %v2881_v13  ;;  %v2883_v26 = vmul.f32 %v2371_v14, %v2371_v14  ;;  %v2373_v27 = vsub.f32 %v1474_v15, %v4965_v16  ;;  %v1478_v28 = vmul.f32 %v4130_v19, %v325_v10  ;;  %4151 = vrcp.f32 %v848_v11  ;;  %v336_v13 = vld [vmem:[%s4956_s23 + $0x458] sm:$0xff]  ;;  %v859_v14 = vld [vmem:[%s4942_s19 + $0x4b0] sm:$0xff] }
  0x9e   : > { %v4134_v31 = vpop.eup %4133  ;;  %3395 = vst.msk [vmem:[%s4980_s26 + $0x3d8] sm:$0xff] %vm3271_vm0, %v2882_v20  ;;  %v2884_v32 = vmul.f32 %v2372_v21, %v2372_v21  ;;  %v2374_v33 = vsub.f32 %v1476_v22, %v4965_v16  ;;  %v1480_v34 = vmul.f32 %v4132_v25, %v326_v17  ;;  %4153 = vrcp.f32 %v849_v18  ;;  %v337_v20 = vld [vmem:[%s4956_s23 + $0x460] sm:$0xff]  ;;  %v860_v21 = vld [vmem:[%s4942_s19 + $0x4b8] sm:$0xff] }
  0x9f   : > { %v4136_v37 = vpop.eup %4135  ;;  %3396 = vst.msk [vmem:[%s4980_s26 + $0x3e0] sm:$0xff] %vm3271_vm0, %v2883_v26  ;;  %v2885_v38 = vmul.f32 %v2373_v27, %v2373_v27  ;;  %v2375_v39 = vsub.f32 %v1478_v28, %v4965_v16  ;;  %v1482_v40 = vmul.f32 %v4134_v31, %v327_v23  ;;  %4155 = vrcp.f32 %v850_v24  ;;  %v338_v26 = vld [vmem:[%s4956_s23 + $0x468] sm:$0xff]  ;;  %v861_v27 = vld [vmem:[%s4942_s19 + $0x4c0] sm:$0xff] }
  0xa0   : > { %v4138_v43 = vpop.eup %4137  ;;  %3397 = vst.msk [vmem:[%s4980_s26 + $0x3e8] sm:$0xff] %vm3271_vm0, %v2884_v32  ;;  %v2886_v44 = vmul.f32 %v2374_v33, %v2374_v33  ;;  %v2376_v45 = vsub.f32 %v1480_v34, %v4965_v16  ;;  %v1484_v46 = vmul.f32 %v4136_v37, %v328_v29  ;;  %4157 = vrcp.f32 %v851_v30  ;;  %v339_v32 = vld [vmem:[%s4956_s23 + $0x470] sm:$0xff]  ;;  %v862_v33 = vld [vmem:[%s4942_s19 + $0x4c8] sm:$0xff] }
  0xa1   : > { %v4140_v49 = vpop.eup %4139  ;;  %3398 = vst.msk [vmem:[%s4980_s26 + $0x3f0] sm:$0xff] %vm3271_vm0, %v2885_v38  ;;  %v2887_v50 = vmul.f32 %v2375_v39, %v2375_v39  ;;  %v2377_v51 = vsub.f32 %v1482_v40, %v4965_v16  ;;  %v1486_v52 = vmul.f32 %v4138_v43, %v329_v35  ;;  %4159 = vrcp.f32 %v852_v36  ;;  %v340_v38 = vld [vmem:[%s4956_s23 + $0x478] sm:$0xff]  ;;  %v863_v39 = vld [vmem:[%s4942_s19 + $0x4d0] sm:$0xff] }
  0xa2   : > { %v4142_v55 = vpop.eup %4141  ;;  %3399 = vst.msk [vmem:[%s4980_s26 + $0x3f8] sm:$0xff] %vm3271_vm0, %v2886_v44  ;;  %v2888_v56 = vmul.f32 %v2376_v45, %v2376_v45  ;;  %v2378_v57 = vsub.f32 %v1484_v46, %v4965_v16  ;;  %v1488_v58 = vmul.f32 %v4140_v49, %v330_v41  ;;  %4161 = vrcp.f32 %v853_v42  ;;  %v341_v44 = vld [vmem:[%s4956_s23 + $0x480] sm:$0xff]  ;;  %v864_v45 = vld [vmem:[%s4942_s19 + $0x4d8] sm:$0xff] }
  0xa3   : > { %v4144_v61 = vpop.eup %4143  ;;  %3400 = vst.msk [vmem:[%s4980_s26 + $0x400] sm:$0xff] %vm3271_vm0, %v2887_v50  ;;  %v2889_v62 = vmul.f32 %v2377_v51, %v2377_v51  ;;  %v2379_v63 = vsub.f32 %v1486_v52, %v4965_v16  ;;  %v1490_v0 = vmul.f32 %v4142_v55, %v331_v47  ;;  %4163 = vrcp.f32 %v854_v48  ;;  %v342_v50 = vld [vmem:[%s4956_s23 + $0x488] sm:$0xff]  ;;  %v865_v51 = vld [vmem:[%s4942_s19 + $0x4e0] sm:$0xff] }
  0xa4   : > { %v4146_v3 = vpop.eup %4145  ;;  %3401 = vst.msk [vmem:[%s4980_s26 + $0x408] sm:$0xff] %vm3271_vm0, %v2888_v56  ;;  %v2890_v4 = vmul.f32 %v2378_v57, %v2378_v57  ;;  %v2380_v5 = vsub.f32 %v1488_v58, %v4965_v16  ;;  %v1492_v6 = vmul.f32 %v4144_v61, %v332_v53  ;;  %4165 = vrcp.f32 %v855_v54  ;;  %v343_v56 = vld [vmem:[%s4956_s23 + $0x490] sm:$0xff]  ;;  %v866_v57 = vld [vmem:[%s4942_s19 + $0x4e8] sm:$0xff] }
  0xa5   : > { %v4148_v9 = vpop.eup %4147  ;;  %3402 = vst.msk [vmem:[%s4980_s26 + $0x410] sm:$0xff] %vm3271_vm0, %v2889_v62  ;;  %v2891_v10 = vmul.f32 %v2379_v63, %v2379_v63  ;;  %v2381_v11 = vsub.f32 %v1490_v0, %v4965_v16  ;;  %v1494_v12 = vmul.f32 %v4146_v3, %v333_v59  ;;  %4167 = vrcp.f32 %v856_v60  ;;  %v344_v62 = vld [vmem:[%s4956_s23 + $0x498] sm:$0xff]  ;;  %v867_v63 = vld [vmem:[%s4942_s19 + $0x4f0] sm:$0xff] }
  0xa6   : > { %v4150_v15 = vpop.eup %4149  ;;  %3403 = vst.msk [vmem:[%s4980_s26 + $0x418] sm:$0xff] %vm3271_vm0, %v2890_v4  ;;  %v2892_v17 = vmul.f32 %v2380_v5, %v2380_v5  ;;  %v2382_v18 = vsub.f32 %v1492_v6, %v4965_v16  ;;  %v1496_v19 = vmul.f32 %v4148_v9, %v334_v1  ;;  %4169 = vrcp.f32 %v857_v2  ;;  %v345_v4 = vld [vmem:[%s4956_s23 + $0x4a0] sm:$0xff]  ;;  %v868_v5 = vld [vmem:[%s4942_s19 + $0x4f8] sm:$0xff] }
  0xa7   : > { %v4152_v22 = vpop.eup %4151  ;;  %3404 = vst.msk [vmem:[%s4980_s26 + $0x420] sm:$0xff] %vm3271_vm0, %v2891_v10  ;;  %v2893_v23 = vmul.f32 %v2381_v11, %v2381_v11  ;;  %v2383_v24 = vsub.f32 %v1494_v12, %v4965_v16  ;;  %v1498_v25 = vmul.f32 %v4150_v15, %v335_v7  ;;  %4171 = vrcp.f32 %v858_v8  ;;  %v346_v10 = vld [vmem:[%s4956_s23 + $0x4a8] sm:$0xff]  ;;  %v869_v11 = vld [vmem:[%s4942_s19 + $0x500] sm:$0xff] }
  0xa8   : > { %v4154_v28 = vpop.eup %4153  ;;  %3405 = vst.msk [vmem:[%s4980_s26 + $0x428] sm:$0xff] %vm3271_vm0, %v2892_v17  ;;  %v2894_v29 = vmul.f32 %v2382_v18, %v2382_v18  ;;  %v2384_v30 = vsub.f32 %v1496_v19, %v4965_v16  ;;  %v1500_v31 = vmul.f32 %v4152_v22, %v336_v13  ;;  %4173 = vrcp.f32 %v859_v14  ;;  %v347_v17 = vld [vmem:[%s4956_s23 + $0x4b0] sm:$0xff]  ;;  %v870_v18 = vld [vmem:[%s4942_s19 + $0x508] sm:$0xff] }
  0xa9   : > { %v4156_v34 = vpop.eup %4155  ;;  %3406 = vst.msk [vmem:[%s4980_s26 + $0x430] sm:$0xff] %vm3271_vm0, %v2893_v23  ;;  %v2895_v35 = vmul.f32 %v2383_v24, %v2383_v24  ;;  %v2385_v36 = vsub.f32 %v1498_v25, %v4965_v16  ;;  %v1502_v37 = vmul.f32 %v4154_v28, %v337_v20  ;;  %4175 = vrcp.f32 %v860_v21  ;;  %v348_v23 = vld [vmem:[%s4956_s23 + $0x4b8] sm:$0xff]  ;;  %v871_v24 = vld [vmem:[%s4942_s19 + $0x510] sm:$0xff] }
  0xaa   : > { %v4158_v40 = vpop.eup %4157  ;;  %3407 = vst.msk [vmem:[%s4980_s26 + $0x438] sm:$0xff] %vm3271_vm0, %v2894_v29  ;;  %v2896_v41 = vmul.f32 %v2384_v30, %v2384_v30  ;;  %v2386_v42 = vsub.f32 %v1500_v31, %v4965_v16  ;;  %v1504_v43 = vmul.f32 %v4156_v34, %v338_v26  ;;  %4177 = vrcp.f32 %v861_v27  ;;  %v349_v29 = vld [vmem:[%s4956_s23 + $0x4c0] sm:$0xff]  ;;  %v872_v30 = vld [vmem:[%s4942_s19 + $0x518] sm:$0xff] }
  0xab   : > { %v4160_v46 = vpop.eup %4159  ;;  %3408 = vst.msk [vmem:[%s4980_s26 + $0x440] sm:$0xff] %vm3271_vm0, %v2895_v35  ;;  %v2897_v47 = vmul.f32 %v2385_v36, %v2385_v36  ;;  %v2387_v48 = vsub.f32 %v1502_v37, %v4965_v16  ;;  %v1506_v49 = vmul.f32 %v4158_v40, %v339_v32  ;;  %4179 = vrcp.f32 %v862_v33  ;;  %v350_v35 = vld [vmem:[%s4956_s23 + $0x4c8] sm:$0xff]  ;;  %v873_v36 = vld [vmem:[%s4942_s19 + $0x520] sm:$0xff] }
  0xac   : > { %v4162_v52 = vpop.eup %4161  ;;  %3409 = vst.msk [vmem:[%s4980_s26 + $0x448] sm:$0xff] %vm3271_vm0, %v2896_v41  ;;  %v2898_v53 = vmul.f32 %v2386_v42, %v2386_v42  ;;  %v2388_v54 = vsub.f32 %v1504_v43, %v4965_v16  ;;  %v1508_v55 = vmul.f32 %v4160_v46, %v340_v38  ;;  %4181 = vrcp.f32 %v863_v39  ;;  %v351_v41 = vld [vmem:[%s4956_s23 + $0x4d0] sm:$0xff]  ;;  %v874_v42 = vld [vmem:[%s4942_s19 + $0x528] sm:$0xff] }
  0xad   : > { %v4164_v58 = vpop.eup %4163  ;;  %3410 = vst.msk [vmem:[%s4980_s26 + $0x450] sm:$0xff] %vm3271_vm0, %v2897_v47  ;;  %v2899_v59 = vmul.f32 %v2387_v48, %v2387_v48  ;;  %v2389_v60 = vsub.f32 %v1506_v49, %v4965_v16  ;;  %v1510_v61 = vmul.f32 %v4162_v52, %v341_v44  ;;  %4183 = vrcp.f32 %v864_v45  ;;  %v352_v47 = vld [vmem:[%s4956_s23 + $0x4d8] sm:$0xff]  ;;  %v875_v48 = vld [vmem:[%s4942_s19 + $0x530] sm:$0xff] }
  0xae   : > { %v4166_v0 = vpop.eup %4165  ;;  %3411 = vst.msk [vmem:[%s4980_s26 + $0x458] sm:$0xff] %vm3271_vm0, %v2898_v53  ;;  %v2900_v1 = vmul.f32 %v2388_v54, %v2388_v54  ;;  %v2390_v2 = vsub.f32 %v1508_v55, %v4965_v16  ;;  %v1512_v3 = vmul.f32 %v4164_v58, %v342_v50  ;;  %4185 = vrcp.f32 %v865_v51  ;;  %v353_v53 = vld [vmem:[%s4956_s23 + $0x4e0] sm:$0xff]  ;;  %v876_v54 = vld [vmem:[%s4942_s19 + $0x538] sm:$0xff] }
  0xaf   : > { %v4168_v6 = vpop.eup %4167  ;;  %3412 = vst.msk [vmem:[%s4980_s26 + $0x460] sm:$0xff] %vm3271_vm0, %v2899_v59  ;;  %v2901_v7 = vmul.f32 %v2389_v60, %v2389_v60  ;;  %v2391_v8 = vsub.f32 %v1510_v61, %v4965_v16  ;;  %v1514_v9 = vmul.f32 %v4166_v0, %v343_v56  ;;  %4187 = vrcp.f32 %v866_v57  ;;  %v354_v59 = vld [vmem:[%s4956_s23 + $0x4e8] sm:$0xff]  ;;  %v877_v60 = vld [vmem:[%s4942_s19 + $0x540] sm:$0xff] }
  0xb0   : > { %v4170_v12 = vpop.eup %4169  ;;  %3413 = vst.msk [vmem:[%s4980_s26 + $0x468] sm:$0xff] %vm3271_vm0, %v2900_v1  ;;  %v2902_v13 = vmul.f32 %v2390_v2, %v2390_v2  ;;  %v2392_v14 = vsub.f32 %v1512_v3, %v4965_v16  ;;  %v1516_v15 = vmul.f32 %v4168_v6, %v344_v62  ;;  %4189 = vrcp.f32 %v867_v63  ;;  %v355_v1 = vld [vmem:[%s4956_s23 + $0x4f0] sm:$0xff]  ;;  %v878_v2 = vld [vmem:[%s4942_s19 + $0x548] sm:$0xff] }
  0xb1   : > { %v4172_v19 = vpop.eup %4171  ;;  %3414 = vst.msk [vmem:[%s4980_s26 + $0x470] sm:$0xff] %vm3271_vm0, %v2901_v7  ;;  %v2903_v20 = vmul.f32 %v2391_v8, %v2391_v8  ;;  %v2393_v21 = vsub.f32 %v1514_v9, %v4965_v16  ;;  %v1518_v22 = vmul.f32 %v4170_v12, %v345_v4  ;;  %4191 = vrcp.f32 %v868_v5  ;;  %v356_v7 = vld [vmem:[%s4956_s23 + $0x4f8] sm:$0xff]  ;;  %v879_v8 = vld [vmem:[%s4942_s19 + $0x550] sm:$0xff] }
  0xb2   : > { %v4174_v25 = vpop.eup %4173  ;;  %3415 = vst.msk [vmem:[%s4980_s26 + $0x478] sm:$0xff] %vm3271_vm0, %v2902_v13  ;;  %v2904_v26 = vmul.f32 %v2392_v14, %v2392_v14  ;;  %v2394_v27 = vsub.f32 %v1516_v15, %v4965_v16  ;;  %v1520_v28 = vmul.f32 %v4172_v19, %v346_v10  ;;  %4193 = vrcp.f32 %v869_v11  ;;  %v357_v13 = vld [vmem:[%s4956_s23 + $0x500] sm:$0xff]  ;;  %v880_v14 = vld [vmem:[%s4942_s19 + $0x558] sm:$0xff] }
  0xb3   : > { %v4176_v31 = vpop.eup %4175  ;;  %3416 = vst.msk [vmem:[%s4980_s26 + $0x480] sm:$0xff] %vm3271_vm0, %v2903_v20  ;;  %v2905_v32 = vmul.f32 %v2393_v21, %v2393_v21  ;;  %v2395_v33 = vsub.f32 %v1518_v22, %v4965_v16  ;;  %v1522_v34 = vmul.f32 %v4174_v25, %v347_v17  ;;  %4195 = vrcp.f32 %v870_v18  ;;  %v358_v20 = vld [vmem:[%s4956_s23 + $0x508] sm:$0xff]  ;;  %v881_v21 = vld [vmem:[%s4942_s19 + $0x560] sm:$0xff] }
  0xb4   : > { %v4178_v37 = vpop.eup %4177  ;;  %3417 = vst.msk [vmem:[%s4980_s26 + $0x488] sm:$0xff] %vm3271_vm0, %v2904_v26  ;;  %v2906_v38 = vmul.f32 %v2394_v27, %v2394_v27  ;;  %v2396_v39 = vsub.f32 %v1520_v28, %v4965_v16  ;;  %v1524_v40 = vmul.f32 %v4176_v31, %v348_v23  ;;  %4197 = vrcp.f32 %v871_v24  ;;  %v359_v26 = vld [vmem:[%s4956_s23 + $0x510] sm:$0xff]  ;;  %v882_v27 = vld [vmem:[%s4942_s19 + $0x568] sm:$0xff] }
  0xb5   : > { %v4180_v43 = vpop.eup %4179  ;;  %3418 = vst.msk [vmem:[%s4980_s26 + $0x490] sm:$0xff] %vm3271_vm0, %v2905_v32  ;;  %v2907_v44 = vmul.f32 %v2395_v33, %v2395_v33  ;;  %v2397_v45 = vsub.f32 %v1522_v34, %v4965_v16  ;;  %v1526_v46 = vmul.f32 %v4178_v37, %v349_v29  ;;  %4199 = vrcp.f32 %v872_v30  ;;  %v360_v32 = vld [vmem:[%s4956_s23 + $0x518] sm:$0xff]  ;;  %v883_v33 = vld [vmem:[%s4942_s19 + $0x570] sm:$0xff] }
  0xb6   : > { %v4182_v49 = vpop.eup %4181  ;;  %3419 = vst.msk [vmem:[%s4980_s26 + $0x498] sm:$0xff] %vm3271_vm0, %v2906_v38  ;;  %v2908_v50 = vmul.f32 %v2396_v39, %v2396_v39  ;;  %v2398_v51 = vsub.f32 %v1524_v40, %v4965_v16  ;;  %v1528_v52 = vmul.f32 %v4180_v43, %v350_v35  ;;  %4201 = vrcp.f32 %v873_v36  ;;  %v361_v38 = vld [vmem:[%s4956_s23 + $0x520] sm:$0xff]  ;;  %v884_v39 = vld [vmem:[%s4942_s19 + $0x578] sm:$0xff] }
  0xb7   : > { %v4184_v55 = vpop.eup %4183  ;;  %3420 = vst.msk [vmem:[%s4980_s26 + $0x4a0] sm:$0xff] %vm3271_vm0, %v2907_v44  ;;  %v2909_v56 = vmul.f32 %v2397_v45, %v2397_v45  ;;  %v2399_v57 = vsub.f32 %v1526_v46, %v4965_v16  ;;  %v1530_v58 = vmul.f32 %v4182_v49, %v351_v41  ;;  %4203 = vrcp.f32 %v874_v42  ;;  %v362_v44 = vld [vmem:[%s4956_s23 + $0x528] sm:$0xff]  ;;  %v885_v45 = vld [vmem:[%s4942_s19 + $0x580] sm:$0xff] }
  0xb8   : > { %v4186_v61 = vpop.eup %4185  ;;  %3421 = vst.msk [vmem:[%s4980_s26 + $0x4a8] sm:$0xff] %vm3271_vm0, %v2908_v50  ;;  %v2910_v62 = vmul.f32 %v2398_v51, %v2398_v51  ;;  %v2400_v63 = vsub.f32 %v1528_v52, %v4965_v16  ;;  %v1532_v0 = vmul.f32 %v4184_v55, %v352_v47  ;;  %4205 = vrcp.f32 %v875_v48  ;;  %v363_v50 = vld [vmem:[%s4956_s23 + $0x530] sm:$0xff]  ;;  %v886_v51 = vld [vmem:[%s4942_s19 + $0x588] sm:$0xff] }
  0xb9   : > { %v4188_v3 = vpop.eup %4187  ;;  %3422 = vst.msk [vmem:[%s4980_s26 + $0x4b0] sm:$0xff] %vm3271_vm0, %v2909_v56  ;;  %v2911_v4 = vmul.f32 %v2399_v57, %v2399_v57  ;;  %v2401_v5 = vsub.f32 %v1530_v58, %v4965_v16  ;;  %v1534_v6 = vmul.f32 %v4186_v61, %v353_v53  ;;  %4207 = vrcp.f32 %v876_v54  ;;  %v364_v56 = vld [vmem:[%s4956_s23 + $0x538] sm:$0xff]  ;;  %v887_v57 = vld [vmem:[%s4942_s19 + $0x590] sm:$0xff] }
  0xba   : > { %v4190_v9 = vpop.eup %4189  ;;  %3423 = vst.msk [vmem:[%s4980_s26 + $0x4b8] sm:$0xff] %vm3271_vm0, %v2910_v62  ;;  %v2912_v10 = vmul.f32 %v2400_v63, %v2400_v63  ;;  %v2402_v11 = vsub.f32 %v1532_v0, %v4965_v16  ;;  %v1536_v12 = vmul.f32 %v4188_v3, %v354_v59  ;;  %4209 = vrcp.f32 %v877_v60  ;;  %v365_v62 = vld [vmem:[%s4956_s23 + $0x540] sm:$0xff]  ;;  %v888_v63 = vld [vmem:[%s4942_s19 + $0x598] sm:$0xff] }
  0xbb   : > { %v4192_v15 = vpop.eup %4191  ;;  %3424 = vst.msk [vmem:[%s4980_s26 + $0x4c0] sm:$0xff] %vm3271_vm0, %v2911_v4  ;;  %v2913_v17 = vmul.f32 %v2401_v5, %v2401_v5  ;;  %v2403_v18 = vsub.f32 %v1534_v6, %v4965_v16  ;;  %v1538_v19 = vmul.f32 %v4190_v9, %v355_v1  ;;  %4211 = vrcp.f32 %v878_v2  ;;  %v366_v4 = vld [vmem:[%s4956_s23 + $0x548] sm:$0xff]  ;;  %v889_v5 = vld [vmem:[%s4942_s19 + $0x5a0] sm:$0xff] }
  0xbc   : > { %v4194_v22 = vpop.eup %4193  ;;  %3425 = vst.msk [vmem:[%s4980_s26 + $0x4c8] sm:$0xff] %vm3271_vm0, %v2912_v10  ;;  %v2914_v23 = vmul.f32 %v2402_v11, %v2402_v11  ;;  %v2404_v24 = vsub.f32 %v1536_v12, %v4965_v16  ;;  %v1540_v25 = vmul.f32 %v4192_v15, %v356_v7  ;;  %4213 = vrcp.f32 %v879_v8  ;;  %v367_v10 = vld [vmem:[%s4956_s23 + $0x550] sm:$0xff]  ;;  %v890_v11 = vld [vmem:[%s4942_s19 + $0x5a8] sm:$0xff] }
  0xbd   : > { %v4196_v28 = vpop.eup %4195  ;;  %3426 = vst.msk [vmem:[%s4980_s26 + $0x4d0] sm:$0xff] %vm3271_vm0, %v2913_v17  ;;  %v2915_v29 = vmul.f32 %v2403_v18, %v2403_v18  ;;  %v2405_v30 = vsub.f32 %v1538_v19, %v4965_v16  ;;  %v1542_v31 = vmul.f32 %v4194_v22, %v357_v13  ;;  %4215 = vrcp.f32 %v880_v14  ;;  %v368_v17 = vld [vmem:[%s4956_s23 + $0x558] sm:$0xff]  ;;  %v891_v18 = vld [vmem:[%s4942_s19 + $0x5b0] sm:$0xff] }
  0xbe   : > { %v4198_v34 = vpop.eup %4197  ;;  %3427 = vst.msk [vmem:[%s4980_s26 + $0x4d8] sm:$0xff] %vm3271_vm0, %v2914_v23  ;;  %v2916_v35 = vmul.f32 %v2404_v24, %v2404_v24  ;;  %v2406_v36 = vsub.f32 %v1540_v25, %v4965_v16  ;;  %v1544_v37 = vmul.f32 %v4196_v28, %v358_v20  ;;  %4217 = vrcp.f32 %v881_v21  ;;  %v369_v23 = vld [vmem:[%s4956_s23 + $0x560] sm:$0xff]  ;;  %v892_v24 = vld [vmem:[%s4942_s19 + $0x5b8] sm:$0xff] }
  0xbf   : > { %v4200_v40 = vpop.eup %4199  ;;  %3428 = vst.msk [vmem:[%s4980_s26 + $0x4e0] sm:$0xff] %vm3271_vm0, %v2915_v29  ;;  %v2917_v41 = vmul.f32 %v2405_v30, %v2405_v30  ;;  %v2407_v42 = vsub.f32 %v1542_v31, %v4965_v16  ;;  %v1546_v43 = vmul.f32 %v4198_v34, %v359_v26  ;;  %4219 = vrcp.f32 %v882_v27  ;;  %v370_v29 = vld [vmem:[%s4956_s23 + $0x568] sm:$0xff]  ;;  %v893_v30 = vld [vmem:[%s4942_s19 + $0x5c0] sm:$0xff] }
  0xc0   : > { %v4202_v46 = vpop.eup %4201  ;;  %3429 = vst.msk [vmem:[%s4980_s26 + $0x4e8] sm:$0xff] %vm3271_vm0, %v2916_v35  ;;  %v2918_v47 = vmul.f32 %v2406_v36, %v2406_v36  ;;  %v2408_v48 = vsub.f32 %v1544_v37, %v4965_v16  ;;  %v1548_v49 = vmul.f32 %v4200_v40, %v360_v32  ;;  %4221 = vrcp.f32 %v883_v33  ;;  %v371_v35 = vld [vmem:[%s4956_s23 + $0x570] sm:$0xff]  ;;  %v894_v36 = vld [vmem:[%s4942_s19 + $0x5c8] sm:$0xff] }
  0xc1   : > { %v4204_v52 = vpop.eup %4203  ;;  %3430 = vst.msk [vmem:[%s4980_s26 + $0x4f0] sm:$0xff] %vm3271_vm0, %v2917_v41  ;;  %v2919_v53 = vmul.f32 %v2407_v42, %v2407_v42  ;;  %v2409_v54 = vsub.f32 %v1546_v43, %v4965_v16  ;;  %v1550_v55 = vmul.f32 %v4202_v46, %v361_v38  ;;  %4223 = vrcp.f32 %v884_v39  ;;  %v372_v41 = vld [vmem:[%s4956_s23 + $0x578] sm:$0xff]  ;;  %v895_v42 = vld [vmem:[%s4942_s19 + $0x5d0] sm:$0xff] }
  0xc2   : > { %v4206_v58 = vpop.eup %4205  ;;  %3431 = vst.msk [vmem:[%s4980_s26 + $0x4f8] sm:$0xff] %vm3271_vm0, %v2918_v47  ;;  %v2920_v59 = vmul.f32 %v2408_v48, %v2408_v48  ;;  %v2410_v60 = vsub.f32 %v1548_v49, %v4965_v16  ;;  %v1552_v61 = vmul.f32 %v4204_v52, %v362_v44  ;;  %4225 = vrcp.f32 %v885_v45  ;;  %v373_v47 = vld [vmem:[%s4956_s23 + $0x580] sm:$0xff]  ;;  %v896_v48 = vld [vmem:[%s4942_s19 + $0x5d8] sm:$0xff] }
  0xc3   : > { %v4208_v0 = vpop.eup %4207  ;;  %3432 = vst.msk [vmem:[%s4980_s26 + $0x500] sm:$0xff] %vm3271_vm0, %v2919_v53  ;;  %v2921_v1 = vmul.f32 %v2409_v54, %v2409_v54  ;;  %v2411_v2 = vsub.f32 %v1550_v55, %v4965_v16  ;;  %v1554_v3 = vmul.f32 %v4206_v58, %v363_v50  ;;  %4227 = vrcp.f32 %v886_v51  ;;  %v374_v53 = vld [vmem:[%s4956_s23 + $0x588] sm:$0xff]  ;;  %v897_v54 = vld [vmem:[%s4942_s19 + $0x5e0] sm:$0xff] }
  0xc4   : > { %v4210_v6 = vpop.eup %4209  ;;  %3433 = vst.msk [vmem:[%s4980_s26 + $0x508] sm:$0xff] %vm3271_vm0, %v2920_v59  ;;  %v2922_v7 = vmul.f32 %v2410_v60, %v2410_v60  ;;  %v2412_v8 = vsub.f32 %v1552_v61, %v4965_v16  ;;  %v1556_v9 = vmul.f32 %v4208_v0, %v364_v56  ;;  %4229 = vrcp.f32 %v887_v57  ;;  %v375_v59 = vld [vmem:[%s4956_s23 + $0x590] sm:$0xff]  ;;  %v898_v60 = vld [vmem:[%s4942_s19 + $0x5e8] sm:$0xff] }
  0xc5   : > { %v4212_v12 = vpop.eup %4211  ;;  %3434 = vst.msk [vmem:[%s4980_s26 + $0x510] sm:$0xff] %vm3271_vm0, %v2921_v1  ;;  %v2923_v13 = vmul.f32 %v2411_v2, %v2411_v2  ;;  %v2413_v14 = vsub.f32 %v1554_v3, %v4965_v16  ;;  %v1558_v15 = vmul.f32 %v4210_v6, %v365_v62  ;;  %4231 = vrcp.f32 %v888_v63  ;;  %v376_v1 = vld [vmem:[%s4956_s23 + $0x598] sm:$0xff]  ;;  %v899_v2 = vld [vmem:[%s4942_s19 + $0x5f0] sm:$0xff] }
  0xc6   : > { %v4214_v19 = vpop.eup %4213  ;;  %3435 = vst.msk [vmem:[%s4980_s26 + $0x518] sm:$0xff] %vm3271_vm0, %v2922_v7  ;;  %v2924_v20 = vmul.f32 %v2412_v8, %v2412_v8  ;;  %v2414_v21 = vsub.f32 %v1556_v9, %v4965_v16  ;;  %v1560_v22 = vmul.f32 %v4212_v12, %v366_v4  ;;  %4233 = vrcp.f32 %v889_v5  ;;  %v377_v7 = vld [vmem:[%s4956_s23 + $0x5a0] sm:$0xff]  ;;  %v900_v8 = vld [vmem:[%s4942_s19 + $0x5f8] sm:$0xff] }
  0xc7   : > { %v4216_v25 = vpop.eup %4215  ;;  %3436 = vst.msk [vmem:[%s4980_s26 + $0x520] sm:$0xff] %vm3271_vm0, %v2923_v13  ;;  %v2925_v26 = vmul.f32 %v2413_v14, %v2413_v14  ;;  %v2415_v27 = vsub.f32 %v1558_v15, %v4965_v16  ;;  %v1562_v28 = vmul.f32 %v4214_v19, %v367_v10  ;;  %4235 = vrcp.f32 %v890_v11  ;;  %v378_v13 = vld [vmem:[%s4956_s23 + $0x5a8] sm:$0xff]  ;;  %v901_v14 = vld [vmem:[%s4942_s19 + $0x600] sm:$0xff] }
  0xc8   : > { %v4218_v31 = vpop.eup %4217  ;;  %3437 = vst.msk [vmem:[%s4980_s26 + $0x528] sm:$0xff] %vm3271_vm0, %v2924_v20  ;;  %v2926_v32 = vmul.f32 %v2414_v21, %v2414_v21  ;;  %v2416_v33 = vsub.f32 %v1560_v22, %v4965_v16  ;;  %v1564_v34 = vmul.f32 %v4216_v25, %v368_v17  ;;  %4237 = vrcp.f32 %v891_v18  ;;  %v379_v20 = vld [vmem:[%s4956_s23 + $0x5b0] sm:$0xff]  ;;  %v902_v21 = vld [vmem:[%s4942_s19 + $0x608] sm:$0xff] }
  0xc9   : > { %v4220_v37 = vpop.eup %4219  ;;  %3438 = vst.msk [vmem:[%s4980_s26 + $0x530] sm:$0xff] %vm3271_vm0, %v2925_v26  ;;  %v2927_v38 = vmul.f32 %v2415_v27, %v2415_v27  ;;  %v2417_v39 = vsub.f32 %v1562_v28, %v4965_v16  ;;  %v1566_v40 = vmul.f32 %v4218_v31, %v369_v23  ;;  %4239 = vrcp.f32 %v892_v24  ;;  %v380_v26 = vld [vmem:[%s4956_s23 + $0x5b8] sm:$0xff]  ;;  %v903_v27 = vld [vmem:[%s4942_s19 + $0x610] sm:$0xff] }
  0xca   : > { %v4222_v43 = vpop.eup %4221  ;;  %3439 = vst.msk [vmem:[%s4980_s26 + $0x538] sm:$0xff] %vm3271_vm0, %v2926_v32  ;;  %v2928_v44 = vmul.f32 %v2416_v33, %v2416_v33  ;;  %v2418_v45 = vsub.f32 %v1564_v34, %v4965_v16  ;;  %v1568_v46 = vmul.f32 %v4220_v37, %v370_v29  ;;  %4241 = vrcp.f32 %v893_v30  ;;  %v381_v32 = vld [vmem:[%s4956_s23 + $0x5c0] sm:$0xff]  ;;  %v904_v33 = vld [vmem:[%s4942_s19 + $0x618] sm:$0xff] }
  0xcb   : > { %v4224_v49 = vpop.eup %4223  ;;  %3440 = vst.msk [vmem:[%s4980_s26 + $0x540] sm:$0xff] %vm3271_vm0, %v2927_v38  ;;  %v2929_v50 = vmul.f32 %v2417_v39, %v2417_v39  ;;  %v2419_v51 = vsub.f32 %v1566_v40, %v4965_v16  ;;  %v1570_v52 = vmul.f32 %v4222_v43, %v371_v35  ;;  %4243 = vrcp.f32 %v894_v36  ;;  %v382_v38 = vld [vmem:[%s4956_s23 + $0x5c8] sm:$0xff]  ;;  %v905_v39 = vld [vmem:[%s4942_s19 + $0x620] sm:$0xff] }
  0xcc   : > { %v4226_v55 = vpop.eup %4225  ;;  %3441 = vst.msk [vmem:[%s4980_s26 + $0x548] sm:$0xff] %vm3271_vm0, %v2928_v44  ;;  %v2930_v56 = vmul.f32 %v2418_v45, %v2418_v45  ;;  %v2420_v57 = vsub.f32 %v1568_v46, %v4965_v16  ;;  %v1572_v58 = vmul.f32 %v4224_v49, %v372_v41  ;;  %4245 = vrcp.f32 %v895_v42  ;;  %v383_v44 = vld [vmem:[%s4956_s23 + $0x5d0] sm:$0xff]  ;;  %v906_v45 = vld [vmem:[%s4942_s19 + $0x628] sm:$0xff] }
  0xcd   : > { %v4228_v61 = vpop.eup %4227  ;;  %3442 = vst.msk [vmem:[%s4980_s26 + $0x550] sm:$0xff] %vm3271_vm0, %v2929_v50  ;;  %v2931_v62 = vmul.f32 %v2419_v51, %v2419_v51  ;;  %v2421_v63 = vsub.f32 %v1570_v52, %v4965_v16  ;;  %v1574_v0 = vmul.f32 %v4226_v55, %v373_v47  ;;  %4247 = vrcp.f32 %v896_v48  ;;  %v384_v50 = vld [vmem:[%s4956_s23 + $0x5d8] sm:$0xff]  ;;  %v907_v51 = vld [vmem:[%s4942_s19 + $0x630] sm:$0xff] }
  0xce   : > { %v4230_v3 = vpop.eup %4229  ;;  %3443 = vst.msk [vmem:[%s4980_s26 + $0x558] sm:$0xff] %vm3271_vm0, %v2930_v56  ;;  %v2932_v4 = vmul.f32 %v2420_v57, %v2420_v57  ;;  %v2422_v5 = vsub.f32 %v1572_v58, %v4965_v16  ;;  %v1576_v6 = vmul.f32 %v4228_v61, %v374_v53  ;;  %4249 = vrcp.f32 %v897_v54  ;;  %v385_v56 = vld [vmem:[%s4956_s23 + $0x5e0] sm:$0xff]  ;;  %v908_v57 = vld [vmem:[%s4942_s19 + $0x638] sm:$0xff] }
  0xcf   : > { %v4232_v9 = vpop.eup %4231  ;;  %3444 = vst.msk [vmem:[%s4980_s26 + $0x560] sm:$0xff] %vm3271_vm0, %v2931_v62  ;;  %v2933_v10 = vmul.f32 %v2421_v63, %v2421_v63  ;;  %v2423_v11 = vsub.f32 %v1574_v0, %v4965_v16  ;;  %v1578_v12 = vmul.f32 %v4230_v3, %v375_v59  ;;  %4251 = vrcp.f32 %v898_v60  ;;  %v386_v62 = vld [vmem:[%s4956_s23 + $0x5e8] sm:$0xff]  ;;  %v909_v63 = vld [vmem:[%s4942_s19 + $0x640] sm:$0xff] }
  0xd0   : > { %v4234_v15 = vpop.eup %4233  ;;  %3445 = vst.msk [vmem:[%s4980_s26 + $0x568] sm:$0xff] %vm3271_vm0, %v2932_v4  ;;  %v2934_v17 = vmul.f32 %v2422_v5, %v2422_v5  ;;  %v2424_v18 = vsub.f32 %v1576_v6, %v4965_v16  ;;  %v1580_v19 = vmul.f32 %v4232_v9, %v376_v1  ;;  %4253 = vrcp.f32 %v899_v2  ;;  %v387_v4 = vld [vmem:[%s4956_s23 + $0x5f0] sm:$0xff]  ;;  %v910_v5 = vld [vmem:[%s4942_s19 + $0x648] sm:$0xff] }
  0xd1   : > { %v4236_v22 = vpop.eup %4235  ;;  %3446 = vst.msk [vmem:[%s4980_s26 + $0x570] sm:$0xff] %vm3271_vm0, %v2933_v10  ;;  %v2935_v23 = vmul.f32 %v2423_v11, %v2423_v11  ;;  %v2425_v24 = vsub.f32 %v1578_v12, %v4965_v16  ;;  %v1582_v25 = vmul.f32 %v4234_v15, %v377_v7  ;;  %4255 = vrcp.f32 %v900_v8  ;;  %v388_v10 = vld [vmem:[%s4956_s23 + $0x5f8] sm:$0xff]  ;;  %v911_v11 = vld [vmem:[%s4942_s19 + $0x650] sm:$0xff] }
  0xd2   : > { %v4238_v28 = vpop.eup %4237  ;;  %3447 = vst.msk [vmem:[%s4980_s26 + $0x578] sm:$0xff] %vm3271_vm0, %v2934_v17  ;;  %v2936_v29 = vmul.f32 %v2424_v18, %v2424_v18  ;;  %v2426_v30 = vsub.f32 %v1580_v19, %v4965_v16  ;;  %v1584_v31 = vmul.f32 %v4236_v22, %v378_v13  ;;  %4257 = vrcp.f32 %v901_v14  ;;  %v389_v17 = vld [vmem:[%s4956_s23 + $0x600] sm:$0xff]  ;;  %v912_v18 = vld [vmem:[%s4942_s19 + $0x658] sm:$0xff] }
  0xd3   : > { %v4240_v34 = vpop.eup %4239  ;;  %3448 = vst.msk [vmem:[%s4980_s26 + $0x580] sm:$0xff] %vm3271_vm0, %v2935_v23  ;;  %v2937_v35 = vmul.f32 %v2425_v24, %v2425_v24  ;;  %v2427_v36 = vsub.f32 %v1582_v25, %v4965_v16  ;;  %v1586_v37 = vmul.f32 %v4238_v28, %v379_v20  ;;  %4259 = vrcp.f32 %v902_v21  ;;  %v390_v23 = vld [vmem:[%s4956_s23 + $0x608] sm:$0xff]  ;;  %v913_v24 = vld [vmem:[%s4942_s19 + $0x660] sm:$0xff] }
  0xd4   : > { %v4242_v40 = vpop.eup %4241  ;;  %3449 = vst.msk [vmem:[%s4980_s26 + $0x588] sm:$0xff] %vm3271_vm0, %v2936_v29  ;;  %v2938_v41 = vmul.f32 %v2426_v30, %v2426_v30  ;;  %v2428_v42 = vsub.f32 %v1584_v31, %v4965_v16  ;;  %v1588_v43 = vmul.f32 %v4240_v34, %v380_v26  ;;  %4261 = vrcp.f32 %v903_v27  ;;  %v391_v29 = vld [vmem:[%s4956_s23 + $0x610] sm:$0xff]  ;;  %v914_v30 = vld [vmem:[%s4942_s19 + $0x668] sm:$0xff] }
  0xd5   : > { %v4244_v46 = vpop.eup %4243  ;;  %3450 = vst.msk [vmem:[%s4980_s26 + $0x590] sm:$0xff] %vm3271_vm0, %v2937_v35  ;;  %v2939_v47 = vmul.f32 %v2427_v36, %v2427_v36  ;;  %v2429_v48 = vsub.f32 %v1586_v37, %v4965_v16  ;;  %v1590_v49 = vmul.f32 %v4242_v40, %v381_v32  ;;  %4263 = vrcp.f32 %v904_v33  ;;  %v392_v35 = vld [vmem:[%s4956_s23 + $0x618] sm:$0xff]  ;;  %v915_v36 = vld [vmem:[%s4942_s19 + $0x670] sm:$0xff] }
  0xd6   : > { %v4246_v52 = vpop.eup %4245  ;;  %3451 = vst.msk [vmem:[%s4980_s26 + $0x598] sm:$0xff] %vm3271_vm0, %v2938_v41  ;;  %v2940_v53 = vmul.f32 %v2428_v42, %v2428_v42  ;;  %v2430_v54 = vsub.f32 %v1588_v43, %v4965_v16  ;;  %v1592_v55 = vmul.f32 %v4244_v46, %v382_v38  ;;  %4265 = vrcp.f32 %v905_v39  ;;  %v393_v41 = vld [vmem:[%s4956_s23 + $0x620] sm:$0xff]  ;;  %v916_v42 = vld [vmem:[%s4942_s19 + $0x678] sm:$0xff] }
  0xd7   : > { %v4248_v58 = vpop.eup %4247  ;;  %3452 = vst.msk [vmem:[%s4980_s26 + $0x5a0] sm:$0xff] %vm3271_vm0, %v2939_v47  ;;  %v2941_v59 = vmul.f32 %v2429_v48, %v2429_v48  ;;  %v2431_v60 = vsub.f32 %v1590_v49, %v4965_v16  ;;  %v1594_v61 = vmul.f32 %v4246_v52, %v383_v44  ;;  %4267 = vrcp.f32 %v906_v45  ;;  %v394_v47 = vld [vmem:[%s4956_s23 + $0x628] sm:$0xff]  ;;  %v917_v48 = vld [vmem:[%s4942_s19 + $0x680] sm:$0xff] }
  0xd8   : > { %v4250_v0 = vpop.eup %4249  ;;  %3453 = vst.msk [vmem:[%s4980_s26 + $0x5a8] sm:$0xff] %vm3271_vm0, %v2940_v53  ;;  %v2942_v1 = vmul.f32 %v2430_v54, %v2430_v54  ;;  %v2432_v2 = vsub.f32 %v1592_v55, %v4965_v16  ;;  %v1596_v3 = vmul.f32 %v4248_v58, %v384_v50  ;;  %4269 = vrcp.f32 %v907_v51  ;;  %v395_v53 = vld [vmem:[%s4956_s23 + $0x630] sm:$0xff]  ;;  %v918_v54 = vld [vmem:[%s4942_s19 + $0x688] sm:$0xff] }
  0xd9   : > { %v4252_v6 = vpop.eup %4251  ;;  %3454 = vst.msk [vmem:[%s4980_s26 + $0x5b0] sm:$0xff] %vm3271_vm0, %v2941_v59  ;;  %v2943_v7 = vmul.f32 %v2431_v60, %v2431_v60  ;;  %v2433_v8 = vsub.f32 %v1594_v61, %v4965_v16  ;;  %v1598_v9 = vmul.f32 %v4250_v0, %v385_v56  ;;  %4271 = vrcp.f32 %v908_v57  ;;  %v396_v59 = vld [vmem:[%s4956_s23 + $0x638] sm:$0xff]  ;;  %v919_v60 = vld [vmem:[%s4942_s19 + $0x690] sm:$0xff] }
  0xda   : > { %v4254_v12 = vpop.eup %4253  ;;  %3455 = vst.msk [vmem:[%s4980_s26 + $0x5b8] sm:$0xff] %vm3271_vm0, %v2942_v1  ;;  %v2944_v13 = vmul.f32 %v2432_v2, %v2432_v2  ;;  %v2434_v14 = vsub.f32 %v1596_v3, %v4965_v16  ;;  %v1600_v15 = vmul.f32 %v4252_v6, %v386_v62  ;;  %4273 = vrcp.f32 %v909_v63  ;;  %v397_v1 = vld [vmem:[%s4956_s23 + $0x640] sm:$0xff]  ;;  %v920_v2 = vld [vmem:[%s4942_s19 + $0x698] sm:$0xff] }
  0xdb   : > { %v4256_v19 = vpop.eup %4255  ;;  %3456 = vst.msk [vmem:[%s4980_s26 + $0x5c0] sm:$0xff] %vm3271_vm0, %v2943_v7  ;;  %v2945_v20 = vmul.f32 %v2433_v8, %v2433_v8  ;;  %v2435_v21 = vsub.f32 %v1598_v9, %v4965_v16  ;;  %v1602_v22 = vmul.f32 %v4254_v12, %v387_v4  ;;  %4275 = vrcp.f32 %v910_v5  ;;  %v398_v7 = vld [vmem:[%s4956_s23 + $0x648] sm:$0xff]  ;;  %v921_v8 = vld [vmem:[%s4942_s19 + $0x6a0] sm:$0xff] }
  0xdc   : > { %v4258_v25 = vpop.eup %4257  ;;  %3457 = vst.msk [vmem:[%s4980_s26 + $0x5c8] sm:$0xff] %vm3271_vm0, %v2944_v13  ;;  %v2946_v26 = vmul.f32 %v2434_v14, %v2434_v14  ;;  %v2436_v27 = vsub.f32 %v1600_v15, %v4965_v16  ;;  %v1604_v28 = vmul.f32 %v4256_v19, %v388_v10  ;;  %4277 = vrcp.f32 %v911_v11  ;;  %v399_v13 = vld [vmem:[%s4956_s23 + $0x650] sm:$0xff]  ;;  %v922_v14 = vld [vmem:[%s4942_s19 + $0x6a8] sm:$0xff] }
  0xdd   : > { %v4260_v31 = vpop.eup %4259  ;;  %3458 = vst.msk [vmem:[%s4980_s26 + $0x5d0] sm:$0xff] %vm3271_vm0, %v2945_v20  ;;  %v2947_v32 = vmul.f32 %v2435_v21, %v2435_v21  ;;  %v2437_v33 = vsub.f32 %v1602_v22, %v4965_v16  ;;  %v1606_v34 = vmul.f32 %v4258_v25, %v389_v17  ;;  %4279 = vrcp.f32 %v912_v18  ;;  %v400_v20 = vld [vmem:[%s4956_s23 + $0x658] sm:$0xff]  ;;  %v923_v21 = vld [vmem:[%s4942_s19 + $0x6b0] sm:$0xff] }
  0xde   : > { %v4262_v37 = vpop.eup %4261  ;;  %3459 = vst.msk [vmem:[%s4980_s26 + $0x5d8] sm:$0xff] %vm3271_vm0, %v2946_v26  ;;  %v2948_v38 = vmul.f32 %v2436_v27, %v2436_v27  ;;  %v2438_v39 = vsub.f32 %v1604_v28, %v4965_v16  ;;  %v1608_v40 = vmul.f32 %v4260_v31, %v390_v23  ;;  %4281 = vrcp.f32 %v913_v24  ;;  %v401_v26 = vld [vmem:[%s4956_s23 + $0x660] sm:$0xff]  ;;  %v924_v27 = vld [vmem:[%s4942_s19 + $0x6b8] sm:$0xff] }
  0xdf   : > { %v4264_v43 = vpop.eup %4263  ;;  %3460 = vst.msk [vmem:[%s4980_s26 + $0x5e0] sm:$0xff] %vm3271_vm0, %v2947_v32  ;;  %v2949_v44 = vmul.f32 %v2437_v33, %v2437_v33  ;;  %v2439_v45 = vsub.f32 %v1606_v34, %v4965_v16  ;;  %v1610_v46 = vmul.f32 %v4262_v37, %v391_v29  ;;  %4283 = vrcp.f32 %v914_v30  ;;  %v402_v32 = vld [vmem:[%s4956_s23 + $0x668] sm:$0xff]  ;;  %v925_v33 = vld [vmem:[%s4942_s19 + $0x6c0] sm:$0xff] }
  0xe0   : > { %v4266_v49 = vpop.eup %4265  ;;  %3461 = vst.msk [vmem:[%s4980_s26 + $0x5e8] sm:$0xff] %vm3271_vm0, %v2948_v38  ;;  %v2950_v50 = vmul.f32 %v2438_v39, %v2438_v39  ;;  %v2440_v51 = vsub.f32 %v1608_v40, %v4965_v16  ;;  %v1612_v52 = vmul.f32 %v4264_v43, %v392_v35  ;;  %4285 = vrcp.f32 %v915_v36  ;;  %v403_v38 = vld [vmem:[%s4956_s23 + $0x670] sm:$0xff]  ;;  %v926_v39 = vld [vmem:[%s4942_s19 + $0x6c8] sm:$0xff] }
  0xe1   : > { %v4268_v55 = vpop.eup %4267  ;;  %3462 = vst.msk [vmem:[%s4980_s26 + $0x5f0] sm:$0xff] %vm3271_vm0, %v2949_v44  ;;  %v2951_v56 = vmul.f32 %v2439_v45, %v2439_v45  ;;  %v2441_v57 = vsub.f32 %v1610_v46, %v4965_v16  ;;  %v1614_v58 = vmul.f32 %v4266_v49, %v393_v41  ;;  %4287 = vrcp.f32 %v916_v42  ;;  %v404_v44 = vld [vmem:[%s4956_s23 + $0x678] sm:$0xff]  ;;  %v927_v45 = vld [vmem:[%s4942_s19 + $0x6d0] sm:$0xff] }
  0xe2   : > { %v4270_v61 = vpop.eup %4269  ;;  %3463 = vst.msk [vmem:[%s4980_s26 + $0x5f8] sm:$0xff] %vm3271_vm0, %v2950_v50  ;;  %v2952_v62 = vmul.f32 %v2440_v51, %v2440_v51  ;;  %v2442_v63 = vsub.f32 %v1612_v52, %v4965_v16  ;;  %v1616_v0 = vmul.f32 %v4268_v55, %v394_v47  ;;  %4289 = vrcp.f32 %v917_v48  ;;  %v405_v50 = vld [vmem:[%s4956_s23 + $0x680] sm:$0xff]  ;;  %v928_v51 = vld [vmem:[%s4942_s19 + $0x6d8] sm:$0xff] }
  0xe3   : > { %v4272_v3 = vpop.eup %4271  ;;  %3464 = vst.msk [vmem:[%s4980_s26 + $0x600] sm:$0xff] %vm3271_vm0, %v2951_v56  ;;  %v2953_v4 = vmul.f32 %v2441_v57, %v2441_v57  ;;  %v2443_v5 = vsub.f32 %v1614_v58, %v4965_v16  ;;  %v1618_v6 = vmul.f32 %v4270_v61, %v395_v53  ;;  %4291 = vrcp.f32 %v918_v54  ;;  %v406_v56 = vld [vmem:[%s4956_s23 + $0x688] sm:$0xff]  ;;  %v929_v57 = vld [vmem:[%s4942_s19 + $0x6e0] sm:$0xff] }
  0xe4   : > { %v4274_v9 = vpop.eup %4273  ;;  %3465 = vst.msk [vmem:[%s4980_s26 + $0x608] sm:$0xff] %vm3271_vm0, %v2952_v62  ;;  %v2954_v10 = vmul.f32 %v2442_v63, %v2442_v63  ;;  %v2444_v11 = vsub.f32 %v1616_v0, %v4965_v16  ;;  %v1620_v12 = vmul.f32 %v4272_v3, %v396_v59  ;;  %4293 = vrcp.f32 %v919_v60  ;;  %v407_v62 = vld [vmem:[%s4956_s23 + $0x690] sm:$0xff]  ;;  %v930_v63 = vld [vmem:[%s4942_s19 + $0x6e8] sm:$0xff] }
  0xe5   : > { %v4276_v15 = vpop.eup %4275  ;;  %3466 = vst.msk [vmem:[%s4980_s26 + $0x610] sm:$0xff] %vm3271_vm0, %v2953_v4  ;;  %v2955_v17 = vmul.f32 %v2443_v5, %v2443_v5  ;;  %v2445_v18 = vsub.f32 %v1618_v6, %v4965_v16  ;;  %v1622_v19 = vmul.f32 %v4274_v9, %v397_v1  ;;  %4295 = vrcp.f32 %v920_v2  ;;  %v408_v4 = vld [vmem:[%s4956_s23 + $0x698] sm:$0xff]  ;;  %v931_v5 = vld [vmem:[%s4942_s19 + $0x6f0] sm:$0xff] }
  0xe6   : > { %v4278_v22 = vpop.eup %4277  ;;  %3467 = vst.msk [vmem:[%s4980_s26 + $0x618] sm:$0xff] %vm3271_vm0, %v2954_v10  ;;  %v2956_v23 = vmul.f32 %v2444_v11, %v2444_v11  ;;  %v2446_v24 = vsub.f32 %v1620_v12, %v4965_v16  ;;  %v1624_v25 = vmul.f32 %v4276_v15, %v398_v7  ;;  %4297 = vrcp.f32 %v921_v8  ;;  %v409_v10 = vld [vmem:[%s4956_s23 + $0x6a0] sm:$0xff]  ;;  %v932_v11 = vld [vmem:[%s4942_s19 + $0x6f8] sm:$0xff] }
  0xe7   : > { %v4280_v28 = vpop.eup %4279  ;;  %3468 = vst.msk [vmem:[%s4980_s26 + $0x620] sm:$0xff] %vm3271_vm0, %v2955_v17  ;;  %v2957_v29 = vmul.f32 %v2445_v18, %v2445_v18  ;;  %v2447_v30 = vsub.f32 %v1622_v19, %v4965_v16  ;;  %v1626_v31 = vmul.f32 %v4278_v22, %v399_v13  ;;  %4299 = vrcp.f32 %v922_v14  ;;  %v410_v17 = vld [vmem:[%s4956_s23 + $0x6a8] sm:$0xff]  ;;  %v933_v18 = vld [vmem:[%s4942_s19 + $0x700] sm:$0xff] }
  0xe8   : > { %v4282_v34 = vpop.eup %4281  ;;  %3469 = vst.msk [vmem:[%s4980_s26 + $0x628] sm:$0xff] %vm3271_vm0, %v2956_v23  ;;  %v2958_v35 = vmul.f32 %v2446_v24, %v2446_v24  ;;  %v2448_v36 = vsub.f32 %v1624_v25, %v4965_v16  ;;  %v1628_v37 = vmul.f32 %v4280_v28, %v400_v20  ;;  %4301 = vrcp.f32 %v923_v21  ;;  %v411_v23 = vld [vmem:[%s4956_s23 + $0x6b0] sm:$0xff]  ;;  %v934_v24 = vld [vmem:[%s4942_s19 + $0x708] sm:$0xff] }
  0xe9   : > { %v4284_v40 = vpop.eup %4283  ;;  %3470 = vst.msk [vmem:[%s4980_s26 + $0x630] sm:$0xff] %vm3271_vm0, %v2957_v29  ;;  %v2959_v41 = vmul.f32 %v2447_v30, %v2447_v30  ;;  %v2449_v42 = vsub.f32 %v1626_v31, %v4965_v16  ;;  %v1630_v43 = vmul.f32 %v4282_v34, %v401_v26  ;;  %4303 = vrcp.f32 %v924_v27  ;;  %v412_v29 = vld [vmem:[%s4956_s23 + $0x6b8] sm:$0xff]  ;;  %v935_v30 = vld [vmem:[%s4942_s19 + $0x710] sm:$0xff] }
  0xea   : > { %v4286_v46 = vpop.eup %4285  ;;  %3471 = vst.msk [vmem:[%s4980_s26 + $0x638] sm:$0xff] %vm3271_vm0, %v2958_v35  ;;  %v2960_v47 = vmul.f32 %v2448_v36, %v2448_v36  ;;  %v2450_v48 = vsub.f32 %v1628_v37, %v4965_v16  ;;  %v1632_v49 = vmul.f32 %v4284_v40, %v402_v32  ;;  %4305 = vrcp.f32 %v925_v33  ;;  %v413_v35 = vld [vmem:[%s4956_s23 + $0x6c0] sm:$0xff]  ;;  %v936_v36 = vld [vmem:[%s4942_s19 + $0x718] sm:$0xff] }
  0xeb   : > { %v4288_v52 = vpop.eup %4287  ;;  %3472 = vst.msk [vmem:[%s4980_s26 + $0x640] sm:$0xff] %vm3271_vm0, %v2959_v41  ;;  %v2961_v53 = vmul.f32 %v2449_v42, %v2449_v42  ;;  %v2451_v54 = vsub.f32 %v1630_v43, %v4965_v16  ;;  %v1634_v55 = vmul.f32 %v4286_v46, %v403_v38  ;;  %4307 = vrcp.f32 %v926_v39  ;;  %v414_v41 = vld [vmem:[%s4956_s23 + $0x6c8] sm:$0xff]  ;;  %v937_v42 = vld [vmem:[%s4942_s19 + $0x720] sm:$0xff] }
  0xec   : > { %v4290_v58 = vpop.eup %4289  ;;  %3473 = vst.msk [vmem:[%s4980_s26 + $0x648] sm:$0xff] %vm3271_vm0, %v2960_v47  ;;  %v2962_v59 = vmul.f32 %v2450_v48, %v2450_v48  ;;  %v2452_v60 = vsub.f32 %v1632_v49, %v4965_v16  ;;  %v1636_v61 = vmul.f32 %v4288_v52, %v404_v44  ;;  %4309 = vrcp.f32 %v927_v45  ;;  %v415_v47 = vld [vmem:[%s4956_s23 + $0x6d0] sm:$0xff]  ;;  %v938_v48 = vld [vmem:[%s4942_s19 + $0x728] sm:$0xff] }
  0xed   : > { %v4292_v0 = vpop.eup %4291  ;;  %3474 = vst.msk [vmem:[%s4980_s26 + $0x650] sm:$0xff] %vm3271_vm0, %v2961_v53  ;;  %v2963_v1 = vmul.f32 %v2451_v54, %v2451_v54  ;;  %v2453_v2 = vsub.f32 %v1634_v55, %v4965_v16  ;;  %v1638_v3 = vmul.f32 %v4290_v58, %v405_v50  ;;  %4311 = vrcp.f32 %v928_v51  ;;  %v416_v53 = vld [vmem:[%s4956_s23 + $0x6d8] sm:$0xff]  ;;  %v939_v54 = vld [vmem:[%s4942_s19 + $0x730] sm:$0xff] }
  0xee   : > { %v4294_v6 = vpop.eup %4293  ;;  %3475 = vst.msk [vmem:[%s4980_s26 + $0x658] sm:$0xff] %vm3271_vm0, %v2962_v59  ;;  %v2964_v7 = vmul.f32 %v2452_v60, %v2452_v60  ;;  %v2454_v8 = vsub.f32 %v1636_v61, %v4965_v16  ;;  %v1640_v9 = vmul.f32 %v4292_v0, %v406_v56  ;;  %4313 = vrcp.f32 %v929_v57  ;;  %v417_v59 = vld [vmem:[%s4956_s23 + $0x6e0] sm:$0xff]  ;;  %v940_v60 = vld [vmem:[%s4942_s19 + $0x738] sm:$0xff] }
  0xef   : > { %v4296_v12 = vpop.eup %4295  ;;  %3476 = vst.msk [vmem:[%s4980_s26 + $0x660] sm:$0xff] %vm3271_vm0, %v2963_v1  ;;  %v2965_v13 = vmul.f32 %v2453_v2, %v2453_v2  ;;  %v2455_v14 = vsub.f32 %v1638_v3, %v4965_v16  ;;  %v1642_v15 = vmul.f32 %v4294_v6, %v407_v62  ;;  %4315 = vrcp.f32 %v930_v63  ;;  %v418_v1 = vld [vmem:[%s4956_s23 + $0x6e8] sm:$0xff]  ;;  %v941_v2 = vld [vmem:[%s4942_s19 + $0x740] sm:$0xff] }
  0xf0   : > { %v4298_v19 = vpop.eup %4297  ;;  %3477 = vst.msk [vmem:[%s4980_s26 + $0x668] sm:$0xff] %vm3271_vm0, %v2964_v7  ;;  %v2966_v20 = vmul.f32 %v2454_v8, %v2454_v8  ;;  %v2456_v21 = vsub.f32 %v1640_v9, %v4965_v16  ;;  %v1644_v22 = vmul.f32 %v4296_v12, %v408_v4  ;;  %4317 = vrcp.f32 %v931_v5  ;;  %v419_v7 = vld [vmem:[%s4956_s23 + $0x6f0] sm:$0xff]  ;;  %v942_v8 = vld [vmem:[%s4942_s19 + $0x748] sm:$0xff] }
  0xf1   : > { %v4300_v25 = vpop.eup %4299  ;;  %3478 = vst.msk [vmem:[%s4980_s26 + $0x670] sm:$0xff] %vm3271_vm0, %v2965_v13  ;;  %v2967_v26 = vmul.f32 %v2455_v14, %v2455_v14  ;;  %v2457_v27 = vsub.f32 %v1642_v15, %v4965_v16  ;;  %v1646_v28 = vmul.f32 %v4298_v19, %v409_v10  ;;  %4319 = vrcp.f32 %v932_v11  ;;  %v420_v13 = vld [vmem:[%s4956_s23 + $0x6f8] sm:$0xff]  ;;  %v943_v14 = vld [vmem:[%s4942_s19 + $0x750] sm:$0xff] }
  0xf2   : > { %v4302_v31 = vpop.eup %4301  ;;  %3479 = vst.msk [vmem:[%s4980_s26 + $0x678] sm:$0xff] %vm3271_vm0, %v2966_v20  ;;  %v2968_v32 = vmul.f32 %v2456_v21, %v2456_v21  ;;  %v2458_v33 = vsub.f32 %v1644_v22, %v4965_v16  ;;  %v1648_v34 = vmul.f32 %v4300_v25, %v410_v17  ;;  %4321 = vrcp.f32 %v933_v18  ;;  %v421_v20 = vld [vmem:[%s4956_s23 + $0x700] sm:$0xff]  ;;  %v944_v21 = vld [vmem:[%s4942_s19 + $0x758] sm:$0xff] }
  0xf3   : > { %v4304_v37 = vpop.eup %4303  ;;  %3480 = vst.msk [vmem:[%s4980_s26 + $0x680] sm:$0xff] %vm3271_vm0, %v2967_v26  ;;  %v2969_v38 = vmul.f32 %v2457_v27, %v2457_v27  ;;  %v2459_v39 = vsub.f32 %v1646_v28, %v4965_v16  ;;  %v1650_v40 = vmul.f32 %v4302_v31, %v411_v23  ;;  %4323 = vrcp.f32 %v934_v24  ;;  %v422_v26 = vld [vmem:[%s4956_s23 + $0x708] sm:$0xff]  ;;  %v945_v27 = vld [vmem:[%s4942_s19 + $0x760] sm:$0xff] }
  0xf4   : > { %v4306_v43 = vpop.eup %4305  ;;  %3481 = vst.msk [vmem:[%s4980_s26 + $0x688] sm:$0xff] %vm3271_vm0, %v2968_v32  ;;  %v2970_v44 = vmul.f32 %v2458_v33, %v2458_v33  ;;  %v2460_v45 = vsub.f32 %v1648_v34, %v4965_v16  ;;  %v1652_v46 = vmul.f32 %v4304_v37, %v412_v29  ;;  %4325 = vrcp.f32 %v935_v30  ;;  %v423_v32 = vld [vmem:[%s4956_s23 + $0x710] sm:$0xff]  ;;  %v946_v33 = vld [vmem:[%s4942_s19 + $0x768] sm:$0xff] }
  0xf5   : > { %v4308_v49 = vpop.eup %4307  ;;  %3482 = vst.msk [vmem:[%s4980_s26 + $0x690] sm:$0xff] %vm3271_vm0, %v2969_v38  ;;  %v2971_v50 = vmul.f32 %v2459_v39, %v2459_v39  ;;  %v2461_v51 = vsub.f32 %v1650_v40, %v4965_v16  ;;  %v1654_v52 = vmul.f32 %v4306_v43, %v413_v35  ;;  %4327 = vrcp.f32 %v936_v36  ;;  %v424_v38 = vld [vmem:[%s4956_s23 + $0x718] sm:$0xff]  ;;  %v947_v39 = vld [vmem:[%s4942_s19 + $0x770] sm:$0xff] }
  0xf6   : > { %v4310_v55 = vpop.eup %4309  ;;  %3483 = vst.msk [vmem:[%s4980_s26 + $0x698] sm:$0xff] %vm3271_vm0, %v2970_v44  ;;  %v2972_v56 = vmul.f32 %v2460_v45, %v2460_v45  ;;  %v2462_v57 = vsub.f32 %v1652_v46, %v4965_v16  ;;  %v1656_v58 = vmul.f32 %v4308_v49, %v414_v41  ;;  %4329 = vrcp.f32 %v937_v42  ;;  %v425_v44 = vld [vmem:[%s4956_s23 + $0x720] sm:$0xff]  ;;  %v948_v45 = vld [vmem:[%s4942_s19 + $0x778] sm:$0xff] }
  0xf7   : > { %v4312_v61 = vpop.eup %4311  ;;  %3484 = vst.msk [vmem:[%s4980_s26 + $0x6a0] sm:$0xff] %vm3271_vm0, %v2971_v50  ;;  %v2973_v62 = vmul.f32 %v2461_v51, %v2461_v51  ;;  %v2463_v63 = vsub.f32 %v1654_v52, %v4965_v16  ;;  %v1658_v0 = vmul.f32 %v4310_v55, %v415_v47  ;;  %4331 = vrcp.f32 %v938_v48  ;;  %v426_v50 = vld [vmem:[%s4956_s23 + $0x728] sm:$0xff]  ;;  %v949_v51 = vld [vmem:[%s4942_s19 + $0x780] sm:$0xff] }
  0xf8   : > { %v4314_v3 = vpop.eup %4313  ;;  %3485 = vst.msk [vmem:[%s4980_s26 + $0x6a8] sm:$0xff] %vm3271_vm0, %v2972_v56  ;;  %v2974_v4 = vmul.f32 %v2462_v57, %v2462_v57  ;;  %v2464_v5 = vsub.f32 %v1656_v58, %v4965_v16  ;;  %v1660_v6 = vmul.f32 %v4312_v61, %v416_v53  ;;  %4333 = vrcp.f32 %v939_v54  ;;  %v427_v56 = vld [vmem:[%s4956_s23 + $0x730] sm:$0xff]  ;;  %v950_v57 = vld [vmem:[%s4942_s19 + $0x788] sm:$0xff] }
  0xf9   : > { %v4316_v9 = vpop.eup %4315  ;;  %3486 = vst.msk [vmem:[%s4980_s26 + $0x6b0] sm:$0xff] %vm3271_vm0, %v2973_v62  ;;  %v2975_v10 = vmul.f32 %v2463_v63, %v2463_v63  ;;  %v2465_v11 = vsub.f32 %v1658_v0, %v4965_v16  ;;  %v1662_v12 = vmul.f32 %v4314_v3, %v417_v59  ;;  %4335 = vrcp.f32 %v940_v60  ;;  %v428_v62 = vld [vmem:[%s4956_s23 + $0x738] sm:$0xff]  ;;  %v951_v63 = vld [vmem:[%s4942_s19 + $0x790] sm:$0xff] }
  0xfa   : > { %v4318_v15 = vpop.eup %4317  ;;  %3487 = vst.msk [vmem:[%s4980_s26 + $0x6b8] sm:$0xff] %vm3271_vm0, %v2974_v4  ;;  %v2976_v17 = vmul.f32 %v2464_v5, %v2464_v5  ;;  %v2466_v18 = vsub.f32 %v1660_v6, %v4965_v16  ;;  %v1664_v19 = vmul.f32 %v4316_v9, %v418_v1  ;;  %4337 = vrcp.f32 %v941_v2  ;;  %v429_v4 = vld [vmem:[%s4956_s23 + $0x740] sm:$0xff]  ;;  %v952_v5 = vld [vmem:[%s4942_s19 + $0x798] sm:$0xff] }
  0xfb   : > { %v4320_v22 = vpop.eup %4319  ;;  %3488 = vst.msk [vmem:[%s4980_s26 + $0x6c0] sm:$0xff] %vm3271_vm0, %v2975_v10  ;;  %v2977_v23 = vmul.f32 %v2465_v11, %v2465_v11  ;;  %v2467_v24 = vsub.f32 %v1662_v12, %v4965_v16  ;;  %v1666_v25 = vmul.f32 %v4318_v15, %v419_v7  ;;  %4339 = vrcp.f32 %v942_v8  ;;  %v430_v10 = vld [vmem:[%s4956_s23 + $0x748] sm:$0xff]  ;;  %v953_v11 = vld [vmem:[%s4942_s19 + $0x7a0] sm:$0xff] }
  0xfc   : > { %v4322_v28 = vpop.eup %4321  ;;  %3489 = vst.msk [vmem:[%s4980_s26 + $0x6c8] sm:$0xff] %vm3271_vm0, %v2976_v17  ;;  %v2978_v29 = vmul.f32 %v2466_v18, %v2466_v18  ;;  %v2468_v30 = vsub.f32 %v1664_v19, %v4965_v16  ;;  %v1668_v31 = vmul.f32 %v4320_v22, %v420_v13  ;;  %4341 = vrcp.f32 %v943_v14  ;;  %v431_v17 = vld [vmem:[%s4956_s23 + $0x750] sm:$0xff]  ;;  %v954_v18 = vld [vmem:[%s4942_s19 + $0x7a8] sm:$0xff] }
  0xfd   : > { %v4324_v34 = vpop.eup %4323  ;;  %3490 = vst.msk [vmem:[%s4980_s26 + $0x6d0] sm:$0xff] %vm3271_vm0, %v2977_v23  ;;  %v2979_v35 = vmul.f32 %v2467_v24, %v2467_v24  ;;  %v2469_v36 = vsub.f32 %v1666_v25, %v4965_v16  ;;  %v1670_v37 = vmul.f32 %v4322_v28, %v421_v20  ;;  %4343 = vrcp.f32 %v944_v21  ;;  %v432_v23 = vld [vmem:[%s4956_s23 + $0x758] sm:$0xff]  ;;  %v955_v24 = vld [vmem:[%s4942_s19 + $0x7b0] sm:$0xff] }
  0xfe   : > { %v4326_v40 = vpop.eup %4325  ;;  %3491 = vst.msk [vmem:[%s4980_s26 + $0x6d8] sm:$0xff] %vm3271_vm0, %v2978_v29  ;;  %v2980_v41 = vmul.f32 %v2468_v30, %v2468_v30  ;;  %v2470_v42 = vsub.f32 %v1668_v31, %v4965_v16  ;;  %v1672_v43 = vmul.f32 %v4324_v34, %v422_v26  ;;  %4345 = vrcp.f32 %v945_v27  ;;  %v433_v29 = vld [vmem:[%s4956_s23 + $0x760] sm:$0xff]  ;;  %v956_v30 = vld [vmem:[%s4942_s19 + $0x7b8] sm:$0xff] }
  0xff   : > { %v4328_v46 = vpop.eup %4327  ;;  %3492 = vst.msk [vmem:[%s4980_s26 + $0x6e0] sm:$0xff] %vm3271_vm0, %v2979_v35  ;;  %v2981_v47 = vmul.f32 %v2469_v36, %v2469_v36  ;;  %v2471_v48 = vsub.f32 %v1670_v37, %v4965_v16  ;;  %v1674_v49 = vmul.f32 %v4326_v40, %v423_v32  ;;  %4347 = vrcp.f32 %v946_v33  ;;  %v434_v35 = vld [vmem:[%s4956_s23 + $0x768] sm:$0xff]  ;;  %v957_v36 = vld [vmem:[%s4942_s19 + $0x7c0] sm:$0xff] }
 0x100   : > { %v4330_v52 = vpop.eup %4329  ;;  %3493 = vst.msk [vmem:[%s4980_s26 + $0x6e8] sm:$0xff] %vm3271_vm0, %v2980_v41  ;;  %v2982_v53 = vmul.f32 %v2470_v42, %v2470_v42  ;;  %v2472_v54 = vsub.f32 %v1672_v43, %v4965_v16  ;;  %v1676_v55 = vmul.f32 %v4328_v46, %v424_v38  ;;  %4349 = vrcp.f32 %v947_v39  ;;  %v435_v41 = vld [vmem:[%s4956_s23 + $0x770] sm:$0xff]  ;;  %v958_v42 = vld [vmem:[%s4942_s19 + $0x7c8] sm:$0xff] }
 0x101   : > { %v4332_v58 = vpop.eup %4331  ;;  %3494 = vst.msk [vmem:[%s4980_s26 + $0x6f0] sm:$0xff] %vm3271_vm0, %v2981_v47  ;;  %v2983_v59 = vmul.f32 %v2471_v48, %v2471_v48  ;;  %v2473_v60 = vsub.f32 %v1674_v49, %v4965_v16  ;;  %v1678_v61 = vmul.f32 %v4330_v52, %v425_v44  ;;  %4351 = vrcp.f32 %v948_v45  ;;  %v436_v47 = vld [vmem:[%s4956_s23 + $0x778] sm:$0xff]  ;;  %v959_v48 = vld [vmem:[%s4942_s19 + $0x7d0] sm:$0xff] }
 0x102   : > { %v4334_v0 = vpop.eup %4333  ;;  %3495 = vst.msk [vmem:[%s4980_s26 + $0x6f8] sm:$0xff] %vm3271_vm0, %v2982_v53  ;;  %v2984_v1 = vmul.f32 %v2472_v54, %v2472_v54  ;;  %v2474_v2 = vsub.f32 %v1676_v55, %v4965_v16  ;;  %v1680_v3 = vmul.f32 %v4332_v58, %v426_v50  ;;  %4353 = vrcp.f32 %v949_v51  ;;  %v437_v53 = vld [vmem:[%s4956_s23 + $0x780] sm:$0xff]  ;;  %v960_v54 = vld [vmem:[%s4942_s19 + $0x7d8] sm:$0xff] }
 0x103   : > { %v4336_v6 = vpop.eup %4335  ;;  %3496 = vst.msk [vmem:[%s4980_s26 + $0x700] sm:$0xff] %vm3271_vm0, %v2983_v59  ;;  %v2985_v7 = vmul.f32 %v2473_v60, %v2473_v60  ;;  %v2475_v8 = vsub.f32 %v1678_v61, %v4965_v16  ;;  %v1682_v9 = vmul.f32 %v4334_v0, %v427_v56  ;;  %4355 = vrcp.f32 %v950_v57  ;;  %v438_v59 = vld [vmem:[%s4956_s23 + $0x788] sm:$0xff]  ;;  %v961_v60 = vld [vmem:[%s4942_s19 + $0x7e0] sm:$0xff] }
 0x104   : > { %v4338_v12 = vpop.eup %4337  ;;  %3497 = vst.msk [vmem:[%s4980_s26 + $0x708] sm:$0xff] %vm3271_vm0, %v2984_v1  ;;  %v2986_v13 = vmul.f32 %v2474_v2, %v2474_v2  ;;  %v2476_v14 = vsub.f32 %v1680_v3, %v4965_v16  ;;  %v1684_v15 = vmul.f32 %v4336_v6, %v428_v62  ;;  %4357 = vrcp.f32 %v951_v63  ;;  %v439_v1 = vld [vmem:[%s4956_s23 + $0x790] sm:$0xff]  ;;  %v962_v2 = vld [vmem:[%s4942_s19 + $0x7e8] sm:$0xff] }
 0x105   : > { %v4340_v19 = vpop.eup %4339  ;;  %3498 = vst.msk [vmem:[%s4980_s26 + $0x710] sm:$0xff] %vm3271_vm0, %v2985_v7  ;;  %v2987_v20 = vmul.f32 %v2475_v8, %v2475_v8  ;;  %v2477_v21 = vsub.f32 %v1682_v9, %v4965_v16  ;;  %v1686_v22 = vmul.f32 %v4338_v12, %v429_v4  ;;  %4359 = vrcp.f32 %v952_v5  ;;  %v440_v7 = vld [vmem:[%s4956_s23 + $0x798] sm:$0xff]  ;;  %v963_v8 = vld [vmem:[%s4942_s19 + $0x7f0] sm:$0xff] }
 0x106   : > { %v4342_v25 = vpop.eup %4341  ;;  %3499 = vst.msk [vmem:[%s4980_s26 + $0x718] sm:$0xff] %vm3271_vm0, %v2986_v13  ;;  %v2988_v26 = vmul.f32 %v2476_v14, %v2476_v14  ;;  %v2478_v27 = vsub.f32 %v1684_v15, %v4965_v16  ;;  %v1688_v28 = vmul.f32 %v4340_v19, %v430_v10  ;;  %4361 = vrcp.f32 %v953_v11  ;;  %v441_v13 = vld [vmem:[%s4956_s23 + $0x7a0] sm:$0xff]  ;;  %v964_v14 = vld [vmem:[%s4942_s19 + $0x7f8] sm:$0xff] }
 0x107   : > { %v4344_v31 = vpop.eup %4343  ;;  %3500 = vst.msk [vmem:[%s4980_s26 + $0x720] sm:$0xff] %vm3271_vm0, %v2987_v20  ;;  %v2989_v32 = vmul.f32 %v2477_v21, %v2477_v21  ;;  %v2479_v33 = vsub.f32 %v1686_v22, %v4965_v16  ;;  %v1690_v34 = vmul.f32 %v4342_v25, %v431_v17  ;;  %4363 = vrcp.f32 %v954_v18  ;;  %v442_v20 = vld [vmem:[%s4956_s23 + $0x7a8] sm:$0xff]  ;;  %v965_v21 = vld [vmem:[%s4942_s19 + $0x800] sm:$0xff] }
 0x108   : > { %v4346_v37 = vpop.eup %4345  ;;  %3501 = vst.msk [vmem:[%s4980_s26 + $0x728] sm:$0xff] %vm3271_vm0, %v2988_v26  ;;  %v2990_v38 = vmul.f32 %v2478_v27, %v2478_v27  ;;  %v2480_v39 = vsub.f32 %v1688_v28, %v4965_v16  ;;  %v1692_v40 = vmul.f32 %v4344_v31, %v432_v23  ;;  %4365 = vrcp.f32 %v955_v24  ;;  %v443_v26 = vld [vmem:[%s4956_s23 + $0x7b0] sm:$0xff]  ;;  %v966_v27 = vld [vmem:[%s4942_s19 + $0x808] sm:$0xff] }
 0x109   : > { %v4348_v43 = vpop.eup %4347  ;;  %3502 = vst.msk [vmem:[%s4980_s26 + $0x730] sm:$0xff] %vm3271_vm0, %v2989_v32  ;;  %v2991_v44 = vmul.f32 %v2479_v33, %v2479_v33  ;;  %v2481_v45 = vsub.f32 %v1690_v34, %v4965_v16  ;;  %v1694_v46 = vmul.f32 %v4346_v37, %v433_v29  ;;  %4367 = vrcp.f32 %v956_v30  ;;  %v444_v32 = vld [vmem:[%s4956_s23 + $0x7b8] sm:$0xff]  ;;  %v967_v33 = vld [vmem:[%s4942_s19 + $0x810] sm:$0xff] }
 0x10a   : > { %v4350_v49 = vpop.eup %4349  ;;  %3503 = vst.msk [vmem:[%s4980_s26 + $0x738] sm:$0xff] %vm3271_vm0, %v2990_v38  ;;  %v2992_v50 = vmul.f32 %v2480_v39, %v2480_v39  ;;  %v2482_v51 = vsub.f32 %v1692_v40, %v4965_v16  ;;  %v1696_v52 = vmul.f32 %v4348_v43, %v434_v35  ;;  %4369 = vrcp.f32 %v957_v36  ;;  %v445_v38 = vld [vmem:[%s4956_s23 + $0x7c0] sm:$0xff]  ;;  %v968_v39 = vld [vmem:[%s4942_s19 + $0x818] sm:$0xff] }
 0x10b   : > { %v4352_v55 = vpop.eup %4351  ;;  %3504 = vst.msk [vmem:[%s4980_s26 + $0x740] sm:$0xff] %vm3271_vm0, %v2991_v44  ;;  %v2993_v56 = vmul.f32 %v2481_v45, %v2481_v45  ;;  %v2483_v57 = vsub.f32 %v1694_v46, %v4965_v16  ;;  %v1698_v58 = vmul.f32 %v4350_v49, %v435_v41  ;;  %4371 = vrcp.f32 %v958_v42  ;;  %v446_v44 = vld [vmem:[%s4956_s23 + $0x7c8] sm:$0xff]  ;;  %v969_v45 = vld [vmem:[%s4942_s19 + $0x820] sm:$0xff] }
 0x10c   : > { %v4354_v61 = vpop.eup %4353  ;;  %3505 = vst.msk [vmem:[%s4980_s26 + $0x748] sm:$0xff] %vm3271_vm0, %v2992_v50  ;;  %v2994_v62 = vmul.f32 %v2482_v51, %v2482_v51  ;;  %v2484_v63 = vsub.f32 %v1696_v52, %v4965_v16  ;;  %v1700_v0 = vmul.f32 %v4352_v55, %v436_v47  ;;  %4373 = vrcp.f32 %v959_v48  ;;  %v447_v50 = vld [vmem:[%s4956_s23 + $0x7d0] sm:$0xff]  ;;  %v970_v51 = vld [vmem:[%s4942_s19 + $0x828] sm:$0xff] }
 0x10d   : > { %v4356_v3 = vpop.eup %4355  ;;  %3506 = vst.msk [vmem:[%s4980_s26 + $0x750] sm:$0xff] %vm3271_vm0, %v2993_v56  ;;  %v2995_v4 = vmul.f32 %v2483_v57, %v2483_v57  ;;  %v2485_v5 = vsub.f32 %v1698_v58, %v4965_v16  ;;  %v1702_v6 = vmul.f32 %v4354_v61, %v437_v53  ;;  %4375 = vrcp.f32 %v960_v54  ;;  %v448_v56 = vld [vmem:[%s4956_s23 + $0x7d8] sm:$0xff]  ;;  %v971_v57 = vld [vmem:[%s4942_s19 + $0x830] sm:$0xff] }
 0x10e   : > { %v4358_v9 = vpop.eup %4357  ;;  %3507 = vst.msk [vmem:[%s4980_s26 + $0x758] sm:$0xff] %vm3271_vm0, %v2994_v62  ;;  %v2996_v10 = vmul.f32 %v2484_v63, %v2484_v63  ;;  %v2486_v11 = vsub.f32 %v1700_v0, %v4965_v16  ;;  %v1704_v12 = vmul.f32 %v4356_v3, %v438_v59  ;;  %4377 = vrcp.f32 %v961_v60  ;;  %v449_v62 = vld [vmem:[%s4956_s23 + $0x7e0] sm:$0xff]  ;;  %v972_v63 = vld [vmem:[%s4942_s19 + $0x838] sm:$0xff] }
 0x10f   : > { %v4360_v15 = vpop.eup %4359  ;;  %3508 = vst.msk [vmem:[%s4980_s26 + $0x760] sm:$0xff] %vm3271_vm0, %v2995_v4  ;;  %v2997_v17 = vmul.f32 %v2485_v5, %v2485_v5  ;;  %v2487_v18 = vsub.f32 %v1702_v6, %v4965_v16  ;;  %v1706_v19 = vmul.f32 %v4358_v9, %v439_v1  ;;  %4379 = vrcp.f32 %v962_v2  ;;  %v450_v4 = vld [vmem:[%s4956_s23 + $0x7e8] sm:$0xff]  ;;  %v973_v5 = vld [vmem:[%s4942_s19 + $0x840] sm:$0xff] }
 0x110   : > { %v4362_v22 = vpop.eup %4361  ;;  %3509 = vst.msk [vmem:[%s4980_s26 + $0x768] sm:$0xff] %vm3271_vm0, %v2996_v10  ;;  %v2998_v23 = vmul.f32 %v2486_v11, %v2486_v11  ;;  %v2488_v24 = vsub.f32 %v1704_v12, %v4965_v16  ;;  %v1708_v25 = vmul.f32 %v4360_v15, %v440_v7  ;;  %4381 = vrcp.f32 %v963_v8  ;;  %v451_v10 = vld [vmem:[%s4956_s23 + $0x7f0] sm:$0xff]  ;;  %v974_v11 = vld [vmem:[%s4942_s19 + $0x848] sm:$0xff] }
 0x111   : > { %v4364_v28 = vpop.eup %4363  ;;  %3510 = vst.msk [vmem:[%s4980_s26 + $0x770] sm:$0xff] %vm3271_vm0, %v2997_v17  ;;  %v2999_v29 = vmul.f32 %v2487_v18, %v2487_v18  ;;  %v2489_v30 = vsub.f32 %v1706_v19, %v4965_v16  ;;  %v1710_v31 = vmul.f32 %v4362_v22, %v441_v13  ;;  %4383 = vrcp.f32 %v964_v14  ;;  %v452_v17 = vld [vmem:[%s4956_s23 + $0x7f8] sm:$0xff]  ;;  %v975_v18 = vld [vmem:[%s4942_s19 + $0x850] sm:$0xff] }
 0x112   : > { %v4366_v34 = vpop.eup %4365  ;;  %3511 = vst.msk [vmem:[%s4980_s26 + $0x778] sm:$0xff] %vm3271_vm0, %v2998_v23  ;;  %v3000_v35 = vmul.f32 %v2488_v24, %v2488_v24  ;;  %v2490_v36 = vsub.f32 %v1708_v25, %v4965_v16  ;;  %v1712_v37 = vmul.f32 %v4364_v28, %v442_v20  ;;  %4385 = vrcp.f32 %v965_v21  ;;  %v453_v23 = vld [vmem:[%s4956_s23 + $0x800] sm:$0xff]  ;;  %v976_v24 = vld [vmem:[%s4942_s19 + $0x858] sm:$0xff] }
 0x113   : > { %v4368_v40 = vpop.eup %4367  ;;  %3512 = vst.msk [vmem:[%s4980_s26 + $0x780] sm:$0xff] %vm3271_vm0, %v2999_v29  ;;  %v3001_v41 = vmul.f32 %v2489_v30, %v2489_v30  ;;  %v2491_v42 = vsub.f32 %v1710_v31, %v4965_v16  ;;  %v1714_v43 = vmul.f32 %v4366_v34, %v443_v26  ;;  %4387 = vrcp.f32 %v966_v27  ;;  %v454_v29 = vld [vmem:[%s4956_s23 + $0x808] sm:$0xff]  ;;  %v977_v30 = vld [vmem:[%s4942_s19 + $0x860] sm:$0xff] }
 0x114   : > { %v4370_v46 = vpop.eup %4369  ;;  %3513 = vst.msk [vmem:[%s4980_s26 + $0x788] sm:$0xff] %vm3271_vm0, %v3000_v35  ;;  %v3002_v47 = vmul.f32 %v2490_v36, %v2490_v36  ;;  %v2492_v48 = vsub.f32 %v1712_v37, %v4965_v16  ;;  %v1716_v49 = vmul.f32 %v4368_v40, %v444_v32  ;;  %4389 = vrcp.f32 %v967_v33  ;;  %v455_v35 = vld [vmem:[%s4956_s23 + $0x810] sm:$0xff]  ;;  %v978_v36 = vld [vmem:[%s4942_s19 + $0x868] sm:$0xff] }
 0x115   : > { %v4372_v52 = vpop.eup %4371  ;;  %3514 = vst.msk [vmem:[%s4980_s26 + $0x790] sm:$0xff] %vm3271_vm0, %v3001_v41  ;;  %v3003_v53 = vmul.f32 %v2491_v42, %v2491_v42  ;;  %v2493_v54 = vsub.f32 %v1714_v43, %v4965_v16  ;;  %v1718_v55 = vmul.f32 %v4370_v46, %v445_v38  ;;  %4391 = vrcp.f32 %v968_v39  ;;  %v456_v41 = vld [vmem:[%s4956_s23 + $0x818] sm:$0xff]  ;;  %v979_v42 = vld [vmem:[%s4942_s19 + $0x870] sm:$0xff] }
 0x116   : > { %v4374_v58 = vpop.eup %4373  ;;  %3515 = vst.msk [vmem:[%s4980_s26 + $0x798] sm:$0xff] %vm3271_vm0, %v3002_v47  ;;  %v3004_v59 = vmul.f32 %v2492_v48, %v2492_v48  ;;  %v2494_v60 = vsub.f32 %v1716_v49, %v4965_v16  ;;  %v1720_v61 = vmul.f32 %v4372_v52, %v446_v44  ;;  %4393 = vrcp.f32 %v969_v45  ;;  %v457_v47 = vld [vmem:[%s4956_s23 + $0x820] sm:$0xff]  ;;  %v980_v48 = vld [vmem:[%s4942_s19 + $0x878] sm:$0xff] }
 0x117   : > { %v4376_v0 = vpop.eup %4375  ;;  %3516 = vst.msk [vmem:[%s4980_s26 + $0x7a0] sm:$0xff] %vm3271_vm0, %v3003_v53  ;;  %v3005_v1 = vmul.f32 %v2493_v54, %v2493_v54  ;;  %v2495_v2 = vsub.f32 %v1718_v55, %v4965_v16  ;;  %v1722_v3 = vmul.f32 %v4374_v58, %v447_v50  ;;  %4395 = vrcp.f32 %v970_v51  ;;  %v458_v53 = vld [vmem:[%s4956_s23 + $0x828] sm:$0xff]  ;;  %v981_v54 = vld [vmem:[%s4942_s19 + $0x880] sm:$0xff] }
 0x118   : > { %v4378_v6 = vpop.eup %4377  ;;  %3517 = vst.msk [vmem:[%s4980_s26 + $0x7a8] sm:$0xff] %vm3271_vm0, %v3004_v59  ;;  %v3006_v7 = vmul.f32 %v2494_v60, %v2494_v60  ;;  %v2496_v8 = vsub.f32 %v1720_v61, %v4965_v16  ;;  %v1724_v9 = vmul.f32 %v4376_v0, %v448_v56  ;;  %4397 = vrcp.f32 %v971_v57  ;;  %v459_v59 = vld [vmem:[%s4956_s23 + $0x830] sm:$0xff]  ;;  %v982_v60 = vld [vmem:[%s4942_s19 + $0x888] sm:$0xff] }
 0x119   : > { %v4380_v12 = vpop.eup %4379  ;;  %3518 = vst.msk [vmem:[%s4980_s26 + $0x7b0] sm:$0xff] %vm3271_vm0, %v3005_v1  ;;  %v3007_v13 = vmul.f32 %v2495_v2, %v2495_v2  ;;  %v2497_v14 = vsub.f32 %v1722_v3, %v4965_v16  ;;  %v1726_v15 = vmul.f32 %v4378_v6, %v449_v62  ;;  %4399 = vrcp.f32 %v972_v63  ;;  %v460_v1 = vld [vmem:[%s4956_s23 + $0x838] sm:$0xff]  ;;  %v983_v2 = vld [vmem:[%s4942_s19 + $0x890] sm:$0xff] }
 0x11a   : > { %v4382_v19 = vpop.eup %4381  ;;  %3519 = vst.msk [vmem:[%s4980_s26 + $0x7b8] sm:$0xff] %vm3271_vm0, %v3006_v7  ;;  %v3008_v20 = vmul.f32 %v2496_v8, %v2496_v8  ;;  %v2498_v21 = vsub.f32 %v1724_v9, %v4965_v16  ;;  %v1728_v22 = vmul.f32 %v4380_v12, %v450_v4  ;;  %4401 = vrcp.f32 %v973_v5  ;;  %v461_v7 = vld [vmem:[%s4956_s23 + $0x840] sm:$0xff]  ;;  %v984_v8 = vld [vmem:[%s4942_s19 + $0x898] sm:$0xff] }
 0x11b   : > { %v4384_v25 = vpop.eup %4383  ;;  %3520 = vst.msk [vmem:[%s4980_s26 + $0x7c0] sm:$0xff] %vm3271_vm0, %v3007_v13  ;;  %v3009_v26 = vmul.f32 %v2497_v14, %v2497_v14  ;;  %v2499_v27 = vsub.f32 %v1726_v15, %v4965_v16  ;;  %v1730_v28 = vmul.f32 %v4382_v19, %v451_v10  ;;  %4403 = vrcp.f32 %v974_v11  ;;  %v462_v13 = vld [vmem:[%s4956_s23 + $0x848] sm:$0xff]  ;;  %v985_v14 = vld [vmem:[%s4942_s19 + $0x8a0] sm:$0xff] }
 0x11c   : > { %v4386_v31 = vpop.eup %4385  ;;  %3521 = vst.msk [vmem:[%s4980_s26 + $0x7c8] sm:$0xff] %vm3271_vm0, %v3008_v20  ;;  %v3010_v32 = vmul.f32 %v2498_v21, %v2498_v21  ;;  %v2500_v33 = vsub.f32 %v1728_v22, %v4965_v16  ;;  %v1732_v34 = vmul.f32 %v4384_v25, %v452_v17  ;;  %4405 = vrcp.f32 %v975_v18  ;;  %v463_v20 = vld [vmem:[%s4956_s23 + $0x850] sm:$0xff]  ;;  %v986_v21 = vld [vmem:[%s4942_s19 + $0x8a8] sm:$0xff] }
 0x11d   : > { %v4388_v37 = vpop.eup %4387  ;;  %3522 = vst.msk [vmem:[%s4980_s26 + $0x7d0] sm:$0xff] %vm3271_vm0, %v3009_v26  ;;  %v3011_v38 = vmul.f32 %v2499_v27, %v2499_v27  ;;  %v2501_v39 = vsub.f32 %v1730_v28, %v4965_v16  ;;  %v1734_v40 = vmul.f32 %v4386_v31, %v453_v23  ;;  %4407 = vrcp.f32 %v976_v24  ;;  %v464_v26 = vld [vmem:[%s4956_s23 + $0x858] sm:$0xff]  ;;  %v987_v27 = vld [vmem:[%s4942_s19 + $0x8b0] sm:$0xff] }
 0x11e   : > { %v4390_v43 = vpop.eup %4389  ;;  %3523 = vst.msk [vmem:[%s4980_s26 + $0x7d8] sm:$0xff] %vm3271_vm0, %v3010_v32  ;;  %v3012_v44 = vmul.f32 %v2500_v33, %v2500_v33  ;;  %v2502_v45 = vsub.f32 %v1732_v34, %v4965_v16  ;;  %v1736_v46 = vmul.f32 %v4388_v37, %v454_v29  ;;  %4409 = vrcp.f32 %v977_v30  ;;  %v465_v32 = vld [vmem:[%s4956_s23 + $0x860] sm:$0xff]  ;;  %v988_v33 = vld [vmem:[%s4942_s19 + $0x8b8] sm:$0xff] }
 0x11f   : > { %v4392_v49 = vpop.eup %4391  ;;  %3524 = vst.msk [vmem:[%s4980_s26 + $0x7e0] sm:$0xff] %vm3271_vm0, %v3011_v38  ;;  %v3013_v50 = vmul.f32 %v2501_v39, %v2501_v39  ;;  %v2503_v51 = vsub.f32 %v1734_v40, %v4965_v16  ;;  %v1738_v52 = vmul.f32 %v4390_v43, %v455_v35  ;;  %4411 = vrcp.f32 %v978_v36  ;;  %v466_v38 = vld [vmem:[%s4956_s23 + $0x868] sm:$0xff]  ;;  %v989_v39 = vld [vmem:[%s4942_s19 + $0x8c0] sm:$0xff] }
 0x120   : > { %v4394_v55 = vpop.eup %4393  ;;  %3525 = vst.msk [vmem:[%s4980_s26 + $0x7e8] sm:$0xff] %vm3271_vm0, %v3012_v44  ;;  %v3014_v56 = vmul.f32 %v2502_v45, %v2502_v45  ;;  %v2504_v57 = vsub.f32 %v1736_v46, %v4965_v16  ;;  %v1740_v58 = vmul.f32 %v4392_v49, %v456_v41  ;;  %4413 = vrcp.f32 %v979_v42  ;;  %v467_v44 = vld [vmem:[%s4956_s23 + $0x870] sm:$0xff]  ;;  %v990_v45 = vld [vmem:[%s4942_s19 + $0x8c8] sm:$0xff] }
 0x121   : > { %v4396_v61 = vpop.eup %4395  ;;  %3526 = vst.msk [vmem:[%s4980_s26 + $0x7f0] sm:$0xff] %vm3271_vm0, %v3013_v50  ;;  %v3015_v62 = vmul.f32 %v2503_v51, %v2503_v51  ;;  %v2505_v63 = vsub.f32 %v1738_v52, %v4965_v16  ;;  %v1742_v0 = vmul.f32 %v4394_v55, %v457_v47  ;;  %4415 = vrcp.f32 %v980_v48  ;;  %v468_v50 = vld [vmem:[%s4956_s23 + $0x878] sm:$0xff]  ;;  %v991_v51 = vld [vmem:[%s4942_s19 + $0x8d0] sm:$0xff] }
 0x122   : > { %v4398_v3 = vpop.eup %4397  ;;  %3527 = vst.msk [vmem:[%s4980_s26 + $0x7f8] sm:$0xff] %vm3271_vm0, %v3014_v56  ;;  %v3016_v4 = vmul.f32 %v2504_v57, %v2504_v57  ;;  %v2506_v5 = vsub.f32 %v1740_v58, %v4965_v16  ;;  %v1744_v6 = vmul.f32 %v4396_v61, %v458_v53  ;;  %4417 = vrcp.f32 %v981_v54  ;;  %v469_v56 = vld [vmem:[%s4956_s23 + $0x880] sm:$0xff]  ;;  %v992_v57 = vld [vmem:[%s4942_s19 + $0x8d8] sm:$0xff] }
 0x123   : > { %v4400_v9 = vpop.eup %4399  ;;  %3528 = vst.msk [vmem:[%s4980_s26 + $0x800] sm:$0xff] %vm3271_vm0, %v3015_v62  ;;  %v3017_v10 = vmul.f32 %v2505_v63, %v2505_v63  ;;  %v2507_v11 = vsub.f32 %v1742_v0, %v4965_v16  ;;  %v1746_v12 = vmul.f32 %v4398_v3, %v459_v59  ;;  %4419 = vrcp.f32 %v982_v60  ;;  %v470_v62 = vld [vmem:[%s4956_s23 + $0x888] sm:$0xff]  ;;  %v993_v63 = vld [vmem:[%s4942_s19 + $0x8e0] sm:$0xff] }
 0x124   : > { %v4402_v15 = vpop.eup %4401  ;;  %3529 = vst.msk [vmem:[%s4980_s26 + $0x808] sm:$0xff] %vm3271_vm0, %v3016_v4  ;;  %v3018_v17 = vmul.f32 %v2506_v5, %v2506_v5  ;;  %v2508_v18 = vsub.f32 %v1744_v6, %v4965_v16  ;;  %v1748_v19 = vmul.f32 %v4400_v9, %v460_v1  ;;  %4421 = vrcp.f32 %v983_v2  ;;  %v471_v4 = vld [vmem:[%s4956_s23 + $0x890] sm:$0xff]  ;;  %v994_v5 = vld [vmem:[%s4942_s19 + $0x8e8] sm:$0xff] }
 0x125   : > { %v4404_v22 = vpop.eup %4403  ;;  %3530 = vst.msk [vmem:[%s4980_s26 + $0x810] sm:$0xff] %vm3271_vm0, %v3017_v10  ;;  %v3019_v23 = vmul.f32 %v2507_v11, %v2507_v11  ;;  %v2509_v24 = vsub.f32 %v1746_v12, %v4965_v16  ;;  %v1750_v25 = vmul.f32 %v4402_v15, %v461_v7  ;;  %4423 = vrcp.f32 %v984_v8  ;;  %v472_v10 = vld [vmem:[%s4956_s23 + $0x898] sm:$0xff]  ;;  %v995_v11 = vld [vmem:[%s4942_s19 + $0x8f0] sm:$0xff] }
 0x126   : > { %v4406_v28 = vpop.eup %4405  ;;  %3531 = vst.msk [vmem:[%s4980_s26 + $0x818] sm:$0xff] %vm3271_vm0, %v3018_v17  ;;  %v3020_v29 = vmul.f32 %v2508_v18, %v2508_v18  ;;  %v2510_v30 = vsub.f32 %v1748_v19, %v4965_v16  ;;  %v1752_v31 = vmul.f32 %v4404_v22, %v462_v13  ;;  %4425 = vrcp.f32 %v985_v14  ;;  %v473_v17 = vld [vmem:[%s4956_s23 + $0x8a0] sm:$0xff]  ;;  %v996_v18 = vld [vmem:[%s4942_s19 + $0x8f8] sm:$0xff] }
 0x127   : > { %v4408_v34 = vpop.eup %4407  ;;  %3532 = vst.msk [vmem:[%s4980_s26 + $0x820] sm:$0xff] %vm3271_vm0, %v3019_v23  ;;  %v3021_v35 = vmul.f32 %v2509_v24, %v2509_v24  ;;  %v2511_v36 = vsub.f32 %v1750_v25, %v4965_v16  ;;  %v1754_v37 = vmul.f32 %v4406_v28, %v463_v20  ;;  %4427 = vrcp.f32 %v986_v21  ;;  %v474_v23 = vld [vmem:[%s4956_s23 + $0x8a8] sm:$0xff]  ;;  %v997_v24 = vld [vmem:[%s4942_s19 + $0x900] sm:$0xff] }
 0x128   : > { %v4410_v40 = vpop.eup %4409  ;;  %3533 = vst.msk [vmem:[%s4980_s26 + $0x828] sm:$0xff] %vm3271_vm0, %v3020_v29  ;;  %v3022_v41 = vmul.f32 %v2510_v30, %v2510_v30  ;;  %v2512_v42 = vsub.f32 %v1752_v31, %v4965_v16  ;;  %v1756_v43 = vmul.f32 %v4408_v34, %v464_v26  ;;  %4429 = vrcp.f32 %v987_v27  ;;  %v475_v29 = vld [vmem:[%s4956_s23 + $0x8b0] sm:$0xff]  ;;  %v998_v30 = vld [vmem:[%s4942_s19 + $0x908] sm:$0xff] }
 0x129   : > { %v4412_v46 = vpop.eup %4411  ;;  %3534 = vst.msk [vmem:[%s4980_s26 + $0x830] sm:$0xff] %vm3271_vm0, %v3021_v35  ;;  %v3023_v47 = vmul.f32 %v2511_v36, %v2511_v36  ;;  %v2513_v48 = vsub.f32 %v1754_v37, %v4965_v16  ;;  %v1758_v49 = vmul.f32 %v4410_v40, %v465_v32  ;;  %4431 = vrcp.f32 %v988_v33  ;;  %v476_v35 = vld [vmem:[%s4956_s23 + $0x8b8] sm:$0xff]  ;;  %v999_v36 = vld [vmem:[%s4942_s19 + $0x910] sm:$0xff] }
 0x12a   : > { %v4414_v52 = vpop.eup %4413  ;;  %3535 = vst.msk [vmem:[%s4980_s26 + $0x838] sm:$0xff] %vm3271_vm0, %v3022_v41  ;;  %v3024_v53 = vmul.f32 %v2512_v42, %v2512_v42  ;;  %v2514_v54 = vsub.f32 %v1756_v43, %v4965_v16  ;;  %v1760_v55 = vmul.f32 %v4412_v46, %v466_v38  ;;  %4433 = vrcp.f32 %v989_v39  ;;  %v477_v41 = vld [vmem:[%s4956_s23 + $0x8c0] sm:$0xff]  ;;  %v1000_v42 = vld [vmem:[%s4942_s19 + $0x918] sm:$0xff] }
 0x12b   : > { %v4416_v58 = vpop.eup %4415  ;;  %3536 = vst.msk [vmem:[%s4980_s26 + $0x840] sm:$0xff] %vm3271_vm0, %v3023_v47  ;;  %v3025_v59 = vmul.f32 %v2513_v48, %v2513_v48  ;;  %v2515_v60 = vsub.f32 %v1758_v49, %v4965_v16  ;;  %v1762_v61 = vmul.f32 %v4414_v52, %v467_v44  ;;  %4435 = vrcp.f32 %v990_v45  ;;  %v478_v47 = vld [vmem:[%s4956_s23 + $0x8c8] sm:$0xff]  ;;  %v1001_v48 = vld [vmem:[%s4942_s19 + $0x920] sm:$0xff] }
 0x12c   : > { %v4418_v0 = vpop.eup %4417  ;;  %3537 = vst.msk [vmem:[%s4980_s26 + $0x848] sm:$0xff] %vm3271_vm0, %v3024_v53  ;;  %v3026_v1 = vmul.f32 %v2514_v54, %v2514_v54  ;;  %v2516_v2 = vsub.f32 %v1760_v55, %v4965_v16  ;;  %v1764_v3 = vmul.f32 %v4416_v58, %v468_v50  ;;  %4437 = vrcp.f32 %v991_v51  ;;  %v479_v53 = vld [vmem:[%s4956_s23 + $0x8d0] sm:$0xff]  ;;  %v1002_v54 = vld [vmem:[%s4942_s19 + $0x928] sm:$0xff] }
 0x12d   : > { %v4420_v6 = vpop.eup %4419  ;;  %3538 = vst.msk [vmem:[%s4980_s26 + $0x850] sm:$0xff] %vm3271_vm0, %v3025_v59  ;;  %v3027_v7 = vmul.f32 %v2515_v60, %v2515_v60  ;;  %v2517_v8 = vsub.f32 %v1762_v61, %v4965_v16  ;;  %v1766_v9 = vmul.f32 %v4418_v0, %v469_v56  ;;  %4439 = vrcp.f32 %v992_v57  ;;  %v480_v59 = vld [vmem:[%s4956_s23 + $0x8d8] sm:$0xff]  ;;  %v1003_v60 = vld [vmem:[%s4942_s19 + $0x930] sm:$0xff] }
 0x12e   : > { %v4422_v12 = vpop.eup %4421  ;;  %3539 = vst.msk [vmem:[%s4980_s26 + $0x858] sm:$0xff] %vm3271_vm0, %v3026_v1  ;;  %v3028_v13 = vmul.f32 %v2516_v2, %v2516_v2  ;;  %v2518_v14 = vsub.f32 %v1764_v3, %v4965_v16  ;;  %v1768_v15 = vmul.f32 %v4420_v6, %v470_v62  ;;  %4441 = vrcp.f32 %v993_v63  ;;  %v481_v1 = vld [vmem:[%s4956_s23 + $0x8e0] sm:$0xff]  ;;  %v1004_v2 = vld [vmem:[%s4942_s19 + $0x938] sm:$0xff] }
 0x12f   : > { %v4424_v19 = vpop.eup %4423  ;;  %3540 = vst.msk [vmem:[%s4980_s26 + $0x860] sm:$0xff] %vm3271_vm0, %v3027_v7  ;;  %v3029_v20 = vmul.f32 %v2517_v8, %v2517_v8  ;;  %v2519_v21 = vsub.f32 %v1766_v9, %v4965_v16  ;;  %v1770_v22 = vmul.f32 %v4422_v12, %v471_v4  ;;  %4443 = vrcp.f32 %v994_v5  ;;  %v482_v7 = vld [vmem:[%s4956_s23 + $0x8e8] sm:$0xff]  ;;  %v1005_v8 = vld [vmem:[%s4942_s19 + $0x940] sm:$0xff] }
 0x130   : > { %v4426_v25 = vpop.eup %4425  ;;  %3541 = vst.msk [vmem:[%s4980_s26 + $0x868] sm:$0xff] %vm3271_vm0, %v3028_v13  ;;  %v3030_v26 = vmul.f32 %v2518_v14, %v2518_v14  ;;  %v2520_v27 = vsub.f32 %v1768_v15, %v4965_v16  ;;  %v1772_v28 = vmul.f32 %v4424_v19, %v472_v10  ;;  %4445 = vrcp.f32 %v995_v11  ;;  %v483_v13 = vld [vmem:[%s4956_s23 + $0x8f0] sm:$0xff]  ;;  %v1006_v14 = vld [vmem:[%s4942_s19 + $0x948] sm:$0xff] }
 0x131   : > { %v4428_v31 = vpop.eup %4427  ;;  %3542 = vst.msk [vmem:[%s4980_s26 + $0x870] sm:$0xff] %vm3271_vm0, %v3029_v20  ;;  %v3031_v32 = vmul.f32 %v2519_v21, %v2519_v21  ;;  %v2521_v33 = vsub.f32 %v1770_v22, %v4965_v16  ;;  %v1774_v34 = vmul.f32 %v4426_v25, %v473_v17  ;;  %4447 = vrcp.f32 %v996_v18  ;;  %v484_v20 = vld [vmem:[%s4956_s23 + $0x8f8] sm:$0xff]  ;;  %v1007_v21 = vld [vmem:[%s4942_s19 + $0x950] sm:$0xff] }
 0x132   : > { %v4430_v37 = vpop.eup %4429  ;;  %3543 = vst.msk [vmem:[%s4980_s26 + $0x878] sm:$0xff] %vm3271_vm0, %v3030_v26  ;;  %v3032_v38 = vmul.f32 %v2520_v27, %v2520_v27  ;;  %v2522_v39 = vsub.f32 %v1772_v28, %v4965_v16  ;;  %v1776_v40 = vmul.f32 %v4428_v31, %v474_v23  ;;  %4449 = vrcp.f32 %v997_v24  ;;  %v485_v26 = vld [vmem:[%s4956_s23 + $0x900] sm:$0xff]  ;;  %v1008_v27 = vld [vmem:[%s4942_s19 + $0x958] sm:$0xff] }
 0x133   : > { %v4432_v43 = vpop.eup %4431  ;;  %3544 = vst.msk [vmem:[%s4980_s26 + $0x880] sm:$0xff] %vm3271_vm0, %v3031_v32  ;;  %v3033_v44 = vmul.f32 %v2521_v33, %v2521_v33  ;;  %v2523_v45 = vsub.f32 %v1774_v34, %v4965_v16  ;;  %v1778_v46 = vmul.f32 %v4430_v37, %v475_v29  ;;  %4451 = vrcp.f32 %v998_v30  ;;  %v486_v32 = vld [vmem:[%s4956_s23 + $0x908] sm:$0xff]  ;;  %v1009_v33 = vld [vmem:[%s4942_s19 + $0x960] sm:$0xff] }
 0x134   : > { %v4434_v49 = vpop.eup %4433  ;;  %3545 = vst.msk [vmem:[%s4980_s26 + $0x888] sm:$0xff] %vm3271_vm0, %v3032_v38  ;;  %v3034_v50 = vmul.f32 %v2522_v39, %v2522_v39  ;;  %v2524_v51 = vsub.f32 %v1776_v40, %v4965_v16  ;;  %v1780_v52 = vmul.f32 %v4432_v43, %v476_v35  ;;  %4453 = vrcp.f32 %v999_v36  ;;  %v487_v38 = vld [vmem:[%s4956_s23 + $0x910] sm:$0xff]  ;;  %v1010_v39 = vld [vmem:[%s4942_s19 + $0x968] sm:$0xff] }
 0x135   : > { %v4436_v55 = vpop.eup %4435  ;;  %3546 = vst.msk [vmem:[%s4980_s26 + $0x890] sm:$0xff] %vm3271_vm0, %v3033_v44  ;;  %v3035_v56 = vmul.f32 %v2523_v45, %v2523_v45  ;;  %v2525_v57 = vsub.f32 %v1778_v46, %v4965_v16  ;;  %v1782_v58 = vmul.f32 %v4434_v49, %v477_v41  ;;  %4455 = vrcp.f32 %v1000_v42  ;;  %v488_v44 = vld [vmem:[%s4956_s23 + $0x918] sm:$0xff]  ;;  %v1011_v45 = vld [vmem:[%s4942_s19 + $0x970] sm:$0xff] }
 0x136   : > { %v4438_v61 = vpop.eup %4437  ;;  %3547 = vst.msk [vmem:[%s4980_s26 + $0x898] sm:$0xff] %vm3271_vm0, %v3034_v50  ;;  %v3036_v62 = vmul.f32 %v2524_v51, %v2524_v51  ;;  %v2526_v63 = vsub.f32 %v1780_v52, %v4965_v16  ;;  %v1784_v0 = vmul.f32 %v4436_v55, %v478_v47  ;;  %4457 = vrcp.f32 %v1001_v48  ;;  %v489_v50 = vld [vmem:[%s4956_s23 + $0x920] sm:$0xff]  ;;  %v1012_v51 = vld [vmem:[%s4942_s19 + $0x978] sm:$0xff] }
 0x137   : > { %v4440_v3 = vpop.eup %4439  ;;  %3548 = vst.msk [vmem:[%s4980_s26 + $0x8a0] sm:$0xff] %vm3271_vm0, %v3035_v56  ;;  %v3037_v4 = vmul.f32 %v2525_v57, %v2525_v57  ;;  %v2527_v5 = vsub.f32 %v1782_v58, %v4965_v16  ;;  %v1786_v6 = vmul.f32 %v4438_v61, %v479_v53  ;;  %4459 = vrcp.f32 %v1002_v54  ;;  %v490_v56 = vld [vmem:[%s4956_s23 + $0x928] sm:$0xff]  ;;  %v1013_v57 = vld [vmem:[%s4942_s19 + $0x980] sm:$0xff] }
 0x138   : > { %v4442_v9 = vpop.eup %4441  ;;  %3549 = vst.msk [vmem:[%s4980_s26 + $0x8a8] sm:$0xff] %vm3271_vm0, %v3036_v62  ;;  %v3038_v10 = vmul.f32 %v2526_v63, %v2526_v63  ;;  %v2528_v11 = vsub.f32 %v1784_v0, %v4965_v16  ;;  %v1788_v12 = vmul.f32 %v4440_v3, %v480_v59  ;;  %4461 = vrcp.f32 %v1003_v60  ;;  %v491_v62 = vld [vmem:[%s4956_s23 + $0x930] sm:$0xff]  ;;  %v1014_v63 = vld [vmem:[%s4942_s19 + $0x988] sm:$0xff] }
 0x139   : > { %v4444_v15 = vpop.eup %4443  ;;  %3550 = vst.msk [vmem:[%s4980_s26 + $0x8b0] sm:$0xff] %vm3271_vm0, %v3037_v4  ;;  %v3039_v17 = vmul.f32 %v2527_v5, %v2527_v5  ;;  %v2529_v18 = vsub.f32 %v1786_v6, %v4965_v16  ;;  %v1790_v19 = vmul.f32 %v4442_v9, %v481_v1  ;;  %4463 = vrcp.f32 %v1004_v2  ;;  %v492_v4 = vld [vmem:[%s4956_s23 + $0x938] sm:$0xff]  ;;  %v1015_v5 = vld [vmem:[%s4942_s19 + $0x990] sm:$0xff] }
 0x13a   : > { %v4446_v22 = vpop.eup %4445  ;;  %3551 = vst.msk [vmem:[%s4980_s26 + $0x8b8] sm:$0xff] %vm3271_vm0, %v3038_v10  ;;  %v3040_v23 = vmul.f32 %v2528_v11, %v2528_v11  ;;  %v2530_v24 = vsub.f32 %v1788_v12, %v4965_v16  ;;  %v1792_v25 = vmul.f32 %v4444_v15, %v482_v7  ;;  %4465 = vrcp.f32 %v1005_v8  ;;  %v493_v10 = vld [vmem:[%s4956_s23 + $0x940] sm:$0xff]  ;;  %v1016_v11 = vld [vmem:[%s4942_s19 + $0x998] sm:$0xff] }
 0x13b   : > { %v4448_v28 = vpop.eup %4447  ;;  %3552 = vst.msk [vmem:[%s4980_s26 + $0x8c0] sm:$0xff] %vm3271_vm0, %v3039_v17  ;;  %v3041_v29 = vmul.f32 %v2529_v18, %v2529_v18  ;;  %v2531_v30 = vsub.f32 %v1790_v19, %v4965_v16  ;;  %v1794_v31 = vmul.f32 %v4446_v22, %v483_v13  ;;  %4467 = vrcp.f32 %v1006_v14  ;;  %v494_v17 = vld [vmem:[%s4956_s23 + $0x948] sm:$0xff]  ;;  %v1017_v18 = vld [vmem:[%s4942_s19 + $0x9a0] sm:$0xff] }
 0x13c   : > { %v4450_v34 = vpop.eup %4449  ;;  %3553 = vst.msk [vmem:[%s4980_s26 + $0x8c8] sm:$0xff] %vm3271_vm0, %v3040_v23  ;;  %v3042_v35 = vmul.f32 %v2530_v24, %v2530_v24  ;;  %v2532_v36 = vsub.f32 %v1792_v25, %v4965_v16  ;;  %v1796_v37 = vmul.f32 %v4448_v28, %v484_v20  ;;  %4469 = vrcp.f32 %v1007_v21  ;;  %v495_v23 = vld [vmem:[%s4956_s23 + $0x950] sm:$0xff]  ;;  %v1018_v24 = vld [vmem:[%s4942_s19 + $0x9a8] sm:$0xff] }
 0x13d   : > { %v4452_v40 = vpop.eup %4451  ;;  %3554 = vst.msk [vmem:[%s4980_s26 + $0x8d0] sm:$0xff] %vm3271_vm0, %v3041_v29  ;;  %v3043_v41 = vmul.f32 %v2531_v30, %v2531_v30  ;;  %v2533_v42 = vsub.f32 %v1794_v31, %v4965_v16  ;;  %v1798_v43 = vmul.f32 %v4450_v34, %v485_v26  ;;  %4471 = vrcp.f32 %v1008_v27  ;;  %v496_v29 = vld [vmem:[%s4956_s23 + $0x958] sm:$0xff]  ;;  %v1019_v30 = vld [vmem:[%s4942_s19 + $0x9b0] sm:$0xff] }
 0x13e   : > { %v4454_v46 = vpop.eup %4453  ;;  %3555 = vst.msk [vmem:[%s4980_s26 + $0x8d8] sm:$0xff] %vm3271_vm0, %v3042_v35  ;;  %v3044_v47 = vmul.f32 %v2532_v36, %v2532_v36  ;;  %v2534_v48 = vsub.f32 %v1796_v37, %v4965_v16  ;;  %v1800_v49 = vmul.f32 %v4452_v40, %v486_v32  ;;  %4473 = vrcp.f32 %v1009_v33  ;;  %v497_v35 = vld [vmem:[%s4956_s23 + $0x960] sm:$0xff]  ;;  %v1020_v36 = vld [vmem:[%s4942_s19 + $0x9b8] sm:$0xff] }
 0x13f   : > { %v4456_v52 = vpop.eup %4455  ;;  %3556 = vst.msk [vmem:[%s4980_s26 + $0x8e0] sm:$0xff] %vm3271_vm0, %v3043_v41  ;;  %v3045_v53 = vmul.f32 %v2533_v42, %v2533_v42  ;;  %v2535_v54 = vsub.f32 %v1798_v43, %v4965_v16  ;;  %v1802_v55 = vmul.f32 %v4454_v46, %v487_v38  ;;  %4475 = vrcp.f32 %v1010_v39  ;;  %v498_v41 = vld [vmem:[%s4956_s23 + $0x968] sm:$0xff]  ;;  %v1021_v42 = vld [vmem:[%s4942_s19 + $0x9c0] sm:$0xff] }
 0x140   : > { %v4458_v58 = vpop.eup %4457  ;;  %3557 = vst.msk [vmem:[%s4980_s26 + $0x8e8] sm:$0xff] %vm3271_vm0, %v3044_v47  ;;  %v3046_v59 = vmul.f32 %v2534_v48, %v2534_v48  ;;  %v2536_v60 = vsub.f32 %v1800_v49, %v4965_v16  ;;  %v1804_v61 = vmul.f32 %v4456_v52, %v488_v44  ;;  %4477 = vrcp.f32 %v1011_v45  ;;  %v499_v47 = vld [vmem:[%s4956_s23 + $0x970] sm:$0xff]  ;;  %v1022_v48 = vld [vmem:[%s4942_s19 + $0x9c8] sm:$0xff] }
 0x141   : > { %v4460_v0 = vpop.eup %4459  ;;  %3558 = vst.msk [vmem:[%s4980_s26 + $0x8f0] sm:$0xff] %vm3271_vm0, %v3045_v53  ;;  %v3047_v1 = vmul.f32 %v2535_v54, %v2535_v54  ;;  %v2537_v2 = vsub.f32 %v1802_v55, %v4965_v16  ;;  %v1806_v3 = vmul.f32 %v4458_v58, %v489_v50  ;;  %4479 = vrcp.f32 %v1012_v51  ;;  %v500_v53 = vld [vmem:[%s4956_s23 + $0x978] sm:$0xff]  ;;  %v1023_v54 = vld [vmem:[%s4942_s19 + $0x9d0] sm:$0xff] }
 0x142   : > { %v4462_v6 = vpop.eup %4461  ;;  %3559 = vst.msk [vmem:[%s4980_s26 + $0x8f8] sm:$0xff] %vm3271_vm0, %v3046_v59  ;;  %v3048_v7 = vmul.f32 %v2536_v60, %v2536_v60  ;;  %v2538_v8 = vsub.f32 %v1804_v61, %v4965_v16  ;;  %v1808_v9 = vmul.f32 %v4460_v0, %v490_v56  ;;  %4481 = vrcp.f32 %v1013_v57  ;;  %v501_v59 = vld [vmem:[%s4956_s23 + $0x980] sm:$0xff]  ;;  %v1024_v60 = vld [vmem:[%s4942_s19 + $0x9d8] sm:$0xff] }
 0x143   : > { %v4464_v12 = vpop.eup %4463  ;;  %3560 = vst.msk [vmem:[%s4980_s26 + $0x900] sm:$0xff] %vm3271_vm0, %v3047_v1  ;;  %v3049_v13 = vmul.f32 %v2537_v2, %v2537_v2  ;;  %v2539_v14 = vsub.f32 %v1806_v3, %v4965_v16  ;;  %v1810_v15 = vmul.f32 %v4462_v6, %v491_v62  ;;  %4483 = vrcp.f32 %v1014_v63  ;;  %v502_v1 = vld [vmem:[%s4956_s23 + $0x988] sm:$0xff]  ;;  %v1025_v2 = vld [vmem:[%s4942_s19 + $0x9e0] sm:$0xff] }
 0x144   : > { %v4466_v19 = vpop.eup %4465  ;;  %3561 = vst.msk [vmem:[%s4980_s26 + $0x908] sm:$0xff] %vm3271_vm0, %v3048_v7  ;;  %v3050_v20 = vmul.f32 %v2538_v8, %v2538_v8  ;;  %v2540_v21 = vsub.f32 %v1808_v9, %v4965_v16  ;;  %v1812_v22 = vmul.f32 %v4464_v12, %v492_v4  ;;  %4485 = vrcp.f32 %v1015_v5  ;;  %v503_v7 = vld [vmem:[%s4956_s23 + $0x990] sm:$0xff]  ;;  %v1026_v8 = vld [vmem:[%s4942_s19 + $0x9e8] sm:$0xff] }
 0x145   : > { %v4468_v25 = vpop.eup %4467  ;;  %3562 = vst.msk [vmem:[%s4980_s26 + $0x910] sm:$0xff] %vm3271_vm0, %v3049_v13  ;;  %v3051_v26 = vmul.f32 %v2539_v14, %v2539_v14  ;;  %v2541_v27 = vsub.f32 %v1810_v15, %v4965_v16  ;;  %v1814_v28 = vmul.f32 %v4466_v19, %v493_v10  ;;  %4487 = vrcp.f32 %v1016_v11  ;;  %v504_v13 = vld [vmem:[%s4956_s23 + $0x998] sm:$0xff]  ;;  %v1027_v14 = vld [vmem:[%s4942_s19 + $0x9f0] sm:$0xff] }
 0x146   : > { %v4470_v31 = vpop.eup %4469  ;;  %3563 = vst.msk [vmem:[%s4980_s26 + $0x918] sm:$0xff] %vm3271_vm0, %v3050_v20  ;;  %v3052_v32 = vmul.f32 %v2540_v21, %v2540_v21  ;;  %v2542_v33 = vsub.f32 %v1812_v22, %v4965_v16  ;;  %v1816_v34 = vmul.f32 %v4468_v25, %v494_v17  ;;  %4489 = vrcp.f32 %v1017_v18  ;;  %v505_v20 = vld [vmem:[%s4956_s23 + $0x9a0] sm:$0xff]  ;;  %v1028_v21 = vld [vmem:[%s4942_s19 + $0x9f8] sm:$0xff] }
 0x147   : > { %v4472_v37 = vpop.eup %4471  ;;  %3564 = vst.msk [vmem:[%s4980_s26 + $0x920] sm:$0xff] %vm3271_vm0, %v3051_v26  ;;  %v3053_v38 = vmul.f32 %v2541_v27, %v2541_v27  ;;  %v2543_v39 = vsub.f32 %v1814_v28, %v4965_v16  ;;  %v1818_v40 = vmul.f32 %v4470_v31, %v495_v23  ;;  %4491 = vrcp.f32 %v1018_v24  ;;  %v506_v26 = vld [vmem:[%s4956_s23 + $0x9a8] sm:$0xff]  ;;  %v1029_v27 = vld [vmem:[%s4942_s19 + $0xa00] sm:$0xff] }
 0x148   : > { %v4474_v43 = vpop.eup %4473  ;;  %3565 = vst.msk [vmem:[%s4980_s26 + $0x928] sm:$0xff] %vm3271_vm0, %v3052_v32  ;;  %v3054_v44 = vmul.f32 %v2542_v33, %v2542_v33  ;;  %v2544_v45 = vsub.f32 %v1816_v34, %v4965_v16  ;;  %v1820_v46 = vmul.f32 %v4472_v37, %v496_v29  ;;  %4493 = vrcp.f32 %v1019_v30  ;;  %v507_v32 = vld [vmem:[%s4956_s23 + $0x9b0] sm:$0xff]  ;;  %v1030_v33 = vld [vmem:[%s4942_s19 + $0xa08] sm:$0xff] }
 0x149   : > { %v4476_v49 = vpop.eup %4475  ;;  %3566 = vst.msk [vmem:[%s4980_s26 + $0x930] sm:$0xff] %vm3271_vm0, %v3053_v38  ;;  %v3055_v50 = vmul.f32 %v2543_v39, %v2543_v39  ;;  %v2545_v51 = vsub.f32 %v1818_v40, %v4965_v16  ;;  %v1822_v52 = vmul.f32 %v4474_v43, %v497_v35  ;;  %4495 = vrcp.f32 %v1020_v36  ;;  %v508_v38 = vld [vmem:[%s4956_s23 + $0x9b8] sm:$0xff]  ;;  %v1031_v39 = vld [vmem:[%s4942_s19 + $0xa10] sm:$0xff] }
 0x14a   : > { %v4478_v55 = vpop.eup %4477  ;;  %3567 = vst.msk [vmem:[%s4980_s26 + $0x938] sm:$0xff] %vm3271_vm0, %v3054_v44  ;;  %v3056_v56 = vmul.f32 %v2544_v45, %v2544_v45  ;;  %v2546_v57 = vsub.f32 %v1820_v46, %v4965_v16  ;;  %v1824_v58 = vmul.f32 %v4476_v49, %v498_v41  ;;  %4497 = vrcp.f32 %v1021_v42  ;;  %v509_v44 = vld [vmem:[%s4956_s23 + $0x9c0] sm:$0xff]  ;;  %v1032_v45 = vld [vmem:[%s4942_s19 + $0xa18] sm:$0xff] }
 0x14b   : > { %v4480_v61 = vpop.eup %4479  ;;  %3568 = vst.msk [vmem:[%s4980_s26 + $0x940] sm:$0xff] %vm3271_vm0, %v3055_v50  ;;  %v3057_v62 = vmul.f32 %v2545_v51, %v2545_v51  ;;  %v2547_v63 = vsub.f32 %v1822_v52, %v4965_v16  ;;  %v1826_v0 = vmul.f32 %v4478_v55, %v499_v47  ;;  %4499 = vrcp.f32 %v1022_v48  ;;  %v510_v50 = vld [vmem:[%s4956_s23 + $0x9c8] sm:$0xff]  ;;  %v1033_v51 = vld [vmem:[%s4942_s19 + $0xa20] sm:$0xff] }
 0x14c   : > { %v4482_v3 = vpop.eup %4481  ;;  %3569 = vst.msk [vmem:[%s4980_s26 + $0x948] sm:$0xff] %vm3271_vm0, %v3056_v56  ;;  %v3058_v4 = vmul.f32 %v2546_v57, %v2546_v57  ;;  %v2548_v5 = vsub.f32 %v1824_v58, %v4965_v16  ;;  %v1828_v6 = vmul.f32 %v4480_v61, %v500_v53  ;;  %4501 = vrcp.f32 %v1023_v54  ;;  %v511_v56 = vld [vmem:[%s4956_s23 + $0x9d0] sm:$0xff]  ;;  %v1034_v57 = vld [vmem:[%s4942_s19 + $0xa28] sm:$0xff] }
 0x14d   : > { %v4484_v9 = vpop.eup %4483  ;;  %3570 = vst.msk [vmem:[%s4980_s26 + $0x950] sm:$0xff] %vm3271_vm0, %v3057_v62  ;;  %v3059_v10 = vmul.f32 %v2547_v63, %v2547_v63  ;;  %v2549_v11 = vsub.f32 %v1826_v0, %v4965_v16  ;;  %v1830_v12 = vmul.f32 %v4482_v3, %v501_v59  ;;  %4503 = vrcp.f32 %v1024_v60  ;;  %v512_v62 = vld [vmem:[%s4956_s23 + $0x9d8] sm:$0xff]  ;;  %v1035_v63 = vld [vmem:[%s4942_s19 + $0xa30] sm:$0xff] }
 0x14e   : > { %v4486_v15 = vpop.eup %4485  ;;  %3571 = vst.msk [vmem:[%s4980_s26 + $0x958] sm:$0xff] %vm3271_vm0, %v3058_v4  ;;  %v3060_v17 = vmul.f32 %v2548_v5, %v2548_v5  ;;  %v2550_v18 = vsub.f32 %v1828_v6, %v4965_v16  ;;  %v1832_v19 = vmul.f32 %v4484_v9, %v502_v1  ;;  %4505 = vrcp.f32 %v1025_v2  ;;  %v513_v4 = vld [vmem:[%s4956_s23 + $0x9e0] sm:$0xff]  ;;  %v1036_v5 = vld [vmem:[%s4942_s19 + $0xa38] sm:$0xff] }
 0x14f   : > { %v4488_v22 = vpop.eup %4487  ;;  %3572 = vst.msk [vmem:[%s4980_s26 + $0x960] sm:$0xff] %vm3271_vm0, %v3059_v10  ;;  %v3061_v23 = vmul.f32 %v2549_v11, %v2549_v11  ;;  %v2551_v24 = vsub.f32 %v1830_v12, %v4965_v16  ;;  %v1834_v25 = vmul.f32 %v4486_v15, %v503_v7  ;;  %4507 = vrcp.f32 %v1026_v8  ;;  %v514_v10 = vld [vmem:[%s4956_s23 + $0x9e8] sm:$0xff]  ;;  %v1037_v11 = vld [vmem:[%s4942_s19 + $0xa40] sm:$0xff] }
 0x150   : > { %v4490_v28 = vpop.eup %4489  ;;  %3573 = vst.msk [vmem:[%s4980_s26 + $0x968] sm:$0xff] %vm3271_vm0, %v3060_v17  ;;  %v3062_v29 = vmul.f32 %v2550_v18, %v2550_v18  ;;  %v2552_v30 = vsub.f32 %v1832_v19, %v4965_v16  ;;  %v1836_v31 = vmul.f32 %v4488_v22, %v504_v13  ;;  %4509 = vrcp.f32 %v1027_v14  ;;  %v515_v17 = vld [vmem:[%s4956_s23 + $0x9f0] sm:$0xff]  ;;  %v1038_v18 = vld [vmem:[%s4942_s19 + $0xa48] sm:$0xff] }
 0x151   : > { %v4492_v34 = vpop.eup %4491  ;;  %3574 = vst.msk [vmem:[%s4980_s26 + $0x970] sm:$0xff] %vm3271_vm0, %v3061_v23  ;;  %v3063_v35 = vmul.f32 %v2551_v24, %v2551_v24  ;;  %v2553_v36 = vsub.f32 %v1834_v25, %v4965_v16  ;;  %v1838_v37 = vmul.f32 %v4490_v28, %v505_v20  ;;  %4511 = vrcp.f32 %v1028_v21  ;;  %v516_v23 = vld [vmem:[%s4956_s23 + $0x9f8] sm:$0xff]  ;;  %v1039_v24 = vld [vmem:[%s4942_s19 + $0xa50] sm:$0xff] }
 0x152   : > { %v4494_v40 = vpop.eup %4493  ;;  %3575 = vst.msk [vmem:[%s4980_s26 + $0x978] sm:$0xff] %vm3271_vm0, %v3062_v29  ;;  %v3064_v41 = vmul.f32 %v2552_v30, %v2552_v30  ;;  %v2554_v42 = vsub.f32 %v1836_v31, %v4965_v16  ;;  %v1840_v43 = vmul.f32 %v4492_v34, %v506_v26  ;;  %4513 = vrcp.f32 %v1029_v27  ;;  %v517_v29 = vld [vmem:[%s4956_s23 + $0xa00] sm:$0xff]  ;;  %v1040_v30 = vld [vmem:[%s4942_s19 + $0xa58] sm:$0xff] }
 0x153   : > { %v4496_v46 = vpop.eup %4495  ;;  %3576 = vst.msk [vmem:[%s4980_s26 + $0x980] sm:$0xff] %vm3271_vm0, %v3063_v35  ;;  %v3065_v47 = vmul.f32 %v2553_v36, %v2553_v36  ;;  %v2555_v48 = vsub.f32 %v1838_v37, %v4965_v16  ;;  %v1842_v49 = vmul.f32 %v4494_v40, %v507_v32  ;;  %4515 = vrcp.f32 %v1030_v33  ;;  %v518_v35 = vld [vmem:[%s4956_s23 + $0xa08] sm:$0xff]  ;;  %v1041_v36 = vld [vmem:[%s4942_s19 + $0xa60] sm:$0xff] }
 0x154   : > { %v4498_v52 = vpop.eup %4497  ;;  %3577 = vst.msk [vmem:[%s4980_s26 + $0x988] sm:$0xff] %vm3271_vm0, %v3064_v41  ;;  %v3066_v53 = vmul.f32 %v2554_v42, %v2554_v42  ;;  %v2556_v54 = vsub.f32 %v1840_v43, %v4965_v16  ;;  %v1844_v55 = vmul.f32 %v4496_v46, %v508_v38  ;;  %4517 = vrcp.f32 %v1031_v39  ;;  %v519_v41 = vld [vmem:[%s4956_s23 + $0xa10] sm:$0xff]  ;;  %v1042_v42 = vld [vmem:[%s4942_s19 + $0xa68] sm:$0xff] }
 0x155   : > { %v4500_v58 = vpop.eup %4499  ;;  %3578 = vst.msk [vmem:[%s4980_s26 + $0x990] sm:$0xff] %vm3271_vm0, %v3065_v47  ;;  %v3067_v59 = vmul.f32 %v2555_v48, %v2555_v48  ;;  %v2557_v60 = vsub.f32 %v1842_v49, %v4965_v16  ;;  %v1846_v61 = vmul.f32 %v4498_v52, %v509_v44  ;;  %4519 = vrcp.f32 %v1032_v45  ;;  %v520_v47 = vld [vmem:[%s4956_s23 + $0xa18] sm:$0xff]  ;;  %v1043_v48 = vld [vmem:[%s4942_s19 + $0xa70] sm:$0xff] }
 0x156   : > { %v4502_v0 = vpop.eup %4501  ;;  %3579 = vst.msk [vmem:[%s4980_s26 + $0x998] sm:$0xff] %vm3271_vm0, %v3066_v53  ;;  %v3068_v1 = vmul.f32 %v2556_v54, %v2556_v54  ;;  %v2558_v2 = vsub.f32 %v1844_v55, %v4965_v16  ;;  %v1848_v3 = vmul.f32 %v4500_v58, %v510_v50  ;;  %4521 = vrcp.f32 %v1033_v51  ;;  %v521_v53 = vld [vmem:[%s4956_s23 + $0xa20] sm:$0xff]  ;;  %v1044_v54 = vld [vmem:[%s4942_s19 + $0xa78] sm:$0xff] }
 0x157   : > { %v4504_v6 = vpop.eup %4503  ;;  %3580 = vst.msk [vmem:[%s4980_s26 + $0x9a0] sm:$0xff] %vm3271_vm0, %v3067_v59  ;;  %v3069_v7 = vmul.f32 %v2557_v60, %v2557_v60  ;;  %v2559_v8 = vsub.f32 %v1846_v61, %v4965_v16  ;;  %v1850_v9 = vmul.f32 %v4502_v0, %v511_v56  ;;  %4523 = vrcp.f32 %v1034_v57  ;;  %v522_v59 = vld [vmem:[%s4956_s23 + $0xa28] sm:$0xff]  ;;  %v1045_v60 = vld [vmem:[%s4942_s19 + $0xa80] sm:$0xff] }
 0x158   : > { %v4506_v12 = vpop.eup %4505  ;;  %3581 = vst.msk [vmem:[%s4980_s26 + $0x9a8] sm:$0xff] %vm3271_vm0, %v3068_v1  ;;  %v3070_v13 = vmul.f32 %v2558_v2, %v2558_v2  ;;  %v2560_v14 = vsub.f32 %v1848_v3, %v4965_v16  ;;  %v1852_v15 = vmul.f32 %v4504_v6, %v512_v62  ;;  %4525 = vrcp.f32 %v1035_v63  ;;  %v523_v1 = vld [vmem:[%s4956_s23 + $0xa30] sm:$0xff]  ;;  %v1046_v2 = vld [vmem:[%s4942_s19 + $0xa88] sm:$0xff] }
 0x159   : > { %v4508_v19 = vpop.eup %4507  ;;  %3582 = vst.msk [vmem:[%s4980_s26 + $0x9b0] sm:$0xff] %vm3271_vm0, %v3069_v7  ;;  %v3071_v20 = vmul.f32 %v2559_v8, %v2559_v8  ;;  %v2561_v21 = vsub.f32 %v1850_v9, %v4965_v16  ;;  %v1854_v22 = vmul.f32 %v4506_v12, %v513_v4  ;;  %4527 = vrcp.f32 %v1036_v5  ;;  %v524_v7 = vld [vmem:[%s4956_s23 + $0xa38] sm:$0xff]  ;;  %v1047_v8 = vld [vmem:[%s4942_s19 + $0xa90] sm:$0xff] }
 0x15a   : > { %v4510_v25 = vpop.eup %4509  ;;  %3583 = vst.msk [vmem:[%s4980_s26 + $0x9b8] sm:$0xff] %vm3271_vm0, %v3070_v13  ;;  %v3072_v26 = vmul.f32 %v2560_v14, %v2560_v14  ;;  %v2562_v27 = vsub.f32 %v1852_v15, %v4965_v16  ;;  %v1856_v28 = vmul.f32 %v4508_v19, %v514_v10  ;;  %4529 = vrcp.f32 %v1037_v11  ;;  %v525_v13 = vld [vmem:[%s4956_s23 + $0xa40] sm:$0xff]  ;;  %v1048_v14 = vld [vmem:[%s4942_s19 + $0xa98] sm:$0xff] }
 0x15b   : > { %v4512_v31 = vpop.eup %4511  ;;  %3584 = vst.msk [vmem:[%s4980_s26 + $0x9c0] sm:$0xff] %vm3271_vm0, %v3071_v20  ;;  %v3073_v32 = vmul.f32 %v2561_v21, %v2561_v21  ;;  %v2563_v33 = vsub.f32 %v1854_v22, %v4965_v16  ;;  %v1858_v34 = vmul.f32 %v4510_v25, %v515_v17  ;;  %4531 = vrcp.f32 %v1038_v18  ;;  %v526_v20 = vld [vmem:[%s4956_s23 + $0xa48] sm:$0xff]  ;;  %v1049_v21 = vld [vmem:[%s4942_s19 + $0xaa0] sm:$0xff] }
 0x15c   : > { %v4514_v37 = vpop.eup %4513  ;;  %3585 = vst.msk [vmem:[%s4980_s26 + $0x9c8] sm:$0xff] %vm3271_vm0, %v3072_v26  ;;  %v3074_v38 = vmul.f32 %v2562_v27, %v2562_v27  ;;  %v2564_v39 = vsub.f32 %v1856_v28, %v4965_v16  ;;  %v1860_v40 = vmul.f32 %v4512_v31, %v516_v23  ;;  %4533 = vrcp.f32 %v1039_v24  ;;  %v527_v26 = vld [vmem:[%s4956_s23 + $0xa50] sm:$0xff]  ;;  %v1050_v27 = vld [vmem:[%s4942_s19 + $0xaa8] sm:$0xff] }
 0x15d   : > { %v4516_v43 = vpop.eup %4515  ;;  %3586 = vst.msk [vmem:[%s4980_s26 + $0x9d0] sm:$0xff] %vm3271_vm0, %v3073_v32  ;;  %v3075_v44 = vmul.f32 %v2563_v33, %v2563_v33  ;;  %v2565_v45 = vsub.f32 %v1858_v34, %v4965_v16  ;;  %v1862_v46 = vmul.f32 %v4514_v37, %v517_v29  ;;  %4535 = vrcp.f32 %v1040_v30  ;;  %v528_v32 = vld [vmem:[%s4956_s23 + $0xa58] sm:$0xff]  ;;  %v1051_v33 = vld [vmem:[%s4942_s19 + $0xab0] sm:$0xff] }
 0x15e   : > { %v4518_v49 = vpop.eup %4517  ;;  %3587 = vst.msk [vmem:[%s4980_s26 + $0x9d8] sm:$0xff] %vm3271_vm0, %v3074_v38  ;;  %v3076_v50 = vmul.f32 %v2564_v39, %v2564_v39  ;;  %v2566_v51 = vsub.f32 %v1860_v40, %v4965_v16  ;;  %v1864_v52 = vmul.f32 %v4516_v43, %v518_v35  ;;  %4537 = vrcp.f32 %v1041_v36  ;;  %v529_v38 = vld [vmem:[%s4956_s23 + $0xa60] sm:$0xff]  ;;  %v1052_v39 = vld [vmem:[%s4942_s19 + $0xab8] sm:$0xff] }
 0x15f   : > { %v4520_v55 = vpop.eup %4519  ;;  %3588 = vst.msk [vmem:[%s4980_s26 + $0x9e0] sm:$0xff] %vm3271_vm0, %v3075_v44  ;;  %v3077_v56 = vmul.f32 %v2565_v45, %v2565_v45  ;;  %v2567_v57 = vsub.f32 %v1862_v46, %v4965_v16  ;;  %v1866_v58 = vmul.f32 %v4518_v49, %v519_v41  ;;  %4539 = vrcp.f32 %v1042_v42  ;;  %v530_v44 = vld [vmem:[%s4956_s23 + $0xa68] sm:$0xff]  ;;  %v1053_v45 = vld [vmem:[%s4942_s19 + $0xac0] sm:$0xff] }
 0x160   : > { %v4522_v61 = vpop.eup %4521  ;;  %3589 = vst.msk [vmem:[%s4980_s26 + $0x9e8] sm:$0xff] %vm3271_vm0, %v3076_v50  ;;  %v3078_v62 = vmul.f32 %v2566_v51, %v2566_v51  ;;  %v2568_v63 = vsub.f32 %v1864_v52, %v4965_v16  ;;  %v1868_v0 = vmul.f32 %v4520_v55, %v520_v47  ;;  %4541 = vrcp.f32 %v1043_v48  ;;  %v531_v50 = vld [vmem:[%s4956_s23 + $0xa70] sm:$0xff]  ;;  %v1054_v51 = vld [vmem:[%s4942_s19 + $0xac8] sm:$0xff] }
 0x161   : > { %v4524_v3 = vpop.eup %4523  ;;  %3590 = vst.msk [vmem:[%s4980_s26 + $0x9f0] sm:$0xff] %vm3271_vm0, %v3077_v56  ;;  %v3079_v4 = vmul.f32 %v2567_v57, %v2567_v57  ;;  %v2569_v5 = vsub.f32 %v1866_v58, %v4965_v16  ;;  %v1870_v6 = vmul.f32 %v4522_v61, %v521_v53  ;;  %4543 = vrcp.f32 %v1044_v54  ;;  %v532_v56 = vld [vmem:[%s4956_s23 + $0xa78] sm:$0xff]  ;;  %v1055_v57 = vld [vmem:[%s4942_s19 + $0xad0] sm:$0xff] }
 0x162   : > { %v4526_v9 = vpop.eup %4525  ;;  %3591 = vst.msk [vmem:[%s4980_s26 + $0x9f8] sm:$0xff] %vm3271_vm0, %v3078_v62  ;;  %v3080_v10 = vmul.f32 %v2568_v63, %v2568_v63  ;;  %v2570_v11 = vsub.f32 %v1868_v0, %v4965_v16  ;;  %v1872_v12 = vmul.f32 %v4524_v3, %v522_v59  ;;  %4545 = vrcp.f32 %v1045_v60  ;;  %v533_v62 = vld [vmem:[%s4956_s23 + $0xa80] sm:$0xff]  ;;  %v1056_v63 = vld [vmem:[%s4942_s19 + $0xad8] sm:$0xff] }
 0x163   : > { %v4528_v15 = vpop.eup %4527  ;;  %3592 = vst.msk [vmem:[%s4980_s26 + $0xa00] sm:$0xff] %vm3271_vm0, %v3079_v4  ;;  %v3081_v17 = vmul.f32 %v2569_v5, %v2569_v5  ;;  %v2571_v18 = vsub.f32 %v1870_v6, %v4965_v16  ;;  %v1874_v19 = vmul.f32 %v4526_v9, %v523_v1  ;;  %4547 = vrcp.f32 %v1046_v2  ;;  %v534_v4 = vld [vmem:[%s4956_s23 + $0xa88] sm:$0xff]  ;;  %v1057_v5 = vld [vmem:[%s4942_s19 + $0xae0] sm:$0xff] }
 0x164   : > { %v4530_v22 = vpop.eup %4529  ;;  %3593 = vst.msk [vmem:[%s4980_s26 + $0xa08] sm:$0xff] %vm3271_vm0, %v3080_v10  ;;  %v3082_v23 = vmul.f32 %v2570_v11, %v2570_v11  ;;  %v2572_v24 = vsub.f32 %v1872_v12, %v4965_v16  ;;  %v1876_v25 = vmul.f32 %v4528_v15, %v524_v7  ;;  %4549 = vrcp.f32 %v1047_v8  ;;  %v535_v10 = vld [vmem:[%s4956_s23 + $0xa90] sm:$0xff]  ;;  %v1058_v11 = vld [vmem:[%s4942_s19 + $0xae8] sm:$0xff] }
 0x165   : > { %v4532_v28 = vpop.eup %4531  ;;  %3594 = vst.msk [vmem:[%s4980_s26 + $0xa10] sm:$0xff] %vm3271_vm0, %v3081_v17  ;;  %v3083_v29 = vmul.f32 %v2571_v18, %v2571_v18  ;;  %v2573_v30 = vsub.f32 %v1874_v19, %v4965_v16  ;;  %v1878_v31 = vmul.f32 %v4530_v22, %v525_v13  ;;  %4551 = vrcp.f32 %v1048_v14  ;;  %v536_v17 = vld [vmem:[%s4956_s23 + $0xa98] sm:$0xff]  ;;  %v1059_v18 = vld [vmem:[%s4942_s19 + $0xaf0] sm:$0xff] }
 0x166   : > { %v4534_v34 = vpop.eup %4533  ;;  %3595 = vst.msk [vmem:[%s4980_s26 + $0xa18] sm:$0xff] %vm3271_vm0, %v3082_v23  ;;  %v3084_v35 = vmul.f32 %v2572_v24, %v2572_v24  ;;  %v2574_v36 = vsub.f32 %v1876_v25, %v4965_v16  ;;  %v1880_v37 = vmul.f32 %v4532_v28, %v526_v20  ;;  %4553 = vrcp.f32 %v1049_v21  ;;  %v537_v23 = vld [vmem:[%s4956_s23 + $0xaa0] sm:$0xff]  ;;  %v1060_v24 = vld [vmem:[%s4942_s19 + $0xaf8] sm:$0xff] }
 0x167   : > { %v4536_v40 = vpop.eup %4535  ;;  %3596 = vst.msk [vmem:[%s4980_s26 + $0xa20] sm:$0xff] %vm3271_vm0, %v3083_v29  ;;  %v3085_v41 = vmul.f32 %v2573_v30, %v2573_v30  ;;  %v2575_v42 = vsub.f32 %v1878_v31, %v4965_v16  ;;  %v1882_v43 = vmul.f32 %v4534_v34, %v527_v26  ;;  %4555 = vrcp.f32 %v1050_v27  ;;  %v538_v29 = vld [vmem:[%s4956_s23 + $0xaa8] sm:$0xff]  ;;  %v1061_v30 = vld [vmem:[%s4942_s19 + $0xb00] sm:$0xff] }
 0x168   : > { %v4538_v46 = vpop.eup %4537  ;;  %3597 = vst.msk [vmem:[%s4980_s26 + $0xa28] sm:$0xff] %vm3271_vm0, %v3084_v35  ;;  %v3086_v47 = vmul.f32 %v2574_v36, %v2574_v36  ;;  %v2576_v48 = vsub.f32 %v1880_v37, %v4965_v16  ;;  %v1884_v49 = vmul.f32 %v4536_v40, %v528_v32  ;;  %4557 = vrcp.f32 %v1051_v33  ;;  %v539_v35 = vld [vmem:[%s4956_s23 + $0xab0] sm:$0xff]  ;;  %v1062_v36 = vld [vmem:[%s4942_s19 + $0xb08] sm:$0xff] }
 0x169   : > { %v4540_v52 = vpop.eup %4539  ;;  %3598 = vst.msk [vmem:[%s4980_s26 + $0xa30] sm:$0xff] %vm3271_vm0, %v3085_v41  ;;  %v3087_v53 = vmul.f32 %v2575_v42, %v2575_v42  ;;  %v2577_v54 = vsub.f32 %v1882_v43, %v4965_v16  ;;  %v1886_v55 = vmul.f32 %v4538_v46, %v529_v38  ;;  %4559 = vrcp.f32 %v1052_v39  ;;  %v540_v41 = vld [vmem:[%s4956_s23 + $0xab8] sm:$0xff]  ;;  %v1063_v42 = vld [vmem:[%s4942_s19 + $0xb10] sm:$0xff] }
 0x16a   : > { %v4542_v58 = vpop.eup %4541  ;;  %3599 = vst.msk [vmem:[%s4980_s26 + $0xa38] sm:$0xff] %vm3271_vm0, %v3086_v47  ;;  %v3088_v59 = vmul.f32 %v2576_v48, %v2576_v48  ;;  %v2578_v60 = vsub.f32 %v1884_v49, %v4965_v16  ;;  %v1888_v61 = vmul.f32 %v4540_v52, %v530_v44  ;;  %4561 = vrcp.f32 %v1053_v45  ;;  %v541_v47 = vld [vmem:[%s4956_s23 + $0xac0] sm:$0xff]  ;;  %v1064_v48 = vld [vmem:[%s4942_s19 + $0xb18] sm:$0xff] }
 0x16b   : > { %v4544_v0 = vpop.eup %4543  ;;  %3600 = vst.msk [vmem:[%s4980_s26 + $0xa40] sm:$0xff] %vm3271_vm0, %v3087_v53  ;;  %v3089_v1 = vmul.f32 %v2577_v54, %v2577_v54  ;;  %v2579_v2 = vsub.f32 %v1886_v55, %v4965_v16  ;;  %v1890_v3 = vmul.f32 %v4542_v58, %v531_v50  ;;  %4563 = vrcp.f32 %v1054_v51  ;;  %v542_v53 = vld [vmem:[%s4956_s23 + $0xac8] sm:$0xff]  ;;  %v1065_v54 = vld [vmem:[%s4942_s19 + $0xb20] sm:$0xff] }
 0x16c   : > { %v4546_v6 = vpop.eup %4545  ;;  %3601 = vst.msk [vmem:[%s4980_s26 + $0xa48] sm:$0xff] %vm3271_vm0, %v3088_v59  ;;  %v3090_v7 = vmul.f32 %v2578_v60, %v2578_v60  ;;  %v2580_v8 = vsub.f32 %v1888_v61, %v4965_v16  ;;  %v1892_v9 = vmul.f32 %v4544_v0, %v532_v56  ;;  %4565 = vrcp.f32 %v1055_v57  ;;  %v543_v59 = vld [vmem:[%s4956_s23 + $0xad0] sm:$0xff]  ;;  %v1066_v60 = vld [vmem:[%s4942_s19 + $0xb28] sm:$0xff] }
 0x16d   : > { %v4548_v12 = vpop.eup %4547  ;;  %3602 = vst.msk [vmem:[%s4980_s26 + $0xa50] sm:$0xff] %vm3271_vm0, %v3089_v1  ;;  %v3091_v13 = vmul.f32 %v2579_v2, %v2579_v2  ;;  %v2581_v14 = vsub.f32 %v1890_v3, %v4965_v16  ;;  %v1894_v15 = vmul.f32 %v4546_v6, %v533_v62  ;;  %4567 = vrcp.f32 %v1056_v63  ;;  %v544_v1 = vld [vmem:[%s4956_s23 + $0xad8] sm:$0xff]  ;;  %v1067_v2 = vld [vmem:[%s4942_s19 + $0xb30] sm:$0xff] }
 0x16e   : > { %v4550_v19 = vpop.eup %4549  ;;  %3603 = vst.msk [vmem:[%s4980_s26 + $0xa58] sm:$0xff] %vm3271_vm0, %v3090_v7  ;;  %v3092_v20 = vmul.f32 %v2580_v8, %v2580_v8  ;;  %v2582_v21 = vsub.f32 %v1892_v9, %v4965_v16  ;;  %v1896_v22 = vmul.f32 %v4548_v12, %v534_v4  ;;  %4569 = vrcp.f32 %v1057_v5  ;;  %v545_v7 = vld [vmem:[%s4956_s23 + $0xae0] sm:$0xff]  ;;  %v1068_v8 = vld [vmem:[%s4942_s19 + $0xb38] sm:$0xff] }
 0x16f   : > { %v4552_v25 = vpop.eup %4551  ;;  %3604 = vst.msk [vmem:[%s4980_s26 + $0xa60] sm:$0xff] %vm3271_vm0, %v3091_v13  ;;  %v3093_v26 = vmul.f32 %v2581_v14, %v2581_v14  ;;  %v2583_v27 = vsub.f32 %v1894_v15, %v4965_v16  ;;  %v1898_v28 = vmul.f32 %v4550_v19, %v535_v10  ;;  %4571 = vrcp.f32 %v1058_v11  ;;  %v546_v13 = vld [vmem:[%s4956_s23 + $0xae8] sm:$0xff]  ;;  %v1069_v14 = vld [vmem:[%s4942_s19 + $0xb40] sm:$0xff] }
 0x170   : > { %v4554_v31 = vpop.eup %4553  ;;  %3605 = vst.msk [vmem:[%s4980_s26 + $0xa68] sm:$0xff] %vm3271_vm0, %v3092_v20  ;;  %v3094_v32 = vmul.f32 %v2582_v21, %v2582_v21  ;;  %v2584_v33 = vsub.f32 %v1896_v22, %v4965_v16  ;;  %v1900_v34 = vmul.f32 %v4552_v25, %v536_v17  ;;  %4573 = vrcp.f32 %v1059_v18  ;;  %v547_v20 = vld [vmem:[%s4956_s23 + $0xaf0] sm:$0xff]  ;;  %v1070_v21 = vld [vmem:[%s4942_s19 + $0xb48] sm:$0xff] }
 0x171   : > { %v4556_v37 = vpop.eup %4555  ;;  %3606 = vst.msk [vmem:[%s4980_s26 + $0xa70] sm:$0xff] %vm3271_vm0, %v3093_v26  ;;  %v3095_v38 = vmul.f32 %v2583_v27, %v2583_v27  ;;  %v2585_v39 = vsub.f32 %v1898_v28, %v4965_v16  ;;  %v1902_v40 = vmul.f32 %v4554_v31, %v537_v23  ;;  %4575 = vrcp.f32 %v1060_v24  ;;  %v548_v26 = vld [vmem:[%s4956_s23 + $0xaf8] sm:$0xff]  ;;  %v1071_v27 = vld [vmem:[%s4942_s19 + $0xb50] sm:$0xff] }
 0x172   : > { %v4558_v43 = vpop.eup %4557  ;;  %3607 = vst.msk [vmem:[%s4980_s26 + $0xa78] sm:$0xff] %vm3271_vm0, %v3094_v32  ;;  %v3096_v44 = vmul.f32 %v2584_v33, %v2584_v33  ;;  %v2586_v45 = vsub.f32 %v1900_v34, %v4965_v16  ;;  %v1904_v46 = vmul.f32 %v4556_v37, %v538_v29  ;;  %4577 = vrcp.f32 %v1061_v30  ;;  %v549_v32 = vld [vmem:[%s4956_s23 + $0xb00] sm:$0xff]  ;;  %v1072_v33 = vld [vmem:[%s4942_s19 + $0xb58] sm:$0xff] }
 0x173   : > { %v4560_v49 = vpop.eup %4559  ;;  %3608 = vst.msk [vmem:[%s4980_s26 + $0xa80] sm:$0xff] %vm3271_vm0, %v3095_v38  ;;  %v3097_v50 = vmul.f32 %v2585_v39, %v2585_v39  ;;  %v2587_v51 = vsub.f32 %v1902_v40, %v4965_v16  ;;  %v1906_v52 = vmul.f32 %v4558_v43, %v539_v35  ;;  %4579 = vrcp.f32 %v1062_v36  ;;  %v550_v38 = vld [vmem:[%s4956_s23 + $0xb08] sm:$0xff]  ;;  %v1073_v39 = vld [vmem:[%s4942_s19 + $0xb60] sm:$0xff] }
 0x174   : > { %v4562_v55 = vpop.eup %4561  ;;  %3609 = vst.msk [vmem:[%s4980_s26 + $0xa88] sm:$0xff] %vm3271_vm0, %v3096_v44  ;;  %v3098_v56 = vmul.f32 %v2586_v45, %v2586_v45  ;;  %v2588_v57 = vsub.f32 %v1904_v46, %v4965_v16  ;;  %v1908_v58 = vmul.f32 %v4560_v49, %v540_v41  ;;  %4581 = vrcp.f32 %v1063_v42  ;;  %v551_v44 = vld [vmem:[%s4956_s23 + $0xb10] sm:$0xff]  ;;  %v1074_v45 = vld [vmem:[%s4942_s19 + $0xb68] sm:$0xff] }
 0x175   : > { %v4564_v61 = vpop.eup %4563  ;;  %3610 = vst.msk [vmem:[%s4980_s26 + $0xa90] sm:$0xff] %vm3271_vm0, %v3097_v50  ;;  %v3099_v62 = vmul.f32 %v2587_v51, %v2587_v51  ;;  %v2589_v63 = vsub.f32 %v1906_v52, %v4965_v16  ;;  %v1910_v0 = vmul.f32 %v4562_v55, %v541_v47  ;;  %4583 = vrcp.f32 %v1064_v48  ;;  %v552_v50 = vld [vmem:[%s4956_s23 + $0xb18] sm:$0xff]  ;;  %v1075_v51 = vld [vmem:[%s4942_s19 + $0xb70] sm:$0xff] }
 0x176   : > { %v4566_v3 = vpop.eup %4565  ;;  %3611 = vst.msk [vmem:[%s4980_s26 + $0xa98] sm:$0xff] %vm3271_vm0, %v3098_v56  ;;  %v3100_v4 = vmul.f32 %v2588_v57, %v2588_v57  ;;  %v2590_v5 = vsub.f32 %v1908_v58, %v4965_v16  ;;  %v1912_v6 = vmul.f32 %v4564_v61, %v542_v53  ;;  %4585 = vrcp.f32 %v1065_v54  ;;  %v553_v56 = vld [vmem:[%s4956_s23 + $0xb20] sm:$0xff]  ;;  %v1076_v57 = vld [vmem:[%s4942_s19 + $0xb78] sm:$0xff] }
 0x177   : > { %v4568_v9 = vpop.eup %4567  ;;  %3612 = vst.msk [vmem:[%s4980_s26 + $0xaa0] sm:$0xff] %vm3271_vm0, %v3099_v62  ;;  %v3101_v10 = vmul.f32 %v2589_v63, %v2589_v63  ;;  %v2591_v11 = vsub.f32 %v1910_v0, %v4965_v16  ;;  %v1914_v12 = vmul.f32 %v4566_v3, %v543_v59  ;;  %4587 = vrcp.f32 %v1066_v60  ;;  %v554_v62 = vld [vmem:[%s4956_s23 + $0xb28] sm:$0xff]  ;;  %v1077_v63 = vld [vmem:[%s4942_s19 + $0xb80] sm:$0xff] }
 0x178   : > { %v4570_v15 = vpop.eup %4569  ;;  %3613 = vst.msk [vmem:[%s4980_s26 + $0xaa8] sm:$0xff] %vm3271_vm0, %v3100_v4  ;;  %v3102_v17 = vmul.f32 %v2590_v5, %v2590_v5  ;;  %v2592_v18 = vsub.f32 %v1912_v6, %v4965_v16  ;;  %v1916_v19 = vmul.f32 %v4568_v9, %v544_v1  ;;  %4589 = vrcp.f32 %v1067_v2  ;;  %v555_v4 = vld [vmem:[%s4956_s23 + $0xb30] sm:$0xff]  ;;  %v1078_v5 = vld [vmem:[%s4942_s19 + $0xb88] sm:$0xff] }
 0x179   : > { %v4572_v22 = vpop.eup %4571  ;;  %3614 = vst.msk [vmem:[%s4980_s26 + $0xab0] sm:$0xff] %vm3271_vm0, %v3101_v10  ;;  %v3103_v23 = vmul.f32 %v2591_v11, %v2591_v11  ;;  %v2593_v24 = vsub.f32 %v1914_v12, %v4965_v16  ;;  %v1918_v25 = vmul.f32 %v4570_v15, %v545_v7  ;;  %4591 = vrcp.f32 %v1068_v8  ;;  %v556_v10 = vld [vmem:[%s4956_s23 + $0xb38] sm:$0xff]  ;;  %v1079_v11 = vld [vmem:[%s4942_s19 + $0xb90] sm:$0xff] }
 0x17a   : > { %v4574_v28 = vpop.eup %4573  ;;  %3615 = vst.msk [vmem:[%s4980_s26 + $0xab8] sm:$0xff] %vm3271_vm0, %v3102_v17  ;;  %v3104_v29 = vmul.f32 %v2592_v18, %v2592_v18  ;;  %v2594_v30 = vsub.f32 %v1916_v19, %v4965_v16  ;;  %v1920_v31 = vmul.f32 %v4572_v22, %v546_v13  ;;  %4593 = vrcp.f32 %v1069_v14  ;;  %v557_v17 = vld [vmem:[%s4956_s23 + $0xb40] sm:$0xff]  ;;  %v1080_v18 = vld [vmem:[%s4942_s19 + $0xb98] sm:$0xff] }
 0x17b   : > { %v4576_v34 = vpop.eup %4575  ;;  %3616 = vst.msk [vmem:[%s4980_s26 + $0xac0] sm:$0xff] %vm3271_vm0, %v3103_v23  ;;  %v3105_v35 = vmul.f32 %v2593_v24, %v2593_v24  ;;  %v2595_v36 = vsub.f32 %v1918_v25, %v4965_v16  ;;  %v1922_v37 = vmul.f32 %v4574_v28, %v547_v20  ;;  %4595 = vrcp.f32 %v1070_v21  ;;  %v558_v23 = vld [vmem:[%s4956_s23 + $0xb48] sm:$0xff]  ;;  %v1081_v24 = vld [vmem:[%s4942_s19 + $0xba0] sm:$0xff] }
 0x17c   : > { %v4578_v40 = vpop.eup %4577  ;;  %3617 = vst.msk [vmem:[%s4980_s26 + $0xac8] sm:$0xff] %vm3271_vm0, %v3104_v29  ;;  %v3106_v41 = vmul.f32 %v2594_v30, %v2594_v30  ;;  %v2596_v42 = vsub.f32 %v1920_v31, %v4965_v16  ;;  %v1924_v43 = vmul.f32 %v4576_v34, %v548_v26  ;;  %4597 = vrcp.f32 %v1071_v27  ;;  %v559_v29 = vld [vmem:[%s4956_s23 + $0xb50] sm:$0xff]  ;;  %v1082_v30 = vld [vmem:[%s4942_s19 + $0xba8] sm:$0xff] }
 0x17d   : > { %v4580_v46 = vpop.eup %4579  ;;  %3618 = vst.msk [vmem:[%s4980_s26 + $0xad0] sm:$0xff] %vm3271_vm0, %v3105_v35  ;;  %v3107_v47 = vmul.f32 %v2595_v36, %v2595_v36  ;;  %v2597_v48 = vsub.f32 %v1922_v37, %v4965_v16  ;;  %v1926_v49 = vmul.f32 %v4578_v40, %v549_v32  ;;  %4599 = vrcp.f32 %v1072_v33  ;;  %v560_v35 = vld [vmem:[%s4956_s23 + $0xb58] sm:$0xff]  ;;  %v1083_v36 = vld [vmem:[%s4942_s19 + $0xbb0] sm:$0xff] }
 0x17e   : > { %v4582_v52 = vpop.eup %4581  ;;  %3619 = vst.msk [vmem:[%s4980_s26 + $0xad8] sm:$0xff] %vm3271_vm0, %v3106_v41  ;;  %v3108_v53 = vmul.f32 %v2596_v42, %v2596_v42  ;;  %v2598_v54 = vsub.f32 %v1924_v43, %v4965_v16  ;;  %v1928_v55 = vmul.f32 %v4580_v46, %v550_v38  ;;  %4601 = vrcp.f32 %v1073_v39  ;;  %v561_v41 = vld [vmem:[%s4956_s23 + $0xb60] sm:$0xff]  ;;  %v1084_v42 = vld [vmem:[%s4942_s19 + $0xbb8] sm:$0xff] }
 0x17f   : > { %v4584_v58 = vpop.eup %4583  ;;  %3620 = vst.msk [vmem:[%s4980_s26 + $0xae0] sm:$0xff] %vm3271_vm0, %v3107_v47  ;;  %v3109_v59 = vmul.f32 %v2597_v48, %v2597_v48  ;;  %v2599_v60 = vsub.f32 %v1926_v49, %v4965_v16  ;;  %v1930_v61 = vmul.f32 %v4582_v52, %v551_v44  ;;  %4603 = vrcp.f32 %v1074_v45  ;;  %v562_v47 = vld [vmem:[%s4956_s23 + $0xb68] sm:$0xff]  ;;  %v1085_v48 = vld [vmem:[%s4942_s19 + $0xbc0] sm:$0xff] }
 0x180   : > { %v4586_v0 = vpop.eup %4585  ;;  %3621 = vst.msk [vmem:[%s4980_s26 + $0xae8] sm:$0xff] %vm3271_vm0, %v3108_v53  ;;  %v3110_v1 = vmul.f32 %v2598_v54, %v2598_v54  ;;  %v2600_v2 = vsub.f32 %v1928_v55, %v4965_v16  ;;  %v1932_v3 = vmul.f32 %v4584_v58, %v552_v50  ;;  %4605 = vrcp.f32 %v1075_v51  ;;  %v563_v53 = vld [vmem:[%s4956_s23 + $0xb70] sm:$0xff]  ;;  %v1086_v54 = vld [vmem:[%s4942_s19 + $0xbc8] sm:$0xff] }
 0x181   : > { %v4588_v6 = vpop.eup %4587  ;;  %3622 = vst.msk [vmem:[%s4980_s26 + $0xaf0] sm:$0xff] %vm3271_vm0, %v3109_v59  ;;  %v3111_v7 = vmul.f32 %v2599_v60, %v2599_v60  ;;  %v2601_v8 = vsub.f32 %v1930_v61, %v4965_v16  ;;  %v1934_v9 = vmul.f32 %v4586_v0, %v553_v56  ;;  %4607 = vrcp.f32 %v1076_v57  ;;  %v564_v59 = vld [vmem:[%s4956_s23 + $0xb78] sm:$0xff]  ;;  %v1087_v60 = vld [vmem:[%s4942_s19 + $0xbd0] sm:$0xff] }
 0x182   : > { %v4590_v12 = vpop.eup %4589  ;;  %3623 = vst.msk [vmem:[%s4980_s26 + $0xaf8] sm:$0xff] %vm3271_vm0, %v3110_v1  ;;  %v3112_v13 = vmul.f32 %v2600_v2, %v2600_v2  ;;  %v2602_v14 = vsub.f32 %v1932_v3, %v4965_v16  ;;  %v1936_v15 = vmul.f32 %v4588_v6, %v554_v62  ;;  %4609 = vrcp.f32 %v1077_v63  ;;  %v565_v1 = vld [vmem:[%s4956_s23 + $0xb80] sm:$0xff]  ;;  %v1088_v2 = vld [vmem:[%s4942_s19 + $0xbd8] sm:$0xff] }
 0x183   : > { %v4592_v19 = vpop.eup %4591  ;;  %3624 = vst.msk [vmem:[%s4980_s26 + $0xb00] sm:$0xff] %vm3271_vm0, %v3111_v7  ;;  %v3113_v20 = vmul.f32 %v2601_v8, %v2601_v8  ;;  %v2603_v21 = vsub.f32 %v1934_v9, %v4965_v16  ;;  %v1938_v22 = vmul.f32 %v4590_v12, %v555_v4  ;;  %4611 = vrcp.f32 %v1078_v5  ;;  %v566_v7 = vld [vmem:[%s4956_s23 + $0xb88] sm:$0xff]  ;;  %v1089_v8 = vld [vmem:[%s4942_s19 + $0xbe0] sm:$0xff] }
 0x184   : > { %v4594_v25 = vpop.eup %4593  ;;  %3625 = vst.msk [vmem:[%s4980_s26 + $0xb08] sm:$0xff] %vm3271_vm0, %v3112_v13  ;;  %v3114_v26 = vmul.f32 %v2602_v14, %v2602_v14  ;;  %v2604_v27 = vsub.f32 %v1936_v15, %v4965_v16  ;;  %v1940_v28 = vmul.f32 %v4592_v19, %v556_v10  ;;  %4613 = vrcp.f32 %v1079_v11  ;;  %v567_v13 = vld [vmem:[%s4956_s23 + $0xb90] sm:$0xff]  ;;  %v1090_v14 = vld [vmem:[%s4942_s19 + $0xbe8] sm:$0xff] }
 0x185   : > { %v4596_v31 = vpop.eup %4595  ;;  %3626 = vst.msk [vmem:[%s4980_s26 + $0xb10] sm:$0xff] %vm3271_vm0, %v3113_v20  ;;  %v3115_v32 = vmul.f32 %v2603_v21, %v2603_v21  ;;  %v2605_v33 = vsub.f32 %v1938_v22, %v4965_v16  ;;  %v1942_v34 = vmul.f32 %v4594_v25, %v557_v17  ;;  %4615 = vrcp.f32 %v1080_v18  ;;  %v568_v20 = vld [vmem:[%s4956_s23 + $0xb98] sm:$0xff]  ;;  %v1091_v21 = vld [vmem:[%s4942_s19 + $0xbf0] sm:$0xff] }
 0x186   : > { %v4598_v37 = vpop.eup %4597  ;;  %3627 = vst.msk [vmem:[%s4980_s26 + $0xb18] sm:$0xff] %vm3271_vm0, %v3114_v26  ;;  %v3116_v38 = vmul.f32 %v2604_v27, %v2604_v27  ;;  %v2606_v39 = vsub.f32 %v1940_v28, %v4965_v16  ;;  %v1944_v40 = vmul.f32 %v4596_v31, %v558_v23  ;;  %4617 = vrcp.f32 %v1081_v24  ;;  %v569_v26 = vld [vmem:[%s4956_s23 + $0xba0] sm:$0xff]  ;;  %v1092_v27 = vld [vmem:[%s4942_s19 + $0xbf8] sm:$0xff] }
 0x187   : > { %v4600_v43 = vpop.eup %4599  ;;  %3628 = vst.msk [vmem:[%s4980_s26 + $0xb20] sm:$0xff] %vm3271_vm0, %v3115_v32  ;;  %v3117_v44 = vmul.f32 %v2605_v33, %v2605_v33  ;;  %v2607_v45 = vsub.f32 %v1942_v34, %v4965_v16  ;;  %v1946_v46 = vmul.f32 %v4598_v37, %v559_v29  ;;  %4619 = vrcp.f32 %v1082_v30  ;;  %v570_v32 = vld [vmem:[%s4956_s23 + $0xba8] sm:$0xff]  ;;  %v1093_v33 = vld [vmem:[%s4942_s19 + $0xc00] sm:$0xff] }
 0x188   : > { %v4602_v49 = vpop.eup %4601  ;;  %3629 = vst.msk [vmem:[%s4980_s26 + $0xb28] sm:$0xff] %vm3271_vm0, %v3116_v38  ;;  %v3118_v50 = vmul.f32 %v2606_v39, %v2606_v39  ;;  %v2608_v51 = vsub.f32 %v1944_v40, %v4965_v16  ;;  %v1948_v52 = vmul.f32 %v4600_v43, %v560_v35  ;;  %4621 = vrcp.f32 %v1083_v36  ;;  %v571_v38 = vld [vmem:[%s4956_s23 + $0xbb0] sm:$0xff]  ;;  %v1094_v39 = vld [vmem:[%s4942_s19 + $0xc08] sm:$0xff] }
 0x189   : > { %v4604_v55 = vpop.eup %4603  ;;  %3630 = vst.msk [vmem:[%s4980_s26 + $0xb30] sm:$0xff] %vm3271_vm0, %v3117_v44  ;;  %v3119_v56 = vmul.f32 %v2607_v45, %v2607_v45  ;;  %v2609_v57 = vsub.f32 %v1946_v46, %v4965_v16  ;;  %v1950_v58 = vmul.f32 %v4602_v49, %v561_v41  ;;  %4623 = vrcp.f32 %v1084_v42  ;;  %v572_v44 = vld [vmem:[%s4956_s23 + $0xbb8] sm:$0xff]  ;;  %v1095_v45 = vld [vmem:[%s4942_s19 + $0xc10] sm:$0xff] }
 0x18a   : > { %v4606_v61 = vpop.eup %4605  ;;  %3631 = vst.msk [vmem:[%s4980_s26 + $0xb38] sm:$0xff] %vm3271_vm0, %v3118_v50  ;;  %v3120_v62 = vmul.f32 %v2608_v51, %v2608_v51  ;;  %v2610_v63 = vsub.f32 %v1948_v52, %v4965_v16  ;;  %v1952_v0 = vmul.f32 %v4604_v55, %v562_v47  ;;  %4625 = vrcp.f32 %v1085_v48  ;;  %v573_v50 = vld [vmem:[%s4956_s23 + $0xbc0] sm:$0xff]  ;;  %v1096_v51 = vld [vmem:[%s4942_s19 + $0xc18] sm:$0xff] }
 0x18b   : > { %v4608_v3 = vpop.eup %4607  ;;  %3632 = vst.msk [vmem:[%s4980_s26 + $0xb40] sm:$0xff] %vm3271_vm0, %v3119_v56  ;;  %v3121_v4 = vmul.f32 %v2609_v57, %v2609_v57  ;;  %v2611_v5 = vsub.f32 %v1950_v58, %v4965_v16  ;;  %v1954_v6 = vmul.f32 %v4606_v61, %v563_v53  ;;  %4627 = vrcp.f32 %v1086_v54  ;;  %v574_v56 = vld [vmem:[%s4956_s23 + $0xbc8] sm:$0xff]  ;;  %v1097_v57 = vld [vmem:[%s4942_s19 + $0xc20] sm:$0xff] }
 0x18c   : > { %v4610_v9 = vpop.eup %4609  ;;  %3633 = vst.msk [vmem:[%s4980_s26 + $0xb48] sm:$0xff] %vm3271_vm0, %v3120_v62  ;;  %v3122_v10 = vmul.f32 %v2610_v63, %v2610_v63  ;;  %v2612_v11 = vsub.f32 %v1952_v0, %v4965_v16  ;;  %v1956_v12 = vmul.f32 %v4608_v3, %v564_v59  ;;  %4629 = vrcp.f32 %v1087_v60  ;;  %v575_v62 = vld [vmem:[%s4956_s23 + $0xbd0] sm:$0xff]  ;;  %v1098_v63 = vld [vmem:[%s4942_s19 + $0xc28] sm:$0xff] }
 0x18d   : > { %v4612_v15 = vpop.eup %4611  ;;  %3634 = vst.msk [vmem:[%s4980_s26 + $0xb50] sm:$0xff] %vm3271_vm0, %v3121_v4  ;;  %v3123_v17 = vmul.f32 %v2611_v5, %v2611_v5  ;;  %v2613_v18 = vsub.f32 %v1954_v6, %v4965_v16  ;;  %v1958_v19 = vmul.f32 %v4610_v9, %v565_v1  ;;  %4631 = vrcp.f32 %v1088_v2  ;;  %v576_v4 = vld [vmem:[%s4956_s23 + $0xbd8] sm:$0xff]  ;;  %v1099_v5 = vld [vmem:[%s4942_s19 + $0xc30] sm:$0xff] }
 0x18e   : > { %v4614_v22 = vpop.eup %4613  ;;  %3635 = vst.msk [vmem:[%s4980_s26 + $0xb58] sm:$0xff] %vm3271_vm0, %v3122_v10  ;;  %v3124_v23 = vmul.f32 %v2612_v11, %v2612_v11  ;;  %v2614_v24 = vsub.f32 %v1956_v12, %v4965_v16  ;;  %v1960_v25 = vmul.f32 %v4612_v15, %v566_v7  ;;  %4633 = vrcp.f32 %v1089_v8  ;;  %v577_v10 = vld [vmem:[%s4956_s23 + $0xbe0] sm:$0xff]  ;;  %v1100_v11 = vld [vmem:[%s4942_s19 + $0xc38] sm:$0xff] }
 0x18f   : > { %v4616_v28 = vpop.eup %4615  ;;  %3636 = vst.msk [vmem:[%s4980_s26 + $0xb60] sm:$0xff] %vm3271_vm0, %v3123_v17  ;;  %v3125_v29 = vmul.f32 %v2613_v18, %v2613_v18  ;;  %v2615_v30 = vsub.f32 %v1958_v19, %v4965_v16  ;;  %v1962_v31 = vmul.f32 %v4614_v22, %v567_v13  ;;  %4635 = vrcp.f32 %v1090_v14  ;;  %v578_v17 = vld [vmem:[%s4956_s23 + $0xbe8] sm:$0xff]  ;;  %v1101_v18 = vld [vmem:[%s4942_s19 + $0xc40] sm:$0xff] }
 0x190   : > { %v4618_v34 = vpop.eup %4617  ;;  %3637 = vst.msk [vmem:[%s4980_s26 + $0xb68] sm:$0xff] %vm3271_vm0, %v3124_v23  ;;  %v3126_v35 = vmul.f32 %v2614_v24, %v2614_v24  ;;  %v2616_v36 = vsub.f32 %v1960_v25, %v4965_v16  ;;  %v1964_v37 = vmul.f32 %v4616_v28, %v568_v20  ;;  %4637 = vrcp.f32 %v1091_v21  ;;  %v579_v23 = vld [vmem:[%s4956_s23 + $0xbf0] sm:$0xff]  ;;  %v1102_v24 = vld [vmem:[%s4942_s19 + $0xc48] sm:$0xff] }
 0x191   : > { %v4620_v40 = vpop.eup %4619  ;;  %3638 = vst.msk [vmem:[%s4980_s26 + $0xb70] sm:$0xff] %vm3271_vm0, %v3125_v29  ;;  %v3127_v41 = vmul.f32 %v2615_v30, %v2615_v30  ;;  %v2617_v42 = vsub.f32 %v1962_v31, %v4965_v16  ;;  %v1966_v43 = vmul.f32 %v4618_v34, %v569_v26  ;;  %4639 = vrcp.f32 %v1092_v27  ;;  %v580_v29 = vld [vmem:[%s4956_s23 + $0xbf8] sm:$0xff]  ;;  %v1103_v30 = vld [vmem:[%s4942_s19 + $0xc50] sm:$0xff] }
 0x192   : > { %v4622_v46 = vpop.eup %4621  ;;  %3639 = vst.msk [vmem:[%s4980_s26 + $0xb78] sm:$0xff] %vm3271_vm0, %v3126_v35  ;;  %v3128_v47 = vmul.f32 %v2616_v36, %v2616_v36  ;;  %v2618_v48 = vsub.f32 %v1964_v37, %v4965_v16  ;;  %v1968_v49 = vmul.f32 %v4620_v40, %v570_v32  ;;  %4641 = vrcp.f32 %v1093_v33  ;;  %v581_v35 = vld [vmem:[%s4956_s23 + $0xc00] sm:$0xff]  ;;  %v1104_v36 = vld [vmem:[%s4942_s19 + $0xc58] sm:$0xff] }
 0x193   : > { %v4624_v52 = vpop.eup %4623  ;;  %3640 = vst.msk [vmem:[%s4980_s26 + $0xb80] sm:$0xff] %vm3271_vm0, %v3127_v41  ;;  %v3129_v53 = vmul.f32 %v2617_v42, %v2617_v42  ;;  %v2619_v54 = vsub.f32 %v1966_v43, %v4965_v16  ;;  %v1970_v55 = vmul.f32 %v4622_v46, %v571_v38  ;;  %4643 = vrcp.f32 %v1094_v39  ;;  %v582_v41 = vld [vmem:[%s4956_s23 + $0xc08] sm:$0xff]  ;;  %v1105_v42 = vld [vmem:[%s4942_s19 + $0xc60] sm:$0xff] }
 0x194   : > { %v4626_v58 = vpop.eup %4625  ;;  %3641 = vst.msk [vmem:[%s4980_s26 + $0xb88] sm:$0xff] %vm3271_vm0, %v3128_v47  ;;  %v3130_v59 = vmul.f32 %v2618_v48, %v2618_v48  ;;  %v2620_v60 = vsub.f32 %v1968_v49, %v4965_v16  ;;  %v1972_v61 = vmul.f32 %v4624_v52, %v572_v44  ;;  %4645 = vrcp.f32 %v1095_v45  ;;  %v583_v47 = vld [vmem:[%s4956_s23 + $0xc10] sm:$0xff]  ;;  %v1106_v48 = vld [vmem:[%s4942_s19 + $0xc68] sm:$0xff] }
 0x195   : > { %v4628_v0 = vpop.eup %4627  ;;  %3642 = vst.msk [vmem:[%s4980_s26 + $0xb90] sm:$0xff] %vm3271_vm0, %v3129_v53  ;;  %v3131_v1 = vmul.f32 %v2619_v54, %v2619_v54  ;;  %v2621_v2 = vsub.f32 %v1970_v55, %v4965_v16  ;;  %v1974_v3 = vmul.f32 %v4626_v58, %v573_v50  ;;  %4647 = vrcp.f32 %v1096_v51  ;;  %v584_v53 = vld [vmem:[%s4956_s23 + $0xc18] sm:$0xff]  ;;  %v1107_v54 = vld [vmem:[%s4942_s19 + $0xc70] sm:$0xff] }
 0x196   : > { %v4630_v6 = vpop.eup %4629  ;;  %3643 = vst.msk [vmem:[%s4980_s26 + $0xb98] sm:$0xff] %vm3271_vm0, %v3130_v59  ;;  %v3132_v7 = vmul.f32 %v2620_v60, %v2620_v60  ;;  %v2622_v8 = vsub.f32 %v1972_v61, %v4965_v16  ;;  %v1976_v9 = vmul.f32 %v4628_v0, %v574_v56  ;;  %4649 = vrcp.f32 %v1097_v57  ;;  %v585_v59 = vld [vmem:[%s4956_s23 + $0xc20] sm:$0xff]  ;;  %v1108_v60 = vld [vmem:[%s4942_s19 + $0xc78] sm:$0xff] }
 0x197   : > { %v4632_v12 = vpop.eup %4631  ;;  %3644 = vst.msk [vmem:[%s4980_s26 + $0xba0] sm:$0xff] %vm3271_vm0, %v3131_v1  ;;  %v3133_v13 = vmul.f32 %v2621_v2, %v2621_v2  ;;  %v2623_v14 = vsub.f32 %v1974_v3, %v4965_v16  ;;  %v1978_v15 = vmul.f32 %v4630_v6, %v575_v62  ;;  %4651 = vrcp.f32 %v1098_v63  ;;  %v586_v1 = vld [vmem:[%s4956_s23 + $0xc28] sm:$0xff]  ;;  %v1109_v2 = vld [vmem:[%s4942_s19 + $0xc80] sm:$0xff] }
 0x198   : > { %v4634_v19 = vpop.eup %4633  ;;  %3645 = vst.msk [vmem:[%s4980_s26 + $0xba8] sm:$0xff] %vm3271_vm0, %v3132_v7  ;;  %v3134_v20 = vmul.f32 %v2622_v8, %v2622_v8  ;;  %v2624_v21 = vsub.f32 %v1976_v9, %v4965_v16  ;;  %v1980_v22 = vmul.f32 %v4632_v12, %v576_v4  ;;  %4653 = vrcp.f32 %v1099_v5  ;;  %v587_v7 = vld [vmem:[%s4956_s23 + $0xc30] sm:$0xff]  ;;  %v1110_v8 = vld [vmem:[%s4942_s19 + $0xc88] sm:$0xff] }
 0x199   : > { %v4636_v25 = vpop.eup %4635  ;;  %3646 = vst.msk [vmem:[%s4980_s26 + $0xbb0] sm:$0xff] %vm3271_vm0, %v3133_v13  ;;  %v3135_v26 = vmul.f32 %v2623_v14, %v2623_v14  ;;  %v2625_v27 = vsub.f32 %v1978_v15, %v4965_v16  ;;  %v1982_v28 = vmul.f32 %v4634_v19, %v577_v10  ;;  %4655 = vrcp.f32 %v1100_v11  ;;  %v588_v13 = vld [vmem:[%s4956_s23 + $0xc38] sm:$0xff]  ;;  %v1111_v14 = vld [vmem:[%s4942_s19 + $0xc90] sm:$0xff] }
 0x19a   : > { %v4638_v31 = vpop.eup %4637  ;;  %3647 = vst.msk [vmem:[%s4980_s26 + $0xbb8] sm:$0xff] %vm3271_vm0, %v3134_v20  ;;  %v3136_v32 = vmul.f32 %v2624_v21, %v2624_v21  ;;  %v2626_v33 = vsub.f32 %v1980_v22, %v4965_v16  ;;  %v1984_v34 = vmul.f32 %v4636_v25, %v578_v17  ;;  %4657 = vrcp.f32 %v1101_v18  ;;  %v589_v20 = vld [vmem:[%s4956_s23 + $0xc40] sm:$0xff]  ;;  %v1112_v21 = vld [vmem:[%s4942_s19 + $0xc98] sm:$0xff] }
 0x19b   : > { %v4640_v37 = vpop.eup %4639  ;;  %3648 = vst.msk [vmem:[%s4980_s26 + $0xbc0] sm:$0xff] %vm3271_vm0, %v3135_v26  ;;  %v3137_v38 = vmul.f32 %v2625_v27, %v2625_v27  ;;  %v2627_v39 = vsub.f32 %v1982_v28, %v4965_v16  ;;  %v1986_v40 = vmul.f32 %v4638_v31, %v579_v23  ;;  %4659 = vrcp.f32 %v1102_v24  ;;  %v590_v26 = vld [vmem:[%s4956_s23 + $0xc48] sm:$0xff]  ;;  %v1113_v27 = vld [vmem:[%s4942_s19 + $0xca0] sm:$0xff] }
 0x19c   : > { %v4642_v43 = vpop.eup %4641  ;;  %3649 = vst.msk [vmem:[%s4980_s26 + $0xbc8] sm:$0xff] %vm3271_vm0, %v3136_v32  ;;  %v3138_v44 = vmul.f32 %v2626_v33, %v2626_v33  ;;  %v2628_v45 = vsub.f32 %v1984_v34, %v4965_v16  ;;  %v1988_v46 = vmul.f32 %v4640_v37, %v580_v29  ;;  %4661 = vrcp.f32 %v1103_v30  ;;  %v591_v32 = vld [vmem:[%s4956_s23 + $0xc50] sm:$0xff]  ;;  %v1114_v33 = vld [vmem:[%s4942_s19 + $0xca8] sm:$0xff] }
 0x19d   : > { %v4644_v49 = vpop.eup %4643  ;;  %3650 = vst.msk [vmem:[%s4980_s26 + $0xbd0] sm:$0xff] %vm3271_vm0, %v3137_v38  ;;  %v3139_v50 = vmul.f32 %v2627_v39, %v2627_v39  ;;  %v2629_v51 = vsub.f32 %v1986_v40, %v4965_v16  ;;  %v1990_v52 = vmul.f32 %v4642_v43, %v581_v35  ;;  %4663 = vrcp.f32 %v1104_v36  ;;  %v592_v38 = vld [vmem:[%s4956_s23 + $0xc58] sm:$0xff]  ;;  %v1115_v39 = vld [vmem:[%s4942_s19 + $0xcb0] sm:$0xff] }
 0x19e   : > { %v4646_v55 = vpop.eup %4645  ;;  %3651 = vst.msk [vmem:[%s4980_s26 + $0xbd8] sm:$0xff] %vm3271_vm0, %v3138_v44  ;;  %v3140_v56 = vmul.f32 %v2628_v45, %v2628_v45  ;;  %v2630_v57 = vsub.f32 %v1988_v46, %v4965_v16  ;;  %v1992_v58 = vmul.f32 %v4644_v49, %v582_v41  ;;  %4665 = vrcp.f32 %v1105_v42  ;;  %v593_v44 = vld [vmem:[%s4956_s23 + $0xc60] sm:$0xff]  ;;  %v1116_v45 = vld [vmem:[%s4942_s19 + $0xcb8] sm:$0xff] }
 0x19f   : > { %v4648_v61 = vpop.eup %4647  ;;  %3652 = vst.msk [vmem:[%s4980_s26 + $0xbe0] sm:$0xff] %vm3271_vm0, %v3139_v50  ;;  %v3141_v62 = vmul.f32 %v2629_v51, %v2629_v51  ;;  %v2631_v63 = vsub.f32 %v1990_v52, %v4965_v16  ;;  %v1994_v0 = vmul.f32 %v4646_v55, %v583_v47  ;;  %4667 = vrcp.f32 %v1106_v48  ;;  %v594_v50 = vld [vmem:[%s4956_s23 + $0xc68] sm:$0xff]  ;;  %v1117_v51 = vld [vmem:[%s4942_s19 + $0xcc0] sm:$0xff] }
 0x1a0   : > { %v4650_v3 = vpop.eup %4649  ;;  %3653 = vst.msk [vmem:[%s4980_s26 + $0xbe8] sm:$0xff] %vm3271_vm0, %v3140_v56  ;;  %v3142_v4 = vmul.f32 %v2630_v57, %v2630_v57  ;;  %v2632_v5 = vsub.f32 %v1992_v58, %v4965_v16  ;;  %v1996_v6 = vmul.f32 %v4648_v61, %v584_v53  ;;  %4669 = vrcp.f32 %v1107_v54  ;;  %v595_v56 = vld [vmem:[%s4956_s23 + $0xc70] sm:$0xff]  ;;  %v1118_v57 = vld [vmem:[%s4942_s19 + $0xcc8] sm:$0xff] }
 0x1a1   : > { %v4652_v9 = vpop.eup %4651  ;;  %3654 = vst.msk [vmem:[%s4980_s26 + $0xbf0] sm:$0xff] %vm3271_vm0, %v3141_v62  ;;  %v3143_v10 = vmul.f32 %v2631_v63, %v2631_v63  ;;  %v2633_v11 = vsub.f32 %v1994_v0, %v4965_v16  ;;  %v1998_v12 = vmul.f32 %v4650_v3, %v585_v59  ;;  %4671 = vrcp.f32 %v1108_v60  ;;  %v596_v62 = vld [vmem:[%s4956_s23 + $0xc78] sm:$0xff]  ;;  %v1119_v63 = vld [vmem:[%s4942_s19 + $0xcd0] sm:$0xff] }
 0x1a2   : > { %v4654_v15 = vpop.eup %4653  ;;  %3655 = vst.msk [vmem:[%s4980_s26 + $0xbf8] sm:$0xff] %vm3271_vm0, %v3142_v4  ;;  %v3144_v17 = vmul.f32 %v2632_v5, %v2632_v5  ;;  %v2634_v18 = vsub.f32 %v1996_v6, %v4965_v16  ;;  %v2000_v19 = vmul.f32 %v4652_v9, %v586_v1  ;;  %4673 = vrcp.f32 %v1109_v2  ;;  %v597_v4 = vld [vmem:[%s4956_s23 + $0xc80] sm:$0xff]  ;;  %v1120_v5 = vld [vmem:[%s4942_s19 + $0xcd8] sm:$0xff] }
 0x1a3   : > { %v4656_v22 = vpop.eup %4655  ;;  %3656 = vst.msk [vmem:[%s4980_s26 + $0xc00] sm:$0xff] %vm3271_vm0, %v3143_v10  ;;  %v3145_v23 = vmul.f32 %v2633_v11, %v2633_v11  ;;  %v2635_v24 = vsub.f32 %v1998_v12, %v4965_v16  ;;  %v2002_v25 = vmul.f32 %v4654_v15, %v587_v7  ;;  %4675 = vrcp.f32 %v1110_v8  ;;  %v598_v10 = vld [vmem:[%s4956_s23 + $0xc88] sm:$0xff]  ;;  %v1121_v11 = vld [vmem:[%s4942_s19 + $0xce0] sm:$0xff] }
 0x1a4   : > { %v4658_v28 = vpop.eup %4657  ;;  %3657 = vst.msk [vmem:[%s4980_s26 + $0xc08] sm:$0xff] %vm3271_vm0, %v3144_v17  ;;  %v3146_v29 = vmul.f32 %v2634_v18, %v2634_v18  ;;  %v2636_v30 = vsub.f32 %v2000_v19, %v4965_v16  ;;  %v2004_v31 = vmul.f32 %v4656_v22, %v588_v13  ;;  %4677 = vrcp.f32 %v1111_v14  ;;  %v599_v17 = vld [vmem:[%s4956_s23 + $0xc90] sm:$0xff]  ;;  %v1122_v18 = vld [vmem:[%s4942_s19 + $0xce8] sm:$0xff] }
 0x1a5   : > { %v4660_v34 = vpop.eup %4659  ;;  %3658 = vst.msk [vmem:[%s4980_s26 + $0xc10] sm:$0xff] %vm3271_vm0, %v3145_v23  ;;  %v3147_v35 = vmul.f32 %v2635_v24, %v2635_v24  ;;  %v2637_v36 = vsub.f32 %v2002_v25, %v4965_v16  ;;  %v2006_v37 = vmul.f32 %v4658_v28, %v589_v20  ;;  %4679 = vrcp.f32 %v1112_v21  ;;  %v600_v23 = vld [vmem:[%s4956_s23 + $0xc98] sm:$0xff]  ;;  %v1123_v24 = vld [vmem:[%s4942_s19 + $0xcf0] sm:$0xff] }
 0x1a6   : > { %v4662_v40 = vpop.eup %4661  ;;  %3659 = vst.msk [vmem:[%s4980_s26 + $0xc18] sm:$0xff] %vm3271_vm0, %v3146_v29  ;;  %v3148_v41 = vmul.f32 %v2636_v30, %v2636_v30  ;;  %v2638_v42 = vsub.f32 %v2004_v31, %v4965_v16  ;;  %v2008_v43 = vmul.f32 %v4660_v34, %v590_v26  ;;  %4681 = vrcp.f32 %v1113_v27  ;;  %v601_v29 = vld [vmem:[%s4956_s23 + $0xca0] sm:$0xff]  ;;  %v1124_v30 = vld [vmem:[%s4942_s19 + $0xcf8] sm:$0xff] }
 0x1a7   : > { %v4664_v46 = vpop.eup %4663  ;;  %3660 = vst.msk [vmem:[%s4980_s26 + $0xc20] sm:$0xff] %vm3271_vm0, %v3147_v35  ;;  %v3149_v47 = vmul.f32 %v2637_v36, %v2637_v36  ;;  %v2639_v48 = vsub.f32 %v2006_v37, %v4965_v16  ;;  %v2010_v49 = vmul.f32 %v4662_v40, %v591_v32  ;;  %4683 = vrcp.f32 %v1114_v33  ;;  %v602_v35 = vld [vmem:[%s4956_s23 + $0xca8] sm:$0xff]  ;;  %v1125_v36 = vld [vmem:[%s4942_s19 + $0xd00] sm:$0xff] }
 0x1a8   : > { %v4666_v52 = vpop.eup %4665  ;;  %3661 = vst.msk [vmem:[%s4980_s26 + $0xc28] sm:$0xff] %vm3271_vm0, %v3148_v41  ;;  %v3150_v53 = vmul.f32 %v2638_v42, %v2638_v42  ;;  %v2640_v54 = vsub.f32 %v2008_v43, %v4965_v16  ;;  %v2012_v55 = vmul.f32 %v4664_v46, %v592_v38  ;;  %4685 = vrcp.f32 %v1115_v39  ;;  %v603_v41 = vld [vmem:[%s4956_s23 + $0xcb0] sm:$0xff]  ;;  %v1126_v42 = vld [vmem:[%s4942_s19 + $0xd08] sm:$0xff] }
 0x1a9   : > { %v4668_v58 = vpop.eup %4667  ;;  %3662 = vst.msk [vmem:[%s4980_s26 + $0xc30] sm:$0xff] %vm3271_vm0, %v3149_v47  ;;  %v3151_v59 = vmul.f32 %v2639_v48, %v2639_v48  ;;  %v2641_v60 = vsub.f32 %v2010_v49, %v4965_v16  ;;  %v2014_v61 = vmul.f32 %v4666_v52, %v593_v44  ;;  %4687 = vrcp.f32 %v1116_v45  ;;  %v604_v47 = vld [vmem:[%s4956_s23 + $0xcb8] sm:$0xff]  ;;  %v1127_v48 = vld [vmem:[%s4942_s19 + $0xd10] sm:$0xff] }
 0x1aa   : > { %v4670_v0 = vpop.eup %4669  ;;  %3663 = vst.msk [vmem:[%s4980_s26 + $0xc38] sm:$0xff] %vm3271_vm0, %v3150_v53  ;;  %v3152_v1 = vmul.f32 %v2640_v54, %v2640_v54  ;;  %v2642_v2 = vsub.f32 %v2012_v55, %v4965_v16  ;;  %v2016_v3 = vmul.f32 %v4668_v58, %v594_v50  ;;  %4689 = vrcp.f32 %v1117_v51  ;;  %v605_v53 = vld [vmem:[%s4956_s23 + $0xcc0] sm:$0xff]  ;;  %v1128_v54 = vld [vmem:[%s4942_s19 + $0xd18] sm:$0xff] }
 0x1ab   : > { %v4672_v6 = vpop.eup %4671  ;;  %3664 = vst.msk [vmem:[%s4980_s26 + $0xc40] sm:$0xff] %vm3271_vm0, %v3151_v59  ;;  %v3153_v7 = vmul.f32 %v2641_v60, %v2641_v60  ;;  %v2643_v8 = vsub.f32 %v2014_v61, %v4965_v16  ;;  %v2018_v9 = vmul.f32 %v4670_v0, %v595_v56  ;;  %4691 = vrcp.f32 %v1118_v57  ;;  %v606_v59 = vld [vmem:[%s4956_s23 + $0xcc8] sm:$0xff]  ;;  %v1129_v60 = vld [vmem:[%s4942_s19 + $0xd20] sm:$0xff] }
 0x1ac   : > { %v4674_v12 = vpop.eup %4673  ;;  %3665 = vst.msk [vmem:[%s4980_s26 + $0xc48] sm:$0xff] %vm3271_vm0, %v3152_v1  ;;  %v3154_v13 = vmul.f32 %v2642_v2, %v2642_v2  ;;  %v2644_v14 = vsub.f32 %v2016_v3, %v4965_v16  ;;  %v2020_v15 = vmul.f32 %v4672_v6, %v596_v62  ;;  %4693 = vrcp.f32 %v1119_v63  ;;  %v607_v1 = vld [vmem:[%s4956_s23 + $0xcd0] sm:$0xff]  ;;  %v1130_v2 = vld [vmem:[%s4942_s19 + $0xd28] sm:$0xff] }
 0x1ad   : > { %v4676_v19 = vpop.eup %4675  ;;  %3666 = vst.msk [vmem:[%s4980_s26 + $0xc50] sm:$0xff] %vm3271_vm0, %v3153_v7  ;;  %v3155_v20 = vmul.f32 %v2643_v8, %v2643_v8  ;;  %v2645_v21 = vsub.f32 %v2018_v9, %v4965_v16  ;;  %v2022_v22 = vmul.f32 %v4674_v12, %v597_v4  ;;  %4695 = vrcp.f32 %v1120_v5  ;;  %v608_v7 = vld [vmem:[%s4956_s23 + $0xcd8] sm:$0xff]  ;;  %v1131_v8 = vld [vmem:[%s4942_s19 + $0xd30] sm:$0xff] }
 0x1ae   : > { %v4678_v25 = vpop.eup %4677  ;;  %3667 = vst.msk [vmem:[%s4980_s26 + $0xc58] sm:$0xff] %vm3271_vm0, %v3154_v13  ;;  %v3156_v26 = vmul.f32 %v2644_v14, %v2644_v14  ;;  %v2646_v27 = vsub.f32 %v2020_v15, %v4965_v16  ;;  %v2024_v28 = vmul.f32 %v4676_v19, %v598_v10  ;;  %4697 = vrcp.f32 %v1121_v11  ;;  %v609_v13 = vld [vmem:[%s4956_s23 + $0xce0] sm:$0xff]  ;;  %v1132_v14 = vld [vmem:[%s4942_s19 + $0xd38] sm:$0xff] }
 0x1af   : > { %v4680_v31 = vpop.eup %4679  ;;  %3668 = vst.msk [vmem:[%s4980_s26 + $0xc60] sm:$0xff] %vm3271_vm0, %v3155_v20  ;;  %v3157_v32 = vmul.f32 %v2645_v21, %v2645_v21  ;;  %v2647_v33 = vsub.f32 %v2022_v22, %v4965_v16  ;;  %v2026_v34 = vmul.f32 %v4678_v25, %v599_v17  ;;  %4699 = vrcp.f32 %v1122_v18  ;;  %v610_v20 = vld [vmem:[%s4956_s23 + $0xce8] sm:$0xff]  ;;  %v1133_v21 = vld [vmem:[%s4942_s19 + $0xd40] sm:$0xff] }
 0x1b0   : > { %v4682_v37 = vpop.eup %4681  ;;  %3669 = vst.msk [vmem:[%s4980_s26 + $0xc68] sm:$0xff] %vm3271_vm0, %v3156_v26  ;;  %v3158_v38 = vmul.f32 %v2646_v27, %v2646_v27  ;;  %v2648_v39 = vsub.f32 %v2024_v28, %v4965_v16  ;;  %v2028_v40 = vmul.f32 %v4680_v31, %v600_v23  ;;  %4701 = vrcp.f32 %v1123_v24  ;;  %v611_v26 = vld [vmem:[%s4956_s23 + $0xcf0] sm:$0xff]  ;;  %v1134_v27 = vld [vmem:[%s4942_s19 + $0xd48] sm:$0xff] }
 0x1b1   : > { %v4684_v43 = vpop.eup %4683  ;;  %3670 = vst.msk [vmem:[%s4980_s26 + $0xc70] sm:$0xff] %vm3271_vm0, %v3157_v32  ;;  %v3159_v44 = vmul.f32 %v2647_v33, %v2647_v33  ;;  %v2649_v45 = vsub.f32 %v2026_v34, %v4965_v16  ;;  %v2030_v46 = vmul.f32 %v4682_v37, %v601_v29  ;;  %4703 = vrcp.f32 %v1124_v30  ;;  %v612_v32 = vld [vmem:[%s4956_s23 + $0xcf8] sm:$0xff]  ;;  %v1135_v33 = vld [vmem:[%s4942_s19 + $0xd50] sm:$0xff] }
 0x1b2   : > { %v4686_v49 = vpop.eup %4685  ;;  %3671 = vst.msk [vmem:[%s4980_s26 + $0xc78] sm:$0xff] %vm3271_vm0, %v3158_v38  ;;  %v3160_v50 = vmul.f32 %v2648_v39, %v2648_v39  ;;  %v2650_v51 = vsub.f32 %v2028_v40, %v4965_v16  ;;  %v2032_v52 = vmul.f32 %v4684_v43, %v602_v35  ;;  %4705 = vrcp.f32 %v1125_v36  ;;  %v613_v38 = vld [vmem:[%s4956_s23 + $0xd00] sm:$0xff]  ;;  %v1136_v39 = vld [vmem:[%s4942_s19 + $0xd58] sm:$0xff] }
 0x1b3   : > { %v4688_v55 = vpop.eup %4687  ;;  %3672 = vst.msk [vmem:[%s4980_s26 + $0xc80] sm:$0xff] %vm3271_vm0, %v3159_v44  ;;  %v3161_v56 = vmul.f32 %v2649_v45, %v2649_v45  ;;  %v2651_v57 = vsub.f32 %v2030_v46, %v4965_v16  ;;  %v2034_v58 = vmul.f32 %v4686_v49, %v603_v41  ;;  %4707 = vrcp.f32 %v1126_v42  ;;  %v614_v44 = vld [vmem:[%s4956_s23 + $0xd08] sm:$0xff]  ;;  %v1137_v45 = vld [vmem:[%s4942_s19 + $0xd60] sm:$0xff] }
 0x1b4   : > { %v4690_v61 = vpop.eup %4689  ;;  %3673 = vst.msk [vmem:[%s4980_s26 + $0xc88] sm:$0xff] %vm3271_vm0, %v3160_v50  ;;  %v3162_v62 = vmul.f32 %v2650_v51, %v2650_v51  ;;  %v2652_v63 = vsub.f32 %v2032_v52, %v4965_v16  ;;  %v2036_v0 = vmul.f32 %v4688_v55, %v604_v47  ;;  %4709 = vrcp.f32 %v1127_v48  ;;  %v615_v50 = vld [vmem:[%s4956_s23 + $0xd10] sm:$0xff]  ;;  %v1138_v51 = vld [vmem:[%s4942_s19 + $0xd68] sm:$0xff] }
 0x1b5   : > { %v4692_v3 = vpop.eup %4691  ;;  %3674 = vst.msk [vmem:[%s4980_s26 + $0xc90] sm:$0xff] %vm3271_vm0, %v3161_v56  ;;  %v3163_v4 = vmul.f32 %v2651_v57, %v2651_v57  ;;  %v2653_v5 = vsub.f32 %v2034_v58, %v4965_v16  ;;  %v2038_v6 = vmul.f32 %v4690_v61, %v605_v53  ;;  %4711 = vrcp.f32 %v1128_v54  ;;  %v616_v56 = vld [vmem:[%s4956_s23 + $0xd18] sm:$0xff]  ;;  %v1139_v57 = vld [vmem:[%s4942_s19 + $0xd70] sm:$0xff] }
 0x1b6   : > { %v4694_v9 = vpop.eup %4693  ;;  %3675 = vst.msk [vmem:[%s4980_s26 + $0xc98] sm:$0xff] %vm3271_vm0, %v3162_v62  ;;  %v3164_v10 = vmul.f32 %v2652_v63, %v2652_v63  ;;  %v2654_v11 = vsub.f32 %v2036_v0, %v4965_v16  ;;  %v2040_v12 = vmul.f32 %v4692_v3, %v606_v59  ;;  %4713 = vrcp.f32 %v1129_v60  ;;  %v617_v62 = vld [vmem:[%s4956_s23 + $0xd20] sm:$0xff]  ;;  %v1140_v63 = vld [vmem:[%s4942_s19 + $0xd78] sm:$0xff] }
 0x1b7   : > { %v4696_v15 = vpop.eup %4695  ;;  %3676 = vst.msk [vmem:[%s4980_s26 + $0xca0] sm:$0xff] %vm3271_vm0, %v3163_v4  ;;  %v3165_v17 = vmul.f32 %v2653_v5, %v2653_v5  ;;  %v2655_v18 = vsub.f32 %v2038_v6, %v4965_v16  ;;  %v2042_v19 = vmul.f32 %v4694_v9, %v607_v1  ;;  %4715 = vrcp.f32 %v1130_v2  ;;  %v618_v4 = vld [vmem:[%s4956_s23 + $0xd28] sm:$0xff]  ;;  %v1141_v5 = vld [vmem:[%s4942_s19 + $0xd80] sm:$0xff] }
 0x1b8   : > { %v4698_v22 = vpop.eup %4697  ;;  %3677 = vst.msk [vmem:[%s4980_s26 + $0xca8] sm:$0xff] %vm3271_vm0, %v3164_v10  ;;  %v3166_v23 = vmul.f32 %v2654_v11, %v2654_v11  ;;  %v2656_v24 = vsub.f32 %v2040_v12, %v4965_v16  ;;  %v2044_v25 = vmul.f32 %v4696_v15, %v608_v7  ;;  %4717 = vrcp.f32 %v1131_v8  ;;  %v619_v10 = vld [vmem:[%s4956_s23 + $0xd30] sm:$0xff]  ;;  %v1142_v11 = vld [vmem:[%s4942_s19 + $0xd88] sm:$0xff] }
 0x1b9   : > { %v4700_v28 = vpop.eup %4699  ;;  %3678 = vst.msk [vmem:[%s4980_s26 + $0xcb0] sm:$0xff] %vm3271_vm0, %v3165_v17  ;;  %v3167_v29 = vmul.f32 %v2655_v18, %v2655_v18  ;;  %v2657_v30 = vsub.f32 %v2042_v19, %v4965_v16  ;;  %v2046_v31 = vmul.f32 %v4698_v22, %v609_v13  ;;  %4719 = vrcp.f32 %v1132_v14  ;;  %v620_v17 = vld [vmem:[%s4956_s23 + $0xd38] sm:$0xff]  ;;  %v1143_v18 = vld [vmem:[%s4942_s19 + $0xd90] sm:$0xff] }
 0x1ba   : > { %v4702_v34 = vpop.eup %4701  ;;  %3679 = vst.msk [vmem:[%s4980_s26 + $0xcb8] sm:$0xff] %vm3271_vm0, %v3166_v23  ;;  %v3168_v35 = vmul.f32 %v2656_v24, %v2656_v24  ;;  %v2658_v36 = vsub.f32 %v2044_v25, %v4965_v16  ;;  %v2048_v37 = vmul.f32 %v4700_v28, %v610_v20  ;;  %4721 = vrcp.f32 %v1133_v21  ;;  %v621_v23 = vld [vmem:[%s4956_s23 + $0xd40] sm:$0xff]  ;;  %v1144_v24 = vld [vmem:[%s4942_s19 + $0xd98] sm:$0xff] }
 0x1bb   : > { %v4704_v40 = vpop.eup %4703  ;;  %3680 = vst.msk [vmem:[%s4980_s26 + $0xcc0] sm:$0xff] %vm3271_vm0, %v3167_v29  ;;  %v3169_v41 = vmul.f32 %v2657_v30, %v2657_v30  ;;  %v2659_v42 = vsub.f32 %v2046_v31, %v4965_v16  ;;  %v2050_v43 = vmul.f32 %v4702_v34, %v611_v26  ;;  %4723 = vrcp.f32 %v1134_v27  ;;  %v622_v29 = vld [vmem:[%s4956_s23 + $0xd48] sm:$0xff]  ;;  %v1145_v30 = vld [vmem:[%s4942_s19 + $0xda0] sm:$0xff] }
 0x1bc   : > { %v4706_v46 = vpop.eup %4705  ;;  %3681 = vst.msk [vmem:[%s4980_s26 + $0xcc8] sm:$0xff] %vm3271_vm0, %v3168_v35  ;;  %v3170_v47 = vmul.f32 %v2658_v36, %v2658_v36  ;;  %v2660_v48 = vsub.f32 %v2048_v37, %v4965_v16  ;;  %v2052_v49 = vmul.f32 %v4704_v40, %v612_v32  ;;  %4725 = vrcp.f32 %v1135_v33  ;;  %v623_v35 = vld [vmem:[%s4956_s23 + $0xd50] sm:$0xff]  ;;  %v1146_v36 = vld [vmem:[%s4942_s19 + $0xda8] sm:$0xff] }
 0x1bd   : > { %v4708_v52 = vpop.eup %4707  ;;  %3682 = vst.msk [vmem:[%s4980_s26 + $0xcd0] sm:$0xff] %vm3271_vm0, %v3169_v41  ;;  %v3171_v53 = vmul.f32 %v2659_v42, %v2659_v42  ;;  %v2661_v54 = vsub.f32 %v2050_v43, %v4965_v16  ;;  %v2054_v55 = vmul.f32 %v4706_v46, %v613_v38  ;;  %4727 = vrcp.f32 %v1136_v39  ;;  %v624_v41 = vld [vmem:[%s4956_s23 + $0xd58] sm:$0xff]  ;;  %v1147_v42 = vld [vmem:[%s4942_s19 + $0xdb0] sm:$0xff] }
 0x1be   : > { %v4710_v58 = vpop.eup %4709  ;;  %3683 = vst.msk [vmem:[%s4980_s26 + $0xcd8] sm:$0xff] %vm3271_vm0, %v3170_v47  ;;  %v3172_v59 = vmul.f32 %v2660_v48, %v2660_v48  ;;  %v2662_v60 = vsub.f32 %v2052_v49, %v4965_v16  ;;  %v2056_v61 = vmul.f32 %v4708_v52, %v614_v44  ;;  %4729 = vrcp.f32 %v1137_v45  ;;  %v625_v47 = vld [vmem:[%s4956_s23 + $0xd60] sm:$0xff]  ;;  %v1148_v48 = vld [vmem:[%s4942_s19 + $0xdb8] sm:$0xff] }
 0x1bf   : > { %v4712_v0 = vpop.eup %4711  ;;  %3684 = vst.msk [vmem:[%s4980_s26 + $0xce0] sm:$0xff] %vm3271_vm0, %v3171_v53  ;;  %v3173_v1 = vmul.f32 %v2661_v54, %v2661_v54  ;;  %v2663_v2 = vsub.f32 %v2054_v55, %v4965_v16  ;;  %v2058_v3 = vmul.f32 %v4710_v58, %v615_v50  ;;  %4731 = vrcp.f32 %v1138_v51  ;;  %v626_v53 = vld [vmem:[%s4956_s23 + $0xd68] sm:$0xff]  ;;  %v1149_v54 = vld [vmem:[%s4942_s19 + $0xdc0] sm:$0xff] }
 0x1c0   : > { %v4714_v6 = vpop.eup %4713  ;;  %3685 = vst.msk [vmem:[%s4980_s26 + $0xce8] sm:$0xff] %vm3271_vm0, %v3172_v59  ;;  %v3174_v7 = vmul.f32 %v2662_v60, %v2662_v60  ;;  %v2664_v8 = vsub.f32 %v2056_v61, %v4965_v16  ;;  %v2060_v9 = vmul.f32 %v4712_v0, %v616_v56  ;;  %4733 = vrcp.f32 %v1139_v57  ;;  %v627_v59 = vld [vmem:[%s4956_s23 + $0xd70] sm:$0xff]  ;;  %v1150_v60 = vld [vmem:[%s4942_s19 + $0xdc8] sm:$0xff] }
 0x1c1   : > { %v4716_v12 = vpop.eup %4715  ;;  %3686 = vst.msk [vmem:[%s4980_s26 + $0xcf0] sm:$0xff] %vm3271_vm0, %v3173_v1  ;;  %v3175_v13 = vmul.f32 %v2663_v2, %v2663_v2  ;;  %v2665_v14 = vsub.f32 %v2058_v3, %v4965_v16  ;;  %v2062_v15 = vmul.f32 %v4714_v6, %v617_v62  ;;  %4735 = vrcp.f32 %v1140_v63  ;;  %v628_v1 = vld [vmem:[%s4956_s23 + $0xd78] sm:$0xff]  ;;  %v1151_v2 = vld [vmem:[%s4942_s19 + $0xdd0] sm:$0xff] }
 0x1c2   : > { %v4718_v19 = vpop.eup %4717  ;;  %3687 = vst.msk [vmem:[%s4980_s26 + $0xcf8] sm:$0xff] %vm3271_vm0, %v3174_v7  ;;  %v3176_v20 = vmul.f32 %v2664_v8, %v2664_v8  ;;  %v2666_v21 = vsub.f32 %v2060_v9, %v4965_v16  ;;  %v2064_v22 = vmul.f32 %v4716_v12, %v618_v4  ;;  %4737 = vrcp.f32 %v1141_v5  ;;  %v629_v7 = vld [vmem:[%s4956_s23 + $0xd80] sm:$0xff]  ;;  %v1152_v8 = vld [vmem:[%s4942_s19 + $0xdd8] sm:$0xff] }
 0x1c3   : > { %v4720_v25 = vpop.eup %4719  ;;  %3688 = vst.msk [vmem:[%s4980_s26 + $0xd00] sm:$0xff] %vm3271_vm0, %v3175_v13  ;;  %v3177_v26 = vmul.f32 %v2665_v14, %v2665_v14  ;;  %v2667_v27 = vsub.f32 %v2062_v15, %v4965_v16  ;;  %v2066_v28 = vmul.f32 %v4718_v19, %v619_v10  ;;  %4739 = vrcp.f32 %v1142_v11  ;;  %v630_v13 = vld [vmem:[%s4956_s23 + $0xd88] sm:$0xff]  ;;  %v1153_v14 = vld [vmem:[%s4942_s19 + $0xde0] sm:$0xff] }
 0x1c4   : > { %v4722_v31 = vpop.eup %4721  ;;  %3689 = vst.msk [vmem:[%s4980_s26 + $0xd08] sm:$0xff] %vm3271_vm0, %v3176_v20  ;;  %v3178_v32 = vmul.f32 %v2666_v21, %v2666_v21  ;;  %v2668_v33 = vsub.f32 %v2064_v22, %v4965_v16  ;;  %v2068_v34 = vmul.f32 %v4720_v25, %v620_v17  ;;  %4741 = vrcp.f32 %v1143_v18  ;;  %v631_v20 = vld [vmem:[%s4956_s23 + $0xd90] sm:$0xff]  ;;  %v1154_v21 = vld [vmem:[%s4942_s19 + $0xde8] sm:$0xff] }
 0x1c5   : > { %v4724_v37 = vpop.eup %4723  ;;  %3690 = vst.msk [vmem:[%s4980_s26 + $0xd10] sm:$0xff] %vm3271_vm0, %v3177_v26  ;;  %v3179_v38 = vmul.f32 %v2667_v27, %v2667_v27  ;;  %v2669_v39 = vsub.f32 %v2066_v28, %v4965_v16  ;;  %v2070_v40 = vmul.f32 %v4722_v31, %v621_v23  ;;  %4743 = vrcp.f32 %v1144_v24  ;;  %v632_v26 = vld [vmem:[%s4956_s23 + $0xd98] sm:$0xff]  ;;  %v1155_v27 = vld [vmem:[%s4942_s19 + $0xdf0] sm:$0xff] }
 0x1c6   : > { %v4726_v43 = vpop.eup %4725  ;;  %3691 = vst.msk [vmem:[%s4980_s26 + $0xd18] sm:$0xff] %vm3271_vm0, %v3178_v32  ;;  %v3180_v44 = vmul.f32 %v2668_v33, %v2668_v33  ;;  %v2670_v45 = vsub.f32 %v2068_v34, %v4965_v16  ;;  %v2072_v46 = vmul.f32 %v4724_v37, %v622_v29  ;;  %4745 = vrcp.f32 %v1145_v30  ;;  %v633_v32 = vld [vmem:[%s4956_s23 + $0xda0] sm:$0xff]  ;;  %v1156_v33 = vld [vmem:[%s4942_s19 + $0xdf8] sm:$0xff] }
 0x1c7   : > { %v4728_v49 = vpop.eup %4727  ;;  %3692 = vst.msk [vmem:[%s4980_s26 + $0xd20] sm:$0xff] %vm3271_vm0, %v3179_v38  ;;  %v3181_v50 = vmul.f32 %v2669_v39, %v2669_v39  ;;  %v2671_v51 = vsub.f32 %v2070_v40, %v4965_v16  ;;  %v2074_v52 = vmul.f32 %v4726_v43, %v623_v35  ;;  %4747 = vrcp.f32 %v1146_v36  ;;  %v634_v38 = vld [vmem:[%s4956_s23 + $0xda8] sm:$0xff]  ;;  %v1157_v39 = vld [vmem:[%s4942_s19 + $0xe00] sm:$0xff] }
 0x1c8   : > { %v4730_v55 = vpop.eup %4729  ;;  %3693 = vst.msk [vmem:[%s4980_s26 + $0xd28] sm:$0xff] %vm3271_vm0, %v3180_v44  ;;  %v3182_v56 = vmul.f32 %v2670_v45, %v2670_v45  ;;  %v2672_v57 = vsub.f32 %v2072_v46, %v4965_v16  ;;  %v2076_v58 = vmul.f32 %v4728_v49, %v624_v41  ;;  %4749 = vrcp.f32 %v1147_v42  ;;  %v635_v44 = vld [vmem:[%s4956_s23 + $0xdb0] sm:$0xff]  ;;  %v1158_v45 = vld [vmem:[%s4942_s19 + $0xe08] sm:$0xff] }
 0x1c9   : > { %v4732_v61 = vpop.eup %4731  ;;  %3694 = vst.msk [vmem:[%s4980_s26 + $0xd30] sm:$0xff] %vm3271_vm0, %v3181_v50  ;;  %v3183_v62 = vmul.f32 %v2671_v51, %v2671_v51  ;;  %v2673_v63 = vsub.f32 %v2074_v52, %v4965_v16  ;;  %v2078_v0 = vmul.f32 %v4730_v55, %v625_v47  ;;  %4751 = vrcp.f32 %v1148_v48  ;;  %v636_v50 = vld [vmem:[%s4956_s23 + $0xdb8] sm:$0xff]  ;;  %v1159_v51 = vld [vmem:[%s4942_s19 + $0xe10] sm:$0xff] }
 0x1ca   : > { %v4734_v3 = vpop.eup %4733  ;;  %3695 = vst.msk [vmem:[%s4980_s26 + $0xd38] sm:$0xff] %vm3271_vm0, %v3182_v56  ;;  %v3184_v4 = vmul.f32 %v2672_v57, %v2672_v57  ;;  %v2674_v5 = vsub.f32 %v2076_v58, %v4965_v16  ;;  %v2080_v6 = vmul.f32 %v4732_v61, %v626_v53  ;;  %4753 = vrcp.f32 %v1149_v54  ;;  %v637_v56 = vld [vmem:[%s4956_s23 + $0xdc0] sm:$0xff]  ;;  %v1160_v57 = vld [vmem:[%s4942_s19 + $0xe18] sm:$0xff] }
 0x1cb   : > { %v4736_v9 = vpop.eup %4735  ;;  %3696 = vst.msk [vmem:[%s4980_s26 + $0xd40] sm:$0xff] %vm3271_vm0, %v3183_v62  ;;  %v3185_v10 = vmul.f32 %v2673_v63, %v2673_v63  ;;  %v2675_v11 = vsub.f32 %v2078_v0, %v4965_v16  ;;  %v2082_v12 = vmul.f32 %v4734_v3, %v627_v59  ;;  %4755 = vrcp.f32 %v1150_v60  ;;  %v638_v62 = vld [vmem:[%s4956_s23 + $0xdc8] sm:$0xff]  ;;  %v1161_v63 = vld [vmem:[%s4942_s19 + $0xe20] sm:$0xff] }
 0x1cc   : > { %v4738_v15 = vpop.eup %4737  ;;  %3697 = vst.msk [vmem:[%s4980_s26 + $0xd48] sm:$0xff] %vm3271_vm0, %v3184_v4  ;;  %v3186_v17 = vmul.f32 %v2674_v5, %v2674_v5  ;;  %v2676_v18 = vsub.f32 %v2080_v6, %v4965_v16  ;;  %v2084_v19 = vmul.f32 %v4736_v9, %v628_v1  ;;  %4757 = vrcp.f32 %v1151_v2  ;;  %v639_v4 = vld [vmem:[%s4956_s23 + $0xdd0] sm:$0xff]  ;;  %v1162_v5 = vld [vmem:[%s4942_s19 + $0xe28] sm:$0xff] }
 0x1cd   : > { %v4740_v22 = vpop.eup %4739  ;;  %3698 = vst.msk [vmem:[%s4980_s26 + $0xd50] sm:$0xff] %vm3271_vm0, %v3185_v10  ;;  %v3187_v23 = vmul.f32 %v2675_v11, %v2675_v11  ;;  %v2677_v24 = vsub.f32 %v2082_v12, %v4965_v16  ;;  %v2086_v25 = vmul.f32 %v4738_v15, %v629_v7  ;;  %4759 = vrcp.f32 %v1152_v8  ;;  %v640_v10 = vld [vmem:[%s4956_s23 + $0xdd8] sm:$0xff]  ;;  %v1163_v11 = vld [vmem:[%s4942_s19 + $0xe30] sm:$0xff] }
 0x1ce   : > { %v4742_v28 = vpop.eup %4741  ;;  %3699 = vst.msk [vmem:[%s4980_s26 + $0xd58] sm:$0xff] %vm3271_vm0, %v3186_v17  ;;  %v3188_v29 = vmul.f32 %v2676_v18, %v2676_v18  ;;  %v2678_v30 = vsub.f32 %v2084_v19, %v4965_v16  ;;  %v2088_v31 = vmul.f32 %v4740_v22, %v630_v13  ;;  %4761 = vrcp.f32 %v1153_v14  ;;  %v641_v17 = vld [vmem:[%s4956_s23 + $0xde0] sm:$0xff]  ;;  %v1164_v18 = vld [vmem:[%s4942_s19 + $0xe38] sm:$0xff] }
 0x1cf   : > { %v4744_v34 = vpop.eup %4743  ;;  %3700 = vst.msk [vmem:[%s4980_s26 + $0xd60] sm:$0xff] %vm3271_vm0, %v3187_v23  ;;  %v3189_v35 = vmul.f32 %v2677_v24, %v2677_v24  ;;  %v2679_v36 = vsub.f32 %v2086_v25, %v4965_v16  ;;  %v2090_v37 = vmul.f32 %v4742_v28, %v631_v20  ;;  %4763 = vrcp.f32 %v1154_v21  ;;  %v642_v23 = vld [vmem:[%s4956_s23 + $0xde8] sm:$0xff]  ;;  %v1165_v24 = vld [vmem:[%s4942_s19 + $0xe40] sm:$0xff] }
 0x1d0   : > { %v4746_v40 = vpop.eup %4745  ;;  %3701 = vst.msk [vmem:[%s4980_s26 + $0xd68] sm:$0xff] %vm3271_vm0, %v3188_v29  ;;  %v3190_v41 = vmul.f32 %v2678_v30, %v2678_v30  ;;  %v2680_v42 = vsub.f32 %v2088_v31, %v4965_v16  ;;  %v2092_v43 = vmul.f32 %v4744_v34, %v632_v26  ;;  %4765 = vrcp.f32 %v1155_v27  ;;  %v643_v29 = vld [vmem:[%s4956_s23 + $0xdf0] sm:$0xff]  ;;  %v1166_v30 = vld [vmem:[%s4942_s19 + $0xe48] sm:$0xff] }
 0x1d1   : > { %v4748_v46 = vpop.eup %4747  ;;  %3702 = vst.msk [vmem:[%s4980_s26 + $0xd70] sm:$0xff] %vm3271_vm0, %v3189_v35  ;;  %v3191_v47 = vmul.f32 %v2679_v36, %v2679_v36  ;;  %v2681_v48 = vsub.f32 %v2090_v37, %v4965_v16  ;;  %v2094_v49 = vmul.f32 %v4746_v40, %v633_v32  ;;  %4767 = vrcp.f32 %v1156_v33  ;;  %v644_v35 = vld [vmem:[%s4956_s23 + $0xdf8] sm:$0xff]  ;;  %v1167_v36 = vld [vmem:[%s4942_s19 + $0xe50] sm:$0xff] }
 0x1d2   : > { %v4750_v52 = vpop.eup %4749  ;;  %3703 = vst.msk [vmem:[%s4980_s26 + $0xd78] sm:$0xff] %vm3271_vm0, %v3190_v41  ;;  %v3192_v53 = vmul.f32 %v2680_v42, %v2680_v42  ;;  %v2682_v54 = vsub.f32 %v2092_v43, %v4965_v16  ;;  %v2096_v55 = vmul.f32 %v4748_v46, %v634_v38  ;;  %4769 = vrcp.f32 %v1157_v39  ;;  %v645_v41 = vld [vmem:[%s4956_s23 + $0xe00] sm:$0xff]  ;;  %v1168_v42 = vld [vmem:[%s4942_s19 + $0xe58] sm:$0xff] }
 0x1d3   : > { %v4752_v58 = vpop.eup %4751  ;;  %3704 = vst.msk [vmem:[%s4980_s26 + $0xd80] sm:$0xff] %vm3271_vm0, %v3191_v47  ;;  %v3193_v59 = vmul.f32 %v2681_v48, %v2681_v48  ;;  %v2683_v60 = vsub.f32 %v2094_v49, %v4965_v16  ;;  %v2098_v61 = vmul.f32 %v4750_v52, %v635_v44  ;;  %4771 = vrcp.f32 %v1158_v45  ;;  %v646_v47 = vld [vmem:[%s4956_s23 + $0xe08] sm:$0xff]  ;;  %v1169_v48 = vld [vmem:[%s4942_s19 + $0xe60] sm:$0xff] }
 0x1d4   : > { %v4754_v0 = vpop.eup %4753  ;;  %3705 = vst.msk [vmem:[%s4980_s26 + $0xd88] sm:$0xff] %vm3271_vm0, %v3192_v53  ;;  %v3194_v1 = vmul.f32 %v2682_v54, %v2682_v54  ;;  %v2684_v2 = vsub.f32 %v2096_v55, %v4965_v16  ;;  %v2100_v3 = vmul.f32 %v4752_v58, %v636_v50  ;;  %4773 = vrcp.f32 %v1159_v51  ;;  %v647_v53 = vld [vmem:[%s4956_s23 + $0xe10] sm:$0xff]  ;;  %v1170_v54 = vld [vmem:[%s4942_s19 + $0xe68] sm:$0xff] }
 0x1d5   : > { %v4756_v6 = vpop.eup %4755  ;;  %3706 = vst.msk [vmem:[%s4980_s26 + $0xd90] sm:$0xff] %vm3271_vm0, %v3193_v59  ;;  %v3195_v7 = vmul.f32 %v2683_v60, %v2683_v60  ;;  %v2685_v8 = vsub.f32 %v2098_v61, %v4965_v16  ;;  %v2102_v9 = vmul.f32 %v4754_v0, %v637_v56  ;;  %4775 = vrcp.f32 %v1160_v57  ;;  %v648_v59 = vld [vmem:[%s4956_s23 + $0xe18] sm:$0xff]  ;;  %v1171_v60 = vld [vmem:[%s4942_s19 + $0xe70] sm:$0xff] }
 0x1d6   : > { %v4758_v12 = vpop.eup %4757  ;;  %3707 = vst.msk [vmem:[%s4980_s26 + $0xd98] sm:$0xff] %vm3271_vm0, %v3194_v1  ;;  %v3196_v13 = vmul.f32 %v2684_v2, %v2684_v2  ;;  %v2686_v14 = vsub.f32 %v2100_v3, %v4965_v16  ;;  %v2104_v15 = vmul.f32 %v4756_v6, %v638_v62  ;;  %4777 = vrcp.f32 %v1161_v63  ;;  %v649_v1 = vld [vmem:[%s4956_s23 + $0xe20] sm:$0xff]  ;;  %v1172_v2 = vld [vmem:[%s4942_s19 + $0xe78] sm:$0xff] }
 0x1d7   : > { %v4760_v19 = vpop.eup %4759  ;;  %3708 = vst.msk [vmem:[%s4980_s26 + $0xda0] sm:$0xff] %vm3271_vm0, %v3195_v7  ;;  %v3197_v20 = vmul.f32 %v2685_v8, %v2685_v8  ;;  %v2687_v21 = vsub.f32 %v2102_v9, %v4965_v16  ;;  %v2106_v22 = vmul.f32 %v4758_v12, %v639_v4  ;;  %4779 = vrcp.f32 %v1162_v5  ;;  %v650_v7 = vld [vmem:[%s4956_s23 + $0xe28] sm:$0xff]  ;;  %v1173_v8 = vld [vmem:[%s4942_s19 + $0xe80] sm:$0xff] }
 0x1d8   : > { %v4762_v25 = vpop.eup %4761  ;;  %3709 = vst.msk [vmem:[%s4980_s26 + $0xda8] sm:$0xff] %vm3271_vm0, %v3196_v13  ;;  %v3198_v26 = vmul.f32 %v2686_v14, %v2686_v14  ;;  %v2688_v27 = vsub.f32 %v2104_v15, %v4965_v16  ;;  %v2108_v28 = vmul.f32 %v4760_v19, %v640_v10  ;;  %4781 = vrcp.f32 %v1163_v11  ;;  %v651_v13 = vld [vmem:[%s4956_s23 + $0xe30] sm:$0xff]  ;;  %v1174_v14 = vld [vmem:[%s4942_s19 + $0xe88] sm:$0xff] }
 0x1d9   : > { %v4764_v31 = vpop.eup %4763  ;;  %3710 = vst.msk [vmem:[%s4980_s26 + $0xdb0] sm:$0xff] %vm3271_vm0, %v3197_v20  ;;  %v3199_v32 = vmul.f32 %v2687_v21, %v2687_v21  ;;  %v2689_v33 = vsub.f32 %v2106_v22, %v4965_v16  ;;  %v2110_v34 = vmul.f32 %v4762_v25, %v641_v17  ;;  %4783 = vrcp.f32 %v1164_v18  ;;  %v652_v20 = vld [vmem:[%s4956_s23 + $0xe38] sm:$0xff]  ;;  %v1175_v21 = vld [vmem:[%s4942_s19 + $0xe90] sm:$0xff] }
 0x1da   : > { %v4766_v37 = vpop.eup %4765  ;;  %3711 = vst.msk [vmem:[%s4980_s26 + $0xdb8] sm:$0xff] %vm3271_vm0, %v3198_v26  ;;  %v3200_v38 = vmul.f32 %v2688_v27, %v2688_v27  ;;  %v2690_v39 = vsub.f32 %v2108_v28, %v4965_v16  ;;  %v2112_v40 = vmul.f32 %v4764_v31, %v642_v23  ;;  %4785 = vrcp.f32 %v1165_v24  ;;  %v653_v26 = vld [vmem:[%s4956_s23 + $0xe40] sm:$0xff]  ;;  %v1176_v27 = vld [vmem:[%s4942_s19 + $0xe98] sm:$0xff] }
 0x1db   : > { %v4768_v43 = vpop.eup %4767  ;;  %3712 = vst.msk [vmem:[%s4980_s26 + $0xdc0] sm:$0xff] %vm3271_vm0, %v3199_v32  ;;  %v3201_v44 = vmul.f32 %v2689_v33, %v2689_v33  ;;  %v2691_v45 = vsub.f32 %v2110_v34, %v4965_v16  ;;  %v2114_v46 = vmul.f32 %v4766_v37, %v643_v29  ;;  %4787 = vrcp.f32 %v1166_v30  ;;  %v654_v32 = vld [vmem:[%s4956_s23 + $0xe48] sm:$0xff]  ;;  %v1177_v33 = vld [vmem:[%s4942_s19 + $0xea0] sm:$0xff] }
 0x1dc   : > { %v4770_v49 = vpop.eup %4769  ;;  %3713 = vst.msk [vmem:[%s4980_s26 + $0xdc8] sm:$0xff] %vm3271_vm0, %v3200_v38  ;;  %v3202_v50 = vmul.f32 %v2690_v39, %v2690_v39  ;;  %v2692_v51 = vsub.f32 %v2112_v40, %v4965_v16  ;;  %v2116_v52 = vmul.f32 %v4768_v43, %v644_v35  ;;  %4789 = vrcp.f32 %v1167_v36  ;;  %v655_v38 = vld [vmem:[%s4956_s23 + $0xe50] sm:$0xff]  ;;  %v1178_v39 = vld [vmem:[%s4942_s19 + $0xea8] sm:$0xff] }
 0x1dd   : > { %v4772_v55 = vpop.eup %4771  ;;  %3714 = vst.msk [vmem:[%s4980_s26 + $0xdd0] sm:$0xff] %vm3271_vm0, %v3201_v44  ;;  %v3203_v56 = vmul.f32 %v2691_v45, %v2691_v45  ;;  %v2693_v57 = vsub.f32 %v2114_v46, %v4965_v16  ;;  %v2118_v58 = vmul.f32 %v4770_v49, %v645_v41  ;;  %4791 = vrcp.f32 %v1168_v42  ;;  %v656_v44 = vld [vmem:[%s4956_s23 + $0xe58] sm:$0xff]  ;;  %v1179_v45 = vld [vmem:[%s4942_s19 + $0xeb0] sm:$0xff] }
 0x1de   : > { %v4774_v61 = vpop.eup %4773  ;;  %3715 = vst.msk [vmem:[%s4980_s26 + $0xdd8] sm:$0xff] %vm3271_vm0, %v3202_v50  ;;  %v3204_v62 = vmul.f32 %v2692_v51, %v2692_v51  ;;  %v2694_v63 = vsub.f32 %v2116_v52, %v4965_v16  ;;  %v2120_v0 = vmul.f32 %v4772_v55, %v646_v47  ;;  %4793 = vrcp.f32 %v1169_v48  ;;  %v657_v50 = vld [vmem:[%s4956_s23 + $0xe60] sm:$0xff]  ;;  %v1180_v51 = vld [vmem:[%s4942_s19 + $0xeb8] sm:$0xff] }
 0x1df   : > { %v4776_v3 = vpop.eup %4775  ;;  %3716 = vst.msk [vmem:[%s4980_s26 + $0xde0] sm:$0xff] %vm3271_vm0, %v3203_v56  ;;  %v3205_v4 = vmul.f32 %v2693_v57, %v2693_v57  ;;  %v2695_v5 = vsub.f32 %v2118_v58, %v4965_v16  ;;  %v2122_v6 = vmul.f32 %v4774_v61, %v647_v53  ;;  %4795 = vrcp.f32 %v1170_v54  ;;  %v658_v56 = vld [vmem:[%s4956_s23 + $0xe68] sm:$0xff]  ;;  %v1181_v57 = vld [vmem:[%s4942_s19 + $0xec0] sm:$0xff] }
 0x1e0   : > { %v4778_v9 = vpop.eup %4777  ;;  %3717 = vst.msk [vmem:[%s4980_s26 + $0xde8] sm:$0xff] %vm3271_vm0, %v3204_v62  ;;  %v3206_v10 = vmul.f32 %v2694_v63, %v2694_v63  ;;  %v2696_v11 = vsub.f32 %v2120_v0, %v4965_v16  ;;  %v2124_v12 = vmul.f32 %v4776_v3, %v648_v59  ;;  %4797 = vrcp.f32 %v1171_v60  ;;  %v659_v62 = vld [vmem:[%s4956_s23 + $0xe70] sm:$0xff]  ;;  %v1182_v63 = vld [vmem:[%s4942_s19 + $0xec8] sm:$0xff] }
 0x1e1   : > { %v4780_v15 = vpop.eup %4779  ;;  %3718 = vst.msk [vmem:[%s4980_s26 + $0xdf0] sm:$0xff] %vm3271_vm0, %v3205_v4  ;;  %v3207_v17 = vmul.f32 %v2695_v5, %v2695_v5  ;;  %v2697_v18 = vsub.f32 %v2122_v6, %v4965_v16  ;;  %v2126_v19 = vmul.f32 %v4778_v9, %v649_v1  ;;  %4799 = vrcp.f32 %v1172_v2  ;;  %v660_v4 = vld [vmem:[%s4956_s23 + $0xe78] sm:$0xff]  ;;  %v1183_v5 = vld [vmem:[%s4942_s19 + $0xed0] sm:$0xff] }
 0x1e2   : > { %v4782_v22 = vpop.eup %4781  ;;  %3719 = vst.msk [vmem:[%s4980_s26 + $0xdf8] sm:$0xff] %vm3271_vm0, %v3206_v10  ;;  %v3208_v23 = vmul.f32 %v2696_v11, %v2696_v11  ;;  %v2698_v24 = vsub.f32 %v2124_v12, %v4965_v16  ;;  %v2128_v25 = vmul.f32 %v4780_v15, %v650_v7  ;;  %4801 = vrcp.f32 %v1173_v8  ;;  %v661_v10 = vld [vmem:[%s4956_s23 + $0xe80] sm:$0xff]  ;;  %v1184_v11 = vld [vmem:[%s4942_s19 + $0xed8] sm:$0xff] }
 0x1e3   : > { %v4784_v28 = vpop.eup %4783  ;;  %3720 = vst.msk [vmem:[%s4980_s26 + $0xe00] sm:$0xff] %vm3271_vm0, %v3207_v17  ;;  %v3209_v29 = vmul.f32 %v2697_v18, %v2697_v18  ;;  %v2699_v30 = vsub.f32 %v2126_v19, %v4965_v16  ;;  %v2130_v31 = vmul.f32 %v4782_v22, %v651_v13  ;;  %4803 = vrcp.f32 %v1174_v14  ;;  %v662_v17 = vld [vmem:[%s4956_s23 + $0xe88] sm:$0xff]  ;;  %v1185_v18 = vld [vmem:[%s4942_s19 + $0xee0] sm:$0xff] }
 0x1e4   : > { %v4786_v34 = vpop.eup %4785  ;;  %3721 = vst.msk [vmem:[%s4980_s26 + $0xe08] sm:$0xff] %vm3271_vm0, %v3208_v23  ;;  %v3210_v35 = vmul.f32 %v2698_v24, %v2698_v24  ;;  %v2700_v36 = vsub.f32 %v2128_v25, %v4965_v16  ;;  %v2132_v37 = vmul.f32 %v4784_v28, %v652_v20  ;;  %4805 = vrcp.f32 %v1175_v21  ;;  %v663_v23 = vld [vmem:[%s4956_s23 + $0xe90] sm:$0xff]  ;;  %v1186_v24 = vld [vmem:[%s4942_s19 + $0xee8] sm:$0xff] }
 0x1e5   : > { %v4788_v40 = vpop.eup %4787  ;;  %3722 = vst.msk [vmem:[%s4980_s26 + $0xe10] sm:$0xff] %vm3271_vm0, %v3209_v29  ;;  %v3211_v41 = vmul.f32 %v2699_v30, %v2699_v30  ;;  %v2701_v42 = vsub.f32 %v2130_v31, %v4965_v16  ;;  %v2134_v43 = vmul.f32 %v4786_v34, %v653_v26  ;;  %4807 = vrcp.f32 %v1176_v27  ;;  %v664_v29 = vld [vmem:[%s4956_s23 + $0xe98] sm:$0xff]  ;;  %v1187_v30 = vld [vmem:[%s4942_s19 + $0xef0] sm:$0xff] }
 0x1e6   : > { %v4790_v46 = vpop.eup %4789  ;;  %3723 = vst.msk [vmem:[%s4980_s26 + $0xe18] sm:$0xff] %vm3271_vm0, %v3210_v35  ;;  %v3212_v47 = vmul.f32 %v2700_v36, %v2700_v36  ;;  %v2702_v48 = vsub.f32 %v2132_v37, %v4965_v16  ;;  %v2136_v49 = vmul.f32 %v4788_v40, %v654_v32  ;;  %4809 = vrcp.f32 %v1177_v33  ;;  %v665_v35 = vld [vmem:[%s4956_s23 + $0xea0] sm:$0xff]  ;;  %v1188_v36 = vld [vmem:[%s4942_s19 + $0xef8] sm:$0xff] }
 0x1e7   : > { %v4792_v52 = vpop.eup %4791  ;;  %3724 = vst.msk [vmem:[%s4980_s26 + $0xe20] sm:$0xff] %vm3271_vm0, %v3211_v41  ;;  %v3213_v53 = vmul.f32 %v2701_v42, %v2701_v42  ;;  %v2703_v54 = vsub.f32 %v2134_v43, %v4965_v16  ;;  %v2138_v55 = vmul.f32 %v4790_v46, %v655_v38  ;;  %4811 = vrcp.f32 %v1178_v39  ;;  %v666_v41 = vld [vmem:[%s4956_s23 + $0xea8] sm:$0xff]  ;;  %v1189_v42 = vld [vmem:[%s4942_s19 + $0xf00] sm:$0xff] }
 0x1e8   : > { %v4794_v58 = vpop.eup %4793  ;;  %3725 = vst.msk [vmem:[%s4980_s26 + $0xe28] sm:$0xff] %vm3271_vm0, %v3212_v47  ;;  %v3214_v59 = vmul.f32 %v2702_v48, %v2702_v48  ;;  %v2704_v60 = vsub.f32 %v2136_v49, %v4965_v16  ;;  %v2140_v61 = vmul.f32 %v4792_v52, %v656_v44  ;;  %4813 = vrcp.f32 %v1179_v45  ;;  %v667_v47 = vld [vmem:[%s4956_s23 + $0xeb0] sm:$0xff]  ;;  %v1190_v48 = vld [vmem:[%s4942_s19 + $0xf08] sm:$0xff] }
 0x1e9   : > { %v4796_v0 = vpop.eup %4795  ;;  %3726 = vst.msk [vmem:[%s4980_s26 + $0xe30] sm:$0xff] %vm3271_vm0, %v3213_v53  ;;  %v3215_v1 = vmul.f32 %v2703_v54, %v2703_v54  ;;  %v2705_v2 = vsub.f32 %v2138_v55, %v4965_v16  ;;  %v2142_v3 = vmul.f32 %v4794_v58, %v657_v50  ;;  %4815 = vrcp.f32 %v1180_v51  ;;  %v668_v53 = vld [vmem:[%s4956_s23 + $0xeb8] sm:$0xff]  ;;  %v1191_v54 = vld [vmem:[%s4942_s19 + $0xf10] sm:$0xff] }
 0x1ea   : > { %v4798_v6 = vpop.eup %4797  ;;  %3727 = vst.msk [vmem:[%s4980_s26 + $0xe38] sm:$0xff] %vm3271_vm0, %v3214_v59  ;;  %v3216_v7 = vmul.f32 %v2704_v60, %v2704_v60  ;;  %v2706_v8 = vsub.f32 %v2140_v61, %v4965_v16  ;;  %v2144_v9 = vmul.f32 %v4796_v0, %v658_v56  ;;  %4817 = vrcp.f32 %v1181_v57  ;;  %v669_v59 = vld [vmem:[%s4956_s23 + $0xec0] sm:$0xff]  ;;  %v1192_v60 = vld [vmem:[%s4942_s19 + $0xf18] sm:$0xff] }
 0x1eb   : > { %v4800_v12 = vpop.eup %4799  ;;  %3728 = vst.msk [vmem:[%s4980_s26 + $0xe40] sm:$0xff] %vm3271_vm0, %v3215_v1  ;;  %v3217_v13 = vmul.f32 %v2705_v2, %v2705_v2  ;;  %v2707_v14 = vsub.f32 %v2142_v3, %v4965_v16  ;;  %v2146_v15 = vmul.f32 %v4798_v6, %v659_v62  ;;  %4819 = vrcp.f32 %v1182_v63  ;;  %v670_v1 = vld [vmem:[%s4956_s23 + $0xec8] sm:$0xff]  ;;  %v1193_v2 = vld [vmem:[%s4942_s19 + $0xf20] sm:$0xff] }
 0x1ec   : > { %v4802_v19 = vpop.eup %4801  ;;  %3729 = vst.msk [vmem:[%s4980_s26 + $0xe48] sm:$0xff] %vm3271_vm0, %v3216_v7  ;;  %v3218_v20 = vmul.f32 %v2706_v8, %v2706_v8  ;;  %v2708_v21 = vsub.f32 %v2144_v9, %v4965_v16  ;;  %v2148_v22 = vmul.f32 %v4800_v12, %v660_v4  ;;  %4821 = vrcp.f32 %v1183_v5  ;;  %v671_v7 = vld [vmem:[%s4956_s23 + $0xed0] sm:$0xff]  ;;  %v1194_v8 = vld [vmem:[%s4942_s19 + $0xf28] sm:$0xff] }
 0x1ed   : > { %v4804_v25 = vpop.eup %4803  ;;  %3730 = vst.msk [vmem:[%s4980_s26 + $0xe50] sm:$0xff] %vm3271_vm0, %v3217_v13  ;;  %v3219_v26 = vmul.f32 %v2707_v14, %v2707_v14  ;;  %v2709_v27 = vsub.f32 %v2146_v15, %v4965_v16  ;;  %v2150_v28 = vmul.f32 %v4802_v19, %v661_v10  ;;  %4823 = vrcp.f32 %v1184_v11  ;;  %v672_v13 = vld [vmem:[%s4956_s23 + $0xed8] sm:$0xff]  ;;  %v1195_v14 = vld [vmem:[%s4942_s19 + $0xf30] sm:$0xff] }
 0x1ee   : > { %v4806_v31 = vpop.eup %4805  ;;  %3731 = vst.msk [vmem:[%s4980_s26 + $0xe58] sm:$0xff] %vm3271_vm0, %v3218_v20  ;;  %v3220_v32 = vmul.f32 %v2708_v21, %v2708_v21  ;;  %v2710_v33 = vsub.f32 %v2148_v22, %v4965_v16  ;;  %v2152_v34 = vmul.f32 %v4804_v25, %v662_v17  ;;  %4825 = vrcp.f32 %v1185_v18  ;;  %v673_v20 = vld [vmem:[%s4956_s23 + $0xee0] sm:$0xff]  ;;  %v1196_v21 = vld [vmem:[%s4942_s19 + $0xf38] sm:$0xff] }
 0x1ef   : > { %v4808_v37 = vpop.eup %4807  ;;  %3732 = vst.msk [vmem:[%s4980_s26 + $0xe60] sm:$0xff] %vm3271_vm0, %v3219_v26  ;;  %v3221_v38 = vmul.f32 %v2709_v27, %v2709_v27  ;;  %v2711_v39 = vsub.f32 %v2150_v28, %v4965_v16  ;;  %v2154_v40 = vmul.f32 %v4806_v31, %v663_v23  ;;  %4827 = vrcp.f32 %v1186_v24  ;;  %v674_v26 = vld [vmem:[%s4956_s23 + $0xee8] sm:$0xff]  ;;  %v1197_v27 = vld [vmem:[%s4942_s19 + $0xf40] sm:$0xff] }
 0x1f0   : > { %v4810_v43 = vpop.eup %4809  ;;  %3733 = vst.msk [vmem:[%s4980_s26 + $0xe68] sm:$0xff] %vm3271_vm0, %v3220_v32  ;;  %v3222_v44 = vmul.f32 %v2710_v33, %v2710_v33  ;;  %v2712_v45 = vsub.f32 %v2152_v34, %v4965_v16  ;;  %v2156_v46 = vmul.f32 %v4808_v37, %v664_v29  ;;  %4829 = vrcp.f32 %v1187_v30  ;;  %v675_v32 = vld [vmem:[%s4956_s23 + $0xef0] sm:$0xff]  ;;  %v1198_v33 = vld [vmem:[%s4942_s19 + $0xf48] sm:$0xff] }
 0x1f1   : > { %v4812_v49 = vpop.eup %4811  ;;  %3734 = vst.msk [vmem:[%s4980_s26 + $0xe70] sm:$0xff] %vm3271_vm0, %v3221_v38  ;;  %v3223_v50 = vmul.f32 %v2711_v39, %v2711_v39  ;;  %v2713_v51 = vsub.f32 %v2154_v40, %v4965_v16  ;;  %v2158_v52 = vmul.f32 %v4810_v43, %v665_v35  ;;  %4831 = vrcp.f32 %v1188_v36  ;;  %v676_v38 = vld [vmem:[%s4956_s23 + $0xef8] sm:$0xff]  ;;  %v1199_v39 = vld [vmem:[%s4942_s19 + $0xf50] sm:$0xff] }
 0x1f2   : > { %v4814_v55 = vpop.eup %4813  ;;  %3735 = vst.msk [vmem:[%s4980_s26 + $0xe78] sm:$0xff] %vm3271_vm0, %v3222_v44  ;;  %v3224_v56 = vmul.f32 %v2712_v45, %v2712_v45  ;;  %v2714_v57 = vsub.f32 %v2156_v46, %v4965_v16  ;;  %v2160_v58 = vmul.f32 %v4812_v49, %v666_v41  ;;  %4833 = vrcp.f32 %v1189_v42  ;;  %v677_v44 = vld [vmem:[%s4956_s23 + $0xf00] sm:$0xff]  ;;  %v1200_v45 = vld [vmem:[%s4942_s19 + $0xf58] sm:$0xff] }
 0x1f3   : > { %v4816_v61 = vpop.eup %4815  ;;  %3736 = vst.msk [vmem:[%s4980_s26 + $0xe80] sm:$0xff] %vm3271_vm0, %v3223_v50  ;;  %v3225_v62 = vmul.f32 %v2713_v51, %v2713_v51  ;;  %v2715_v63 = vsub.f32 %v2158_v52, %v4965_v16  ;;  %v2162_v0 = vmul.f32 %v4814_v55, %v667_v47  ;;  %4835 = vrcp.f32 %v1190_v48  ;;  %v678_v50 = vld [vmem:[%s4956_s23 + $0xf08] sm:$0xff]  ;;  %v1201_v51 = vld [vmem:[%s4942_s19 + $0xf60] sm:$0xff] }
 0x1f4   : > { %v4818_v3 = vpop.eup %4817  ;;  %3737 = vst.msk [vmem:[%s4980_s26 + $0xe88] sm:$0xff] %vm3271_vm0, %v3224_v56  ;;  %v3226_v4 = vmul.f32 %v2714_v57, %v2714_v57  ;;  %v2716_v5 = vsub.f32 %v2160_v58, %v4965_v16  ;;  %v2164_v6 = vmul.f32 %v4816_v61, %v668_v53  ;;  %4837 = vrcp.f32 %v1191_v54  ;;  %v679_v56 = vld [vmem:[%s4956_s23 + $0xf10] sm:$0xff]  ;;  %v1202_v57 = vld [vmem:[%s4942_s19 + $0xf68] sm:$0xff] }
 0x1f5   : > { %v4820_v9 = vpop.eup %4819  ;;  %3738 = vst.msk [vmem:[%s4980_s26 + $0xe90] sm:$0xff] %vm3271_vm0, %v3225_v62  ;;  %v3227_v10 = vmul.f32 %v2715_v63, %v2715_v63  ;;  %v2717_v11 = vsub.f32 %v2162_v0, %v4965_v16  ;;  %v2166_v12 = vmul.f32 %v4818_v3, %v669_v59  ;;  %4839 = vrcp.f32 %v1192_v60  ;;  %v680_v62 = vld [vmem:[%s4956_s23 + $0xf18] sm:$0xff]  ;;  %v1203_v63 = vld [vmem:[%s4942_s19 + $0xf70] sm:$0xff] }
 0x1f6   : > { %v4822_v15 = vpop.eup %4821  ;;  %3739 = vst.msk [vmem:[%s4980_s26 + $0xe98] sm:$0xff] %vm3271_vm0, %v3226_v4  ;;  %v3228_v17 = vmul.f32 %v2716_v5, %v2716_v5  ;;  %v2718_v18 = vsub.f32 %v2164_v6, %v4965_v16  ;;  %v2168_v19 = vmul.f32 %v4820_v9, %v670_v1  ;;  %4841 = vrcp.f32 %v1193_v2  ;;  %v681_v4 = vld [vmem:[%s4956_s23 + $0xf20] sm:$0xff]  ;;  %v1204_v5 = vld [vmem:[%s4942_s19 + $0xf78] sm:$0xff] }
 0x1f7   : > { %v4824_v22 = vpop.eup %4823  ;;  %3740 = vst.msk [vmem:[%s4980_s26 + $0xea0] sm:$0xff] %vm3271_vm0, %v3227_v10  ;;  %v3229_v23 = vmul.f32 %v2717_v11, %v2717_v11  ;;  %v2719_v24 = vsub.f32 %v2166_v12, %v4965_v16  ;;  %v2170_v25 = vmul.f32 %v4822_v15, %v671_v7  ;;  %4843 = vrcp.f32 %v1194_v8  ;;  %v682_v10 = vld [vmem:[%s4956_s23 + $0xf28] sm:$0xff]  ;;  %v1205_v11 = vld [vmem:[%s4942_s19 + $0xf80] sm:$0xff] }
 0x1f8   : > { %v4826_v28 = vpop.eup %4825  ;;  %3741 = vst.msk [vmem:[%s4980_s26 + $0xea8] sm:$0xff] %vm3271_vm0, %v3228_v17  ;;  %v3230_v29 = vmul.f32 %v2718_v18, %v2718_v18  ;;  %v2720_v30 = vsub.f32 %v2168_v19, %v4965_v16  ;;  %v2172_v31 = vmul.f32 %v4824_v22, %v672_v13  ;;  %4845 = vrcp.f32 %v1195_v14  ;;  %v683_v17 = vld [vmem:[%s4956_s23 + $0xf30] sm:$0xff]  ;;  %v1206_v18 = vld [vmem:[%s4942_s19 + $0xf88] sm:$0xff] }
 0x1f9   : > { %v4828_v34 = vpop.eup %4827  ;;  %3742 = vst.msk [vmem:[%s4980_s26 + $0xeb0] sm:$0xff] %vm3271_vm0, %v3229_v23  ;;  %v3231_v35 = vmul.f32 %v2719_v24, %v2719_v24  ;;  %v2721_v36 = vsub.f32 %v2170_v25, %v4965_v16  ;;  %v2174_v37 = vmul.f32 %v4826_v28, %v673_v20  ;;  %4847 = vrcp.f32 %v1196_v21  ;;  %v684_v23 = vld [vmem:[%s4956_s23 + $0xf38] sm:$0xff]  ;;  %v1207_v24 = vld [vmem:[%s4942_s19 + $0xf90] sm:$0xff] }
 0x1fa   : > { %v4830_v40 = vpop.eup %4829  ;;  %3743 = vst.msk [vmem:[%s4980_s26 + $0xeb8] sm:$0xff] %vm3271_vm0, %v3230_v29  ;;  %v3232_v41 = vmul.f32 %v2720_v30, %v2720_v30  ;;  %v2722_v42 = vsub.f32 %v2172_v31, %v4965_v16  ;;  %v2176_v43 = vmul.f32 %v4828_v34, %v674_v26  ;;  %4849 = vrcp.f32 %v1197_v27  ;;  %v685_v29 = vld [vmem:[%s4956_s23 + $0xf40] sm:$0xff]  ;;  %v1208_v30 = vld [vmem:[%s4942_s19 + $0xf98] sm:$0xff] }
 0x1fb   : > { %v4832_v46 = vpop.eup %4831  ;;  %3744 = vst.msk [vmem:[%s4980_s26 + $0xec0] sm:$0xff] %vm3271_vm0, %v3231_v35  ;;  %v3233_v47 = vmul.f32 %v2721_v36, %v2721_v36  ;;  %v2723_v48 = vsub.f32 %v2174_v37, %v4965_v16  ;;  %v2178_v49 = vmul.f32 %v4830_v40, %v675_v32  ;;  %4851 = vrcp.f32 %v1198_v33  ;;  %v686_v35 = vld [vmem:[%s4956_s23 + $0xf48] sm:$0xff]  ;;  %v1209_v36 = vld [vmem:[%s4942_s19 + $0xfa0] sm:$0xff] }
 0x1fc   : > { %v4834_v52 = vpop.eup %4833  ;;  %3745 = vst.msk [vmem:[%s4980_s26 + $0xec8] sm:$0xff] %vm3271_vm0, %v3232_v41  ;;  %v3234_v53 = vmul.f32 %v2722_v42, %v2722_v42  ;;  %v2724_v54 = vsub.f32 %v2176_v43, %v4965_v16  ;;  %v2180_v55 = vmul.f32 %v4832_v46, %v676_v38  ;;  %4853 = vrcp.f32 %v1199_v39  ;;  %v687_v41 = vld [vmem:[%s4956_s23 + $0xf50] sm:$0xff]  ;;  %v1210_v42 = vld [vmem:[%s4942_s19 + $0xfa8] sm:$0xff] }
 0x1fd   : > { %v4836_v58 = vpop.eup %4835  ;;  %3746 = vst.msk [vmem:[%s4980_s26 + $0xed0] sm:$0xff] %vm3271_vm0, %v3233_v47  ;;  %v3235_v59 = vmul.f32 %v2723_v48, %v2723_v48  ;;  %v2725_v60 = vsub.f32 %v2178_v49, %v4965_v16  ;;  %v2182_v61 = vmul.f32 %v4834_v52, %v677_v44  ;;  %4855 = vrcp.f32 %v1200_v45  ;;  %v688_v47 = vld [vmem:[%s4956_s23 + $0xf58] sm:$0xff]  ;;  %v1211_v48 = vld [vmem:[%s4942_s19 + $0xfb0] sm:$0xff] }
 0x1fe   : > { %v4838_v0 = vpop.eup %4837  ;;  %3747 = vst.msk [vmem:[%s4980_s26 + $0xed8] sm:$0xff] %vm3271_vm0, %v3234_v53  ;;  %v3236_v1 = vmul.f32 %v2724_v54, %v2724_v54  ;;  %v2726_v2 = vsub.f32 %v2180_v55, %v4965_v16  ;;  %v2184_v3 = vmul.f32 %v4836_v58, %v678_v50  ;;  %4857 = vrcp.f32 %v1201_v51  ;;  %v689_v53 = vld [vmem:[%s4956_s23 + $0xf60] sm:$0xff]  ;;  %v1212_v54 = vld [vmem:[%s4942_s19 + $0xfb8] sm:$0xff] }
 0x1ff   : > { %v4840_v6 = vpop.eup %4839  ;;  %3748 = vst.msk [vmem:[%s4980_s26 + $0xee0] sm:$0xff] %vm3271_vm0, %v3235_v59  ;;  %v3237_v7 = vmul.f32 %v2725_v60, %v2725_v60  ;;  %v2727_v8 = vsub.f32 %v2182_v61, %v4965_v16  ;;  %v2186_v9 = vmul.f32 %v4838_v0, %v679_v56  ;;  %4859 = vrcp.f32 %v1202_v57  ;;  %v690_v59 = vld [vmem:[%s4956_s23 + $0xf68] sm:$0xff]  ;;  %v1213_v60 = vld [vmem:[%s4942_s19 + $0xfc0] sm:$0xff] }
 0x200   : > { %v4842_v12 = vpop.eup %4841  ;;  %3749 = vst.msk [vmem:[%s4980_s26 + $0xee8] sm:$0xff] %vm3271_vm0, %v3236_v1  ;;  %v3238_v13 = vmul.f32 %v2726_v2, %v2726_v2  ;;  %v2728_v14 = vsub.f32 %v2184_v3, %v4965_v16  ;;  %v2188_v15 = vmul.f32 %v4840_v6, %v680_v62  ;;  %4861 = vrcp.f32 %v1203_v63  ;;  %v691_v1 = vld [vmem:[%s4956_s23 + $0xf70] sm:$0xff]  ;;  %v1214_v2 = vld [vmem:[%s4942_s19 + $0xfc8] sm:$0xff] }
 0x201   : > { %v4844_v19 = vpop.eup %4843  ;;  %3750 = vst.msk [vmem:[%s4980_s26 + $0xef0] sm:$0xff] %vm3271_vm0, %v3237_v7  ;;  %v3239_v20 = vmul.f32 %v2727_v8, %v2727_v8  ;;  %v2729_v21 = vsub.f32 %v2186_v9, %v4965_v16  ;;  %v2190_v22 = vmul.f32 %v4842_v12, %v681_v4  ;;  %4863 = vrcp.f32 %v1204_v5  ;;  %v692_v7 = vld [vmem:[%s4956_s23 + $0xf78] sm:$0xff]  ;;  %v1215_v8 = vld [vmem:[%s4942_s19 + $0xfd0] sm:$0xff] }
 0x202   : > { %v4846_v25 = vpop.eup %4845  ;;  %3751 = vst.msk [vmem:[%s4980_s26 + $0xef8] sm:$0xff] %vm3271_vm0, %v3238_v13  ;;  %v3240_v26 = vmul.f32 %v2728_v14, %v2728_v14  ;;  %v2730_v27 = vsub.f32 %v2188_v15, %v4965_v16  ;;  %v2192_v28 = vmul.f32 %v4844_v19, %v682_v10  ;;  %4865 = vrcp.f32 %v1205_v11  ;;  %v693_v13 = vld [vmem:[%s4956_s23 + $0xf80] sm:$0xff]  ;;  %v1216_v14 = vld [vmem:[%s4942_s19 + $0xfd8] sm:$0xff] }
 0x203   : > { %v4848_v31 = vpop.eup %4847  ;;  %3752 = vst.msk [vmem:[%s4980_s26 + $0xf00] sm:$0xff] %vm3271_vm0, %v3239_v20  ;;  %v3241_v32 = vmul.f32 %v2729_v21, %v2729_v21  ;;  %v2731_v33 = vsub.f32 %v2190_v22, %v4965_v16  ;;  %v2194_v34 = vmul.f32 %v4846_v25, %v683_v17  ;;  %4867 = vrcp.f32 %v1206_v18  ;;  %v694_v20 = vld [vmem:[%s4956_s23 + $0xf88] sm:$0xff]  ;;  %v1217_v21 = vld [vmem:[%s4942_s19 + $0xfe0] sm:$0xff] }
 0x204   : > { %v4850_v37 = vpop.eup %4849  ;;  %3753 = vst.msk [vmem:[%s4980_s26 + $0xf08] sm:$0xff] %vm3271_vm0, %v3240_v26  ;;  %v3242_v38 = vmul.f32 %v2730_v27, %v2730_v27  ;;  %v2732_v39 = vsub.f32 %v2192_v28, %v4965_v16  ;;  %v2196_v40 = vmul.f32 %v4848_v31, %v684_v23  ;;  %4869 = vrcp.f32 %v1207_v24  ;;  %v695_v26 = vld [vmem:[%s4956_s23 + $0xf90] sm:$0xff]  ;;  %v1218_v27 = vld [vmem:[%s4942_s19 + $0xfe8] sm:$0xff] }
 0x205   : > { %v4852_v43 = vpop.eup %4851  ;;  %3754 = vst.msk [vmem:[%s4980_s26 + $0xf10] sm:$0xff] %vm3271_vm0, %v3241_v32  ;;  %v3243_v44 = vmul.f32 %v2731_v33, %v2731_v33  ;;  %v2733_v45 = vsub.f32 %v2194_v34, %v4965_v16  ;;  %v2198_v46 = vmul.f32 %v4850_v37, %v685_v29  ;;  %4871 = vrcp.f32 %v1208_v30  ;;  %v696_v32 = vld [vmem:[%s4956_s23 + $0xf98] sm:$0xff]  ;;  %v1219_v33 = vld [vmem:[%s4942_s19 + $0xff0] sm:$0xff] }
 0x206   : > { %v4854_v49 = vpop.eup %4853  ;;  %3755 = vst.msk [vmem:[%s4980_s26 + $0xf18] sm:$0xff] %vm3271_vm0, %v3242_v38  ;;  %v3244_v50 = vmul.f32 %v2732_v39, %v2732_v39  ;;  %v2734_v51 = vsub.f32 %v2196_v40, %v4965_v16  ;;  %v2200_v52 = vmul.f32 %v4852_v43, %v686_v35  ;;  %4873 = vrcp.f32 %v1209_v36  ;;  %v697_v38 = vld [vmem:[%s4956_s23 + $0xfa0] sm:$0xff]  ;;  %v1220_v39 = vld [vmem:[%s4942_s19 + $0xff8] sm:$0xff] }
 0x207   : > { %v4856_v55 = vpop.eup %4855  ;;  %3756 = vst.msk [vmem:[%s4980_s26 + $0xf20] sm:$0xff] %vm3271_vm0, %v3243_v44  ;;  %v3245_v56 = vmul.f32 %v2733_v45, %v2733_v45  ;;  %v2735_v57 = vsub.f32 %v2198_v46, %v4965_v16  ;;  %v2202_v58 = vmul.f32 %v4854_v49, %v687_v41  ;;  %4875 = vrcp.f32 %v1210_v42  ;;  %v698_v44 = vld [vmem:[%s4956_s23 + $0xfa8] sm:$0xff]  ;;  %v699_v49 = vld [vmem:[%s4956_s23 + $0xfb0] sm:$0xff] }
 0x208   : > { %v4858_v61 = vpop.eup %4857  ;;  %3757 = vst.msk [vmem:[%s4980_s26 + $0xf28] sm:$0xff] %vm3271_vm0, %v3244_v50  ;;  %v3246_v62 = vmul.f32 %v2734_v51, %v2734_v51  ;;  %v2736_v63 = vsub.f32 %v2200_v52, %v4965_v16  ;;  %v2204_v0 = vmul.f32 %v4856_v55, %v688_v47  ;;  %4877 = vrcp.f32 %v1211_v48 }
 0x209   : > { %v4860_v3 = vpop.eup %4859  ;;  %3758 = vst.msk [vmem:[%s4980_s26 + $0xf30] sm:$0xff] %vm3271_vm0, %v3245_v56  ;;  %v3247_v4 = vmul.f32 %v2735_v57, %v2735_v57  ;;  %v2737_v5 = vsub.f32 %v2202_v58, %v4965_v16  ;;  %v2206_v6 = vmul.f32 %v4858_v61, %v689_v53  ;;  %4879 = vrcp.f32 %v1212_v54  ;;  %v700_v54 = vld [vmem:[%s4956_s23 + $0xfb8] sm:$0xff] }
 0x20a   : > { %v4862_v9 = vpop.eup %4861  ;;  %3759 = vst.msk [vmem:[%s4980_s26 + $0xf38] sm:$0xff] %vm3271_vm0, %v3246_v62  ;;  %v3248_v10 = vmul.f32 %v2736_v63, %v2736_v63  ;;  %v2738_v11 = vsub.f32 %v2204_v0, %v4965_v16  ;;  %v2208_v12 = vmul.f32 %v4860_v3, %v690_v59  ;;  %4881 = vrcp.f32 %v1213_v60  ;;  %v701_v59 = vld [vmem:[%s4956_s23 + $0xfc0] sm:$0xff]  ;;  %v702_v0 = vld [vmem:[%s4956_s23 + $0xfc8] sm:$0xff] }
 0x20b   : > { %v4864_v15 = vpop.eup %4863  ;;  %3760 = vst.msk [vmem:[%s4980_s26 + $0xf40] sm:$0xff] %vm3271_vm0, %v3247_v4  ;;  %v3249_v17 = vmul.f32 %v2737_v5, %v2737_v5  ;;  %v2739_v18 = vsub.f32 %v2206_v6, %v4965_v16  ;;  %v2210_v19 = vmul.f32 %v4862_v9, %v691_v1  ;;  %4883 = vrcp.f32 %v1214_v2  ;;  %v703_v5 = vld [vmem:[%s4956_s23 + $0xfd0] sm:$0xff] }
 0x20c   : > { %v4866_v22 = vpop.eup %4865  ;;  %3761 = vst.msk [vmem:[%s4980_s26 + $0xf48] sm:$0xff] %vm3271_vm0, %v3248_v10  ;;  %v3250_v23 = vmul.f32 %v2738_v11, %v2738_v11  ;;  %v2740_v24 = vsub.f32 %v2208_v12, %v4965_v16  ;;  %v2212_v25 = vmul.f32 %v4864_v15, %v692_v7  ;;  %4885 = vrcp.f32 %v1215_v8  ;;  %v704_v10 = vld [vmem:[%s4956_s23 + $0xfd8] sm:$0xff]  ;;  %v705_v15 = vld [vmem:[%s4956_s23 + $0xfe0] sm:$0xff] }
 0x20d   : > { %v4868_v28 = vpop.eup %4867  ;;  %3762 = vst.msk [vmem:[%s4980_s26 + $0xf50] sm:$0xff] %vm3271_vm0, %v3249_v17  ;;  %v3251_v29 = vmul.f32 %v2739_v18, %v2739_v18  ;;  %v2741_v30 = vsub.f32 %v2210_v19, %v4965_v16  ;;  %v2214_v31 = vmul.f32 %v4866_v22, %v693_v13  ;;  %4887 = vrcp.f32 %v1216_v14 }
 0x20e   : > { %v4870_v34 = vpop.eup %4869  ;;  %3763 = vst.msk [vmem:[%s4980_s26 + $0xf58] sm:$0xff] %vm3271_vm0, %v3250_v23  ;;  %v3252_v35 = vmul.f32 %v2740_v24, %v2740_v24  ;;  %v2742_v36 = vsub.f32 %v2212_v25, %v4965_v16  ;;  %v2216_v37 = vmul.f32 %v4868_v28, %v694_v20  ;;  %4889 = vrcp.f32 %v1217_v21  ;;  %v706_v21 = vld [vmem:[%s4956_s23 + $0xfe8] sm:$0xff] }
 0x20f   : > { %v4872_v40 = vpop.eup %4871  ;;  %3764 = vst.msk [vmem:[%s4980_s26 + $0xf60] sm:$0xff] %vm3271_vm0, %v3251_v29  ;;  %v3253_v41 = vmul.f32 %v2741_v30, %v2741_v30  ;;  %v2743_v42 = vsub.f32 %v2214_v31, %v4965_v16  ;;  %v2218_v43 = vmul.f32 %v4870_v34, %v695_v26  ;;  %4891 = vrcp.f32 %v1218_v27  ;;  %v707_v26 = vld [vmem:[%s4956_s23 + $0xff0] sm:$0xff]  ;;  %v708_v31 = vld [vmem:[%s4956_s23 + $0xff8] sm:$0xff] }
 0x210   : > { %v4874_v45 = vpop.eup %4873  ;;  %3765 = vst.msk [vmem:[%s4980_s26 + $0xf68] sm:$0xff] %vm3271_vm0, %v3252_v35  ;;  %v3254_v46 = vmul.f32 %v2742_v36, %v2742_v36  ;;  %v2744_v47 = vsub.f32 %v2216_v37, %v4965_v16  ;;  %v2220_v48 = vmul.f32 %v4872_v40, %v696_v32  ;;  %4893 = vrcp.f32 %v1219_v33 }
 0x211   : > { %v4876_v50 = vpop.eup %4875  ;;  %3766 = vst.msk [vmem:[%s4980_s26 + $0xf70] sm:$0xff] %vm3271_vm0, %v3253_v41  ;;  %v3255_v51 = vmul.f32 %v2743_v42, %v2743_v42  ;;  %v2745_v52 = vsub.f32 %v2218_v43, %v4965_v16  ;;  %v2222_v53 = vmul.f32 %v4874_v45, %v697_v38  ;;  %4895 = vrcp.f32 %v1220_v39 }
 0x212   : > { %v4878_v55 = vpop.eup %4877  ;;  %3767 = vst.msk [vmem:[%s4980_s26 + $0xf78] sm:$0xff] %vm3271_vm0, %v3254_v46  ;;  %v3256_v56 = vmul.f32 %v2744_v47, %v2744_v47  ;;  %v2746_v57 = vsub.f32 %v2220_v48, %v4965_v16  ;;  %v2224_v58 = vmul.f32 %v4876_v50, %v698_v44 }
 0x213   : > { %v4880_v60 = vpop.eup %4879  ;;  %3768 = vst.msk [vmem:[%s4980_s26 + $0xf80] sm:$0xff] %vm3271_vm0, %v3255_v51  ;;  %v3257_v61 = vmul.f32 %v2745_v52, %v2745_v52  ;;  %v2747_v62 = vsub.f32 %v2222_v53, %v4965_v16  ;;  %v2226_v63 = vmul.f32 %v4878_v55, %v699_v49 }
 0x214   : > { %v4882_v1 = vpop.eup %4881  ;;  %3769 = vst.msk [vmem:[%s4980_s26 + $0xf88] sm:$0xff] %vm3271_vm0, %v3256_v56  ;;  %v3258_v2 = vmul.f32 %v2746_v57, %v2746_v57  ;;  %v2748_v3 = vsub.f32 %v2224_v58, %v4965_v16  ;;  %v2228_v4 = vmul.f32 %v4880_v60, %v700_v54 }
 0x215   : > { %v4884_v6 = vpop.eup %4883  ;;  %3770 = vst.msk [vmem:[%s4980_s26 + $0xf90] sm:$0xff] %vm3271_vm0, %v3257_v61  ;;  %v3259_v7 = vmul.f32 %v2747_v62, %v2747_v62  ;;  %v2749_v8 = vsub.f32 %v2226_v63, %v4965_v16  ;;  %v2230_v9 = vmul.f32 %v4882_v1, %v701_v59 }
 0x216   : > { %v4886_v11 = vpop.eup %4885  ;;  %3771 = vst.msk [vmem:[%s4980_s26 + $0xf98] sm:$0xff] %vm3271_vm0, %v3258_v2  ;;  %v3260_v12 = vmul.f32 %v2748_v3, %v2748_v3  ;;  %v2750_v13 = vsub.f32 %v2228_v4, %v4965_v16  ;;  %v2232_v14 = vmul.f32 %v4884_v6, %v702_v0 }
 0x217   : > { %v4888_v17 = vpop.eup %4887  ;;  %3772 = vst.msk [vmem:[%s4980_s26 + $0xfa0] sm:$0xff] %vm3271_vm0, %v3259_v7  ;;  %v3261_v18 = vmul.f32 %v2749_v8, %v2749_v8  ;;  %v2751_v19 = vsub.f32 %v2230_v9, %v4965_v16  ;;  %v2234_v20 = vmul.f32 %v4886_v11, %v703_v5 }
 0x218   : > { %v4890_v22 = vpop.eup %4889  ;;  %3773 = vst.msk [vmem:[%s4980_s26 + $0xfa8] sm:$0xff] %vm3271_vm0, %v3260_v12  ;;  %v3262_v23 = vmul.f32 %v2750_v13, %v2750_v13  ;;  %v2752_v24 = vsub.f32 %v2232_v14, %v4965_v16  ;;  %v2236_v25 = vmul.f32 %v4888_v17, %v704_v10 }
 0x219   : > { %v4892_v27 = vpop.eup %4891  ;;  %3774 = vst.msk [vmem:[%s4980_s26 + $0xfb0] sm:$0xff] %vm3271_vm0, %v3261_v18  ;;  %v3263_v28 = vmul.f32 %v2751_v19, %v2751_v19  ;;  %v2753_v29 = vsub.f32 %v2234_v20, %v4965_v16  ;;  %v2238_v30 = vmul.f32 %v4890_v22, %v705_v15 }
 0x21a   : > { %v4894_v32 = vpop.eup %4893  ;;  %3775 = vst.msk [vmem:[%s4980_s26 + $0xfb8] sm:$0xff] %vm3271_vm0, %v3262_v23  ;;  %v3264_v33 = vmul.f32 %v2752_v24, %v2752_v24  ;;  %v2754_v34 = vsub.f32 %v2236_v25, %v4965_v16  ;;  %v2240_v35 = vmul.f32 %v4892_v27, %v706_v21 }
 0x21b   : > { %v4896_v36 = vpop.eup %4895  ;;  %3776 = vst.msk [vmem:[%s4980_s26 + $0xfc0] sm:$0xff] %vm3271_vm0, %v3263_v28  ;;  %v3265_v37 = vmul.f32 %v2753_v29, %v2753_v29  ;;  %v2755_v38 = vsub.f32 %v2238_v30, %v4965_v16  ;;  %v2242_v39 = vmul.f32 %v4894_v32, %v707_v26 }
 0x21c   : > { %3777 = vst.msk [vmem:[%s4980_s26 + $0xfc8] sm:$0xff] %vm3271_vm0, %v3264_v33  ;;  %v3266_v40 = vmul.f32 %v2754_v34, %v2754_v34  ;;  %v2756_v41 = vsub.f32 %v2240_v35, %v4965_v16  ;;  %v2244_v42 = vmul.f32 %v4896_v36, %v708_v31 }
 0x21d   : > { %3778 = vst.msk [vmem:[%s4980_s26 + $0xfd0] sm:$0xff] %vm3271_vm0, %v3265_v37  ;;  %v3267_v43 = vmul.f32 %v2755_v38, %v2755_v38  ;;  %v2757_v44 = vsub.f32 %v2242_v39, %v4965_v16 }
 0x21e   : > { %3779 = vst.msk [vmem:[%s4980_s26 + $0xfd8] sm:$0xff] %vm3271_vm0, %v3266_v40  ;;  %v3268_v45 = vmul.f32 %v2756_v41, %v2756_v41  ;;  %v2758_v46 = vsub.f32 %v2244_v42, %v4965_v16 }
 0x21f   : > { %3780 = vst.msk [vmem:[%s4980_s26 + $0xfe0] sm:$0xff] %vm3271_vm0, %v3267_v43  ;;  %v3269_v47 = vmul.f32 %v2757_v44, %v2757_v44 }
 0x220   : > { %3781 = vst.msk [vmem:[%s4980_s26 + $0xfe8] sm:$0xff] %vm3271_vm0, %v3268_v45  ;;  %v3270_v48 = vmul.f32 %v2758_v46, %v2758_v46 }
 0x221   : > { %3782 = vst.msk [vmem:[%s4980_s26 + $0xff0] sm:$0xff] %vm3271_vm0, %v3269_v47 }
 0x222   : > { %3783 = vst.msk [vmem:[%s4980_s26 + $0xff8] sm:$0xff] %vm3271_vm0, %v3270_v48 }
 0x223 PF: > { %s14_s14 = sadd.s32 1, %s4903_s14  }
 0x224   : > { %p11_p4 = scmp.ge.s32.totalorder %s14_s14, 4  }
 0x226   :  { %13 = sbr.rel (!%p11_p4) target bundleno = 2 (0x2), region = 65 }

</bundles_post_ra>
